<compile_context>
chip_gen: v5e
topology: v5e:2x2
jax: 0.10.0
libtpu: 0.0.40
codegen_flags: <defaults>
</compile_context>

<pallas_src>
import jax
import jax.numpy as jnp
from jax.experimental import pallas as pl
from jax.experimental.pallas import tpu as pltpu

IMAGE_SIZE = 28 * 28      # 784
NOISE_DIM = 100
NOISE_DIM_PADDED = 128    # one full 128-lane vreg
HIDDEN = (256, 512, 1024)


def _round_up(x, m):
    return (x + m - 1) // m * m


def _generator_kernel(x_ref,
                      w1_ref, b1_ref,
                      w2_ref, b2_ref,
                      w3_ref, b3_ref,
                      w4_ref, b4_ref,
                      out_ref):
    # Layer 1: Linear(128(padded 100) -> 256) + ReLU   (Dropout = identity, eval mode)
    h = jnp.dot(x_ref[...].astype(jnp.bfloat16), w1_ref[...],
                preferred_element_type=jnp.float32)
    h = jnp.maximum(h + b1_ref[...], 0.0)

    # Layer 2: Linear(256 -> 512) + ReLU
    h = jnp.dot(h.astype(jnp.bfloat16), w2_ref[...],
                preferred_element_type=jnp.float32)
    h = jnp.maximum(h + b2_ref[...], 0.0)

    # Layer 3: Linear(512 -> 1024) + ReLU
    h = jnp.dot(h.astype(jnp.bfloat16), w3_ref[...],
                preferred_element_type=jnp.float32)
    h = jnp.maximum(h + b3_ref[...], 0.0)

    # Layer 4: Linear(1024 -> 784) + Tanh
    h = jnp.dot(h.astype(jnp.bfloat16), w4_ref[...],
                preferred_element_type=jnp.float32)
    out_ref[...] = jnp.tanh(h + b4_ref[...]).astype(out_ref.dtype)


def generator_forward(x, params, *, block_b=128):
    """x: (B, 100) float32. params: list of (W (in_pad, out) bf16, b (1, out) f32)."""
    B = x.shape[0]

    # Pad noise features 100 -> 128 (W1 rows are zero-padded in init_params,
    # so layer-1 math is unchanged).
    x = jnp.pad(x, ((0, 0), (0, NOISE_DIM_PADDED - x.shape[1])))

    # Batch tiling: full MXU-sized tiles when B is large, otherwise one tile
    # padded up to the 8-sublane granule.
    tm = min(block_b, _round_up(B, 8))
    b_pad = _round_up(B, tm)
    if b_pad != B:
        x = jnp.pad(x, ((0, b_pad - B), (0, 0)))

    flat_args = [x]
    for w, b in params:
        flat_args += [w, b]

    batch_map = lambda i: (i, 0)   # x / out tiles follow the grid
    pinned = lambda i: (0, 0)      # weights & biases stay resident

    in_specs = [pl.BlockSpec((tm, NOISE_DIM_PADDED), batch_map)]
    for w, b in params:
        in_specs.append(pl.BlockSpec(w.shape, pinned))
        in_specs.append(pl.BlockSpec(b.shape, pinned))

    # Advisory cost estimate for XLA's scheduler.
    dims = (NOISE_DIM,) + HIDDEN + (IMAGE_SIZE,)
    flops = 2 * b_pad * sum(dims[i] * dims[i + 1] for i in range(len(dims) - 1))
    bytes_accessed = (sum(int(a.size) * a.dtype.itemsize for a in flat_args)
                      + b_pad * IMAGE_SIZE * 4)
    transcendentals = b_pad * IMAGE_SIZE  # tanh

    out = pl.pallas_call(
        _generator_kernel,
        out_shape=jax.ShapeDtypeStruct((b_pad, IMAGE_SIZE), jnp.float32),
        grid=(b_pad // tm,),
        in_specs=in_specs,
        out_specs=pl.BlockSpec((tm, IMAGE_SIZE), batch_map),
        compiler_params=pltpu.CompilerParams(
            dimension_semantics=("parallel",),   # batch tiles across v7x's 2 TCs
            vmem_limit_bytes=32 << 20,           # safe on v7x (64 MiB physical)
        ),
        cost_estimate=pl.CostEstimate(
            flops=flops,
            transcendentals=transcendentals,
            bytes_accessed=bytes_accessed,
        ),
    )(*flat_args)
    return out[:B]


def init_params(key):
    """PyTorch nn.Linear-style init (U[-1/sqrt(in), 1/sqrt(in)]).

    Weights are stored as (in_features, out_features) — transposed relative to
    PyTorch's (out, in) — and cast to bfloat16 to halve the HBM weight stream.
    W1 is zero-padded from 100 to 128 rows to match the padded noise input.
    Biases stay f32 (tiny) and are added after f32 accumulation.
    """
    dims = (NOISE_DIM,) + HIDDEN + (IMAGE_SIZE,)
    params = []
    for i in range(len(dims) - 1):
        fan_in, fan_out = dims[i], dims[i + 1]
        key, kw, kb = jax.random.split(key, 3)
        bound = 1.0 / (fan_in ** 0.5)
        w = jax.random.uniform(kw, (fan_in, fan_out), jnp.float32, -bound, bound)
        b = jax.random.uniform(kb, (1, fan_out), jnp.float32, -bound, bound)
        if i == 0:
            w = jnp.pad(w, ((0, NOISE_DIM_PADDED - fan_in), (0, 0)))
        params.append((w.astype(jnp.bfloat16), b))
    return params


def reference_forward(x, params):
    """Plain-JAX reference mirroring the kernel's bf16-MXU / f32-accumulate math."""
    h = jnp.pad(x, ((0, 0), (0, NOISE_DIM_PADDED - x.shape[1])))
    for i, (w, b) in enumerate(params):
        h = jnp.dot(h.astype(jnp.bfloat16), w,
                    preferred_element_type=jnp.float32) + b
        if i < len(params) - 1:
            h = jnp.maximum(h, 0.0)   # ReLU (+ eval-mode dropout = identity)
        else:
            h = jnp.tanh(h)
    return h


if __name__ == "__main__":
    key = jax.random.PRNGKey(0)
    key, kx = jax.random.split(key)

    B = 8
    # noise input; forward() views it as (B, 100)
    x = jax.random.normal(kx, (B, NOISE_DIM), jnp.float32)

    params = init_params(key)

    out = jax.block_until_ready(generator_forward(x, params))
    ref = reference_forward(x, params)

    assert out.shape == (B, IMAGE_SIZE), out.shape
    assert jnp.allclose(out, ref, atol=2e-2, rtol=2e-2), "mismatch vs reference"

    print("KERNEL_OK")
</pallas_src>

<mosaic_0001>
module attributes {stable_mosaic.version = 11 : i64} {
  func.func @_generator_kernel(%arg0: i32, %arg1: memref<8x128xf32, #tpu.memory_space<vmem>>, %arg2: memref<128x256xbf16, #tpu.memory_space<vmem>>, %arg3: memref<1x256xf32, #tpu.memory_space<vmem>>, %arg4: memref<256x512xbf16, #tpu.memory_space<vmem>>, %arg5: memref<1x512xf32, #tpu.memory_space<vmem>>, %arg6: memref<512x1024xbf16, #tpu.memory_space<vmem>>, %arg7: memref<1x1024xf32, #tpu.memory_space<vmem>>, %arg8: memref<1024x784xbf16, #tpu.memory_space<vmem>>, %arg9: memref<1x784xf32, #tpu.memory_space<vmem>>, %arg10: memref<8x784xf32, #tpu.memory_space<vmem>>) attributes {dimension_semantics = [#tpu.dimension_semantics<parallel>], iteration_bounds = array<i64: 1>, scalar_prefetch = 0 : i64, scratch_operands = 0 : i64, tpu.core_type = #tpu.core_type<tc>, window_params = [{transform_indices = @transform_0, window_bounds = array<i64: 8, 128>}, {pipeline_mode = #tpu.pipeline_mode<synchronous>, transform_indices = @transform_1, window_bounds = array<i64: 128, 256>}, {pipeline_mode = #tpu.pipeline_mode<synchronous>, transform_indices = @transform_2, window_bounds = array<i64: 1, 256>}, {pipeline_mode = #tpu.pipeline_mode<synchronous>, transform_indices = @transform_3, window_bounds = array<i64: 256, 512>}, {pipeline_mode = #tpu.pipeline_mode<synchronous>, transform_indices = @transform_4, window_bounds = array<i64: 1, 512>}, {pipeline_mode = #tpu.pipeline_mode<synchronous>, transform_indices = @transform_5, window_bounds = array<i64: 512, 1024>}, {pipeline_mode = #tpu.pipeline_mode<synchronous>, transform_indices = @transform_6, window_bounds = array<i64: 1, 1024>}, {pipeline_mode = #tpu.pipeline_mode<synchronous>, transform_indices = @transform_7, window_bounds = array<i64: 1024, 784>}, {pipeline_mode = #tpu.pipeline_mode<synchronous>, transform_indices = @transform_8, window_bounds = array<i64: 1, 784>}, {transform_indices = @transform_9, window_bounds = array<i64: 8, 784>}]} {
    %c0 = arith.constant 0 : index
    %c0_0 = arith.constant 0 : index
    %0 = vector.load %arg1[%c0, %c0_0] : memref<8x128xf32, #tpu.memory_space<vmem>>, vector<8x128xf32>
    %1 = arith.truncf %0 : vector<8x128xf32> to vector<8x128xbf16>
    %c0_1 = arith.constant 0 : index
    %c0_2 = arith.constant 0 : index
    %2 = vector.load %arg2[%c0_1, %c0_2] : memref<128x256xbf16, #tpu.memory_space<vmem>>, vector<128x256xbf16>
    %cst = arith.constant dense<0.000000e+00> : vector<8x256xf32>
    %3 = tpu.matmul %1, %2, %cst {dimension_numbers = #tpu.dot_dimension_numbers<[1], [0], [0], [1], [0, 0, 1, 1], [], []>} : vector<8x128xbf16>, vector<128x256xbf16>, vector<8x256xf32> -> vector<8x256xf32>
    %c0_3 = arith.constant 0 : index
    %c0_4 = arith.constant 0 : index
    %4 = vector.load %arg3[%c0_3, %c0_4] : memref<1x256xf32, #tpu.memory_space<vmem>>, vector<1x256xf32>
    %5 = vector.broadcast %4 : vector<1x256xf32> to vector<8x256xf32>
    %6 = arith.addf %3, %5 : vector<8x256xf32>
    %cst_5 = arith.constant 0.000000e+00 : f32
    %7 = vector.broadcast %cst_5 : f32 to vector<8x256xf32>
    %8 = arith.maximumf %6, %7 : vector<8x256xf32>
    %9 = arith.truncf %8 : vector<8x256xf32> to vector<8x256xbf16>
    %c0_6 = arith.constant 0 : index
    %c0_7 = arith.constant 0 : index
    %10 = vector.load %arg4[%c0_6, %c0_7] : memref<256x512xbf16, #tpu.memory_space<vmem>>, vector<256x512xbf16>
    %cst_8 = arith.constant dense<0.000000e+00> : vector<8x512xf32>
    %11 = tpu.matmul %9, %10, %cst_8 {dimension_numbers = #tpu.dot_dimension_numbers<[1], [0], [0], [1], [0, 0, 1, 1], [], []>} : vector<8x256xbf16>, vector<256x512xbf16>, vector<8x512xf32> -> vector<8x512xf32>
    %c0_9 = arith.constant 0 : index
    %c0_10 = arith.constant 0 : index
    %12 = vector.load %arg5[%c0_9, %c0_10] : memref<1x512xf32, #tpu.memory_space<vmem>>, vector<1x512xf32>
    %13 = vector.broadcast %12 : vector<1x512xf32> to vector<8x512xf32>
    %14 = arith.addf %11, %13 : vector<8x512xf32>
    %cst_11 = arith.constant 0.000000e+00 : f32
    %15 = vector.broadcast %cst_11 : f32 to vector<8x512xf32>
    %16 = arith.maximumf %14, %15 : vector<8x512xf32>
    %17 = arith.truncf %16 : vector<8x512xf32> to vector<8x512xbf16>
    %c0_12 = arith.constant 0 : index
    %c0_13 = arith.constant 0 : index
    %18 = vector.load %arg6[%c0_12, %c0_13] : memref<512x1024xbf16, #tpu.memory_space<vmem>>, vector<512x1024xbf16>
    %cst_14 = arith.constant dense<0.000000e+00> : vector<8x1024xf32>
    %19 = tpu.matmul %17, %18, %cst_14 {dimension_numbers = #tpu.dot_dimension_numbers<[1], [0], [0], [1], [0, 0, 1, 1], [], []>} : vector<8x512xbf16>, vector<512x1024xbf16>, vector<8x1024xf32> -> vector<8x1024xf32>
    %c0_15 = arith.constant 0 : index
    %c0_16 = arith.constant 0 : index
    %20 = vector.load %arg7[%c0_15, %c0_16] : memref<1x1024xf32, #tpu.memory_space<vmem>>, vector<1x1024xf32>
    %21 = vector.broadcast %20 : vector<1x1024xf32> to vector<8x1024xf32>
    %22 = arith.addf %19, %21 : vector<8x1024xf32>
    %cst_17 = arith.constant 0.000000e+00 : f32
    %23 = vector.broadcast %cst_17 : f32 to vector<8x1024xf32>
    %24 = arith.maximumf %22, %23 : vector<8x1024xf32>
    %25 = arith.truncf %24 : vector<8x1024xf32> to vector<8x1024xbf16>
    %c0_18 = arith.constant 0 : index
    %c0_19 = arith.constant 0 : index
    %26 = vector.load %arg8[%c0_18, %c0_19] : memref<1024x784xbf16, #tpu.memory_space<vmem>>, vector<1024x784xbf16>
    %cst_20 = arith.constant dense<0.000000e+00> : vector<8x784xf32>
    %27 = tpu.matmul %25, %26, %cst_20 {dimension_numbers = #tpu.dot_dimension_numbers<[1], [0], [0], [1], [0, 0, 1, 1], [], []>} : vector<8x1024xbf16>, vector<1024x784xbf16>, vector<8x784xf32> -> vector<8x784xf32>
    %c0_21 = arith.constant 0 : index
    %c0_22 = arith.constant 0 : index
    %28 = vector.load %arg9[%c0_21, %c0_22] : memref<1x784xf32, #tpu.memory_space<vmem>>, vector<1x784xf32>
    %29 = vector.broadcast %28 : vector<1x784xf32> to vector<8x784xf32>
    %30 = arith.addf %27, %29 : vector<8x784xf32>
    %31 = math.tanh %30 : vector<8x784xf32>
    %c0_23 = arith.constant 0 : index
    %c0_24 = arith.constant 0 : index
    %32 = vector.load %arg10[%c0_23, %c0_24] : memref<8x784xf32, #tpu.memory_space<vmem>>, vector<8x784xf32>
    tpu.vector_store %arg10[%c0_23, %c0_24], %31 {strides = array<i32>} : memref<8x784xf32, #tpu.memory_space<vmem>>, vector<8x784xf32>,
    return
  }
  func.func @transform_0(%arg0: i32) -> (i32, i32) {
    %c0_i32 = arith.constant 0 : i32
    %c0_i32_0 = arith.constant 0 : i32
    return %arg0, %c0_i32 : i32, i32
  }
  func.func @transform_1(%arg0: i32) -> (i32, i32) {
    %c0_i32 = arith.constant 0 : i32
    %c0_i32_0 = arith.constant 0 : i32
    %c0_i32_1 = arith.constant 0 : i32
    return %c0_i32, %c0_i32_0 : i32, i32
  }
  func.func @transform_2(%arg0: i32) -> (i32, i32) {
    %c0_i32 = arith.constant 0 : i32
    %c0_i32_0 = arith.constant 0 : i32
    %c0_i32_1 = arith.constant 0 : i32
    return %c0_i32, %c0_i32_0 : i32, i32
  }
  func.func @transform_3(%arg0: i32) -> (i32, i32) {
    %c0_i32 = arith.constant 0 : i32
    %c0_i32_0 = arith.constant 0 : i32
    %c0_i32_1 = arith.constant 0 : i32
    return %c0_i32, %c0_i32_0 : i32, i32
  }
  func.func @transform_4(%arg0: i32) -> (i32, i32) {
    %c0_i32 = arith.constant 0 : i32
    %c0_i32_0 = arith.constant 0 : i32
    %c0_i32_1 = arith.constant 0 : i32
    return %c0_i32, %c0_i32_0 : i32, i32
  }
  func.func @transform_5(%arg0: i32) -> (i32, i32) {
    %c0_i32 = arith.constant 0 : i32
    %c0_i32_0 = arith.constant 0 : i32
    %c0_i32_1 = arith.constant 0 : i32
    return %c0_i32, %c0_i32_0 : i32, i32
  }
  func.func @transform_6(%arg0: i32) -> (i32, i32) {
    %c0_i32 = arith.constant 0 : i32
    %c0_i32_0 = arith.constant 0 : i32
    %c0_i32_1 = arith.constant 0 : i32
    return %c0_i32, %c0_i32_0 : i32, i32
  }
  func.func @transform_7(%arg0: i32) -> (i32, i32) {
    %c0_i32 = arith.constant 0 : i32
    %c0_i32_0 = arith.constant 0 : i32
    %c0_i32_1 = arith.constant 0 : i32
    return %c0_i32, %c0_i32_0 : i32, i32
  }
  func.func @transform_8(%arg0: i32) -> (i32, i32) {
    %c0_i32 = arith.constant 0 : i32
    %c0_i32_0 = arith.constant 0 : i32
    %c0_i32_1 = arith.constant 0 : i32
    return %c0_i32, %c0_i32_0 : i32, i32
  }
  func.func @transform_9(%arg0: i32) -> (i32, i32) {
    %c0_i32 = arith.constant 0 : i32
    %c0_i32_0 = arith.constant 0 : i32
    return %arg0, %c0_i32 : i32, i32
  }
}

</mosaic_0001>

<bundles_post_ra>
// kernel: tpu_custom_call.1
= control target key start
LH: loop header
LB: loop body
LE: loop exit
PB: predicated region body
PF: predicated region fallthrough
CT: control target
= control target key end

     0   :  { %s15265_s0 = inlined_call_operand.vmem [shape: f32[8,128], index: 0, kind: input, shape index: {}]   ;;  %s15266_s1 = inlined_call_operand.vmem [shape: bf16[128,256], index: 1, kind: input, shape index: {}]   ;;  %s15267_s2 = inlined_call_operand.vmem [shape: f32[1,256], index: 2, kind: input, shape index: {}]   ;;  %s15268_s3 = inlined_call_operand.vmem [shape: bf16[256,512], index: 3, kind: input, shape index: {}]   ;;  %s15269_s4 = inlined_call_operand.vmem [shape: f32[1,512], index: 4, kind: input, shape index: {}]   ;;  %s15270_s5 = inlined_call_operand.vmem [shape: bf16[512,1024], index: 5, kind: input, shape index: {}]   ;;  %s15271_s6 = inlined_call_operand.vmem [shape: f32[1,1024], index: 6, kind: input, shape index: {}]   ;;  %s15272_s7 = inlined_call_operand.vmem [shape: bf16[1024,784], index: 7, kind: input, shape index: {}]   ;;  %s15273_s8 = inlined_call_operand.vmem [shape: f32[1,784], index: 8, kind: input, shape index: {}]   ;;  %s15274_s9 = inlined_call_operand.hbm [shape: f32[8,784], index: 9, kind: output, shape index: {}]  }
   0x1   :  { %v6308_v0 = vld [vmem:[%s15266_s1 + $0x70] sm:$0xf]  ;;  %v9401_v1 = vld [vmem:[%s15266_s1 + $0x74] sm:$0xf0]  ;;  %v9400_v2 = vld [vmem:[%s15266_s1 + $0x74] sm:$0xf] }
   0x2   :  { %v6309_v3 = vor.u32 %v9401_v1, %v6308_v0  ;;  %v6310_v4 = vld [vmem:[%s15266_s1 + $0x78] sm:$0xf0]  ;;  %v6300_v5 = vld [vmem:[%s15266_s1 + $0x60] sm:$0xf]  ;;  %v9399_v6 = vld [vmem:[%s15266_s1 + $0x64] sm:$0xf0] }
   0x3   :  { %v6313_v7 = vor.u32 %v9400_v2, %v6310_v4  ;;  %v9398_v8 = vld [vmem:[%s15266_s1 + $0x64] sm:$0xf]  ;;  %v6302_v9 = vld [vmem:[%s15266_s1 + $0x68] sm:$0xf0]  ;;  %v6301_v10 = vor.u32 %v9399_v6, %v6300_v5  ;;  %v6292_v12 = vld [vmem:[%s15266_s1 + $0x50] sm:$0xf] }
   0x4   :  { %137 = vmatpush.bf16.msra.mxu0 %v6309_v3  ;;  %v6305_v11 = vor.u32 %v9398_v8, %v6302_v9  ;;  %v9397_v13 = vld [vmem:[%s15266_s1 + $0x54] sm:$0xf0]  ;;  %v9396_v14 = vld [vmem:[%s15266_s1 + $0x54] sm:$0xf]  ;;  %v6294_v15 = vld [vmem:[%s15266_s1 + $0x58] sm:$0xf0] }
   0x5   :  { %150 = vmatpush.bf16.msra.mxu1 %v6313_v7  ;;  %v6293_v16 = vor.u32 %v9397_v13, %v6292_v12  ;;  %v6297_v17 = vor.u32 %v9396_v14, %v6294_v15  ;;  %v6284_v18 = vld [vmem:[%s15266_s1 + $0x40] sm:$0xf]  ;;  %v9395_v19 = vld [vmem:[%s15266_s1 + $0x44] sm:$0xf0]  ;;  %v9394_v20 = vld [vmem:[%s15266_s1 + $0x44] sm:$0xf] }
   0x6   :  { %v6286_v21 = vld [vmem:[%s15266_s1 + $0x48] sm:$0xf0]  ;;  %v6285_v22 = vor.u32 %v9395_v19, %v6284_v18  ;;  %v6428_v23 = vld [vmem:[%s15268_s3 + $0xe0] sm:$0xf]  ;;  %v9432_v24 = vld [vmem:[%s15268_s3 + $0xec] sm:$0xf0] }
   0x7   :  { %v6556_v25 = vld [vmem:[%s15268_s3 + $0x1e0] sm:$0xf]  ;;  %v6289_v26 = vor.u32 %v9394_v20, %v6286_v21  ;;  %v6276_v27 = vld [vmem:[%s15266_s1 + $0x30] sm:$0xf]  ;;  %v9393_v28 = vld [vmem:[%s15266_s1 + $0x34] sm:$0xf0]  ;;  %v6429_v29 = vor.u32 %v9432_v24, %v6428_v23 }
   0x8   :  { %138 = vmatpush.bf16.msra.mxu0 %v6301_v10  ;;  %v9464_v30 = vld [vmem:[%s15268_s3 + $0x1ec] sm:$0xf0]  ;;  %v9392_v31 = vld [vmem:[%s15266_s1 + $0x34] sm:$0xf]  ;;  %v6278_v32 = vld [vmem:[%s15266_s1 + $0x38] sm:$0xf0]  ;;  %v6277_v38 = vor.u32 %v9393_v28, %v6276_v27 }
   0x9   :  { %151 = vmatpush.bf16.msra.mxu1 %v6305_v11  ;;  %v6557_v33 = vor.u32 %v9464_v30, %v6556_v25  ;;  %v6412_v34 = vld [vmem:[%s15268_s3 + $0xc0] sm:$0xf]  ;;  %561 = vmatpush.bf16.msra.mxu2 %v6429_v29  ;;  %v9428_v35 = vld [vmem:[%s15268_s3 + $0xcc] sm:$0xf0]  ;;  %v9391_v40 = vld [vmem:[%s15266_s1 + $0x24] sm:$0xf0]  ;;  %v6281_v43 = vor.u32 %v9392_v31, %v6278_v32 }
   0xa   :  { %v6540_v36 = vld [vmem:[%s15268_s3 + $0x1c0] sm:$0xf]  ;;  %v9460_v37 = vld [vmem:[%s15268_s3 + $0x1cc] sm:$0xf0]  ;;  %v6413_v41 = vor.u32 %v9428_v35, %v6412_v34  ;;  %v9390_v44 = vld [vmem:[%s15266_s1 + $0x24] sm:$0xf] }
   0xb   :  { %v6268_v39 = vld [vmem:[%s15266_s1 + $0x20] sm:$0xf]  ;;  %574 = vmatpush.bf16.msra.mxu3 %v6557_v33  ;;  %v6541_v42 = vor.u32 %v9460_v37, %v6540_v36  ;;  %v9424_v46 = vld [vmem:[%s15268_s3 + $0xac] sm:$0xf0]  ;;  %v6270_v47 = vld [vmem:[%s15266_s1 + $0x28] sm:$0xf0] }
   0xc   :  { %139 = vmatpush.bf16.msra.mxu0 %v6293_v16  ;;  %v6396_v45 = vld [vmem:[%s15268_s3 + $0xa0] sm:$0xf]  ;;  %v9456_v49 = vld [vmem:[%s15268_s3 + $0x1ac] sm:$0xf0]  ;;  %v6269_v51 = vor.u32 %v9391_v40, %v6268_v39  ;;  %v6273_v56 = vor.u32 %v9390_v44, %v6270_v47  ;;  %v9389_v57 = vld [vmem:[%s15266_s1 + $0x14] sm:$0xf0] }
   0xd   :  { %152 = vmatpush.bf16.msra.mxu1 %v6297_v17  ;;  %v6524_v48 = vld [vmem:[%s15268_s3 + $0x1a0] sm:$0xf]  ;;  %562 = vmatpush.bf16.msra.mxu2 %v6413_v41  ;;  %v6397_v50 = vor.u32 %v9424_v46, %v6396_v45  ;;  %v6260_v52 = vld [vmem:[%s15266_s1 + $0x10] sm:$0xf]  ;;  %v9388_v60 = vld [vmem:[%s15266_s1 + $0x14] sm:$0xf] }
   0xe   :  { %v6525_v53 = vor.u32 %v9456_v49, %v6524_v48  ;;  %v6380_v54 = vld [vmem:[%s15268_s3 + $0x80] sm:$0xf]  ;;  %v9420_v55 = vld [vmem:[%s15268_s3 + $0x8c] sm:$0xf0]  ;;  %v6262_v61 = vld [vmem:[%s15266_s1 + $0x18] sm:$0xf0]  ;;  %v6261_v0 = vor.u32 %v9389_v57, %v6260_v52 }
   0xf   :  { %575 = vmatpush.bf16.msra.mxu3 %v6541_v42  ;;  %v6508_v58 = vld [vmem:[%s15268_s3 + $0x180] sm:$0xf]  ;;  %v9452_v59 = vld [vmem:[%s15268_s3 + $0x18c] sm:$0xf0]  ;;  %v6381_v63 = vor.u32 %v9420_v55, %v6380_v54  ;;  %v9387_v1 = vld [vmem:[%s15266_s1 + $0x4] sm:$0xf0]  ;;  %v6265_v5 = vor.u32 %v9388_v60, %v6262_v61 }
  0x10   :  { %140 = vmatpush.bf16.msra.mxu0 %v6285_v22  ;;  %v6252_v62 = vld [vmem:[%s15266_s1] sm:$0xf]  ;;  %v6509_v2 = vor.u32 %v9452_v59, %v6508_v58  ;;  %v9416_v4 = vld [vmem:[%s15268_s3 + $0x6c] sm:$0xf0]  ;;  %v9386_v6 = vld [vmem:[%s15266_s1 + $0x4] sm:$0xf] }
  0x11   :  { %153 = vmatpush.bf16.msra.mxu1 %v6289_v26  ;;  %563 = vmatpush.bf16.msra.mxu2 %v6397_v50  ;;  %v6364_v3 = vld [vmem:[%s15268_s3 + $0x60] sm:$0xf]  ;;  %v9448_v8 = vld [vmem:[%s15268_s3 + $0x16c] sm:$0xf0]  ;;  %v6254_v9 = vld [vmem:[%s15266_s1 + $0x8] sm:$0xf0]  ;;  %v6253_v15 = vor.u32 %v9387_v1, %v6252_v62 }
  0x12   :  { %v6492_v7 = vld [vmem:[%s15268_s3 + $0x160] sm:$0xf]  ;;  %v9430_v10 = vld [vmem:[%s15268_s3 + $0xe4] sm:$0xf]  ;;  %v6430_v11 = vld [vmem:[%s15268_s3 + $0xf0] sm:$0xf0]  ;;  %v6365_v14 = vor.u32 %v9416_v4, %v6364_v3  ;;  %v6257_v20 = vor.u32 %v9386_v6, %v6254_v9 }
  0x13   :  { %576 = vmatpush.bf16.msra.mxu3 %v6525_v53  ;;  %v9462_v12 = vld [vmem:[%s15268_s3 + $0x1e4] sm:$0xf]  ;;  %v6558_v13 = vld [vmem:[%s15268_s3 + $0x1f0] sm:$0xf0]  ;;  %v6493_v17 = vor.u32 %v9448_v8, %v6492_v7  ;;  %v6348_v18 = vld [vmem:[%s15268_s3 + $0x40] sm:$0xf]  ;;  %v6433_v21 = vor.u32 %v9430_v10, %v6430_v11 }
  0x14   :  { %141 = vmatpush.bf16.msra.mxu0 %v6277_v38  ;;  %v33_v16 = vld [vmem:[%s15265_s0] sm:$0xff]  ;;  %v9412_v19 = vld [vmem:[%s15268_s3 + $0x4c] sm:$0xf0]  ;;  %v6561_v24 = vor.u32 %v9462_v12, %v6558_v13  ;;  %v6414_v26 = vld [vmem:[%s15268_s3 + $0xd0] sm:$0xf0] }
  0x15   :  { %154 = vmatpush.bf16.msra.mxu1 %v6281_v43  ;;  %564 = vmatpush.bf16.msra.mxu2 %v6381_v63  ;;  %v6476_v22 = vld [vmem:[%s15268_s3 + $0x140] sm:$0xf]  ;;  %v9444_v23 = vld [vmem:[%s15268_s3 + $0x14c] sm:$0xf0]  ;;  %v9426_v25 = vld [vmem:[%s15268_s3 + $0xc4] sm:$0xf]  ;;  %v34_v27 = vpack.c.bf16 %v33_v16, %v33_v16  ;;  %v6349_v30 = vor.u32 %v9412_v19, %v6348_v18 }
  0x16   :  { %v9458_v28 = vld [vmem:[%s15268_s3 + $0x1c4] sm:$0xf]  ;;  %v6542_v29 = vld [vmem:[%s15268_s3 + $0x1d0] sm:$0xf0]  ;;  %v6477_v31 = vor.u32 %v9444_v23, %v6476_v22  ;;  %v6332_v32 = vld [vmem:[%s15268_s3 + $0x20] sm:$0xf]  ;;  %v6417_v34 = vor.u32 %v9426_v25, %v6414_v26 }
  0x17   :  { %577 = vmatpush.bf16.msra.mxu3 %v6509_v2  ;;  %v9408_v33 = vld [vmem:[%s15268_s3 + $0x2c] sm:$0xf0]  ;;  %v6460_v35 = vld [vmem:[%s15268_s3 + $0x120] sm:$0xf]  ;;  %v6545_v37 = vor.u32 %v9458_v28, %v6542_v29  ;;  %v9422_v38 = vld [vmem:[%s15268_s3 + $0xa4] sm:$0xf] }
  0x18   :  { %142 = vmatpush.bf16.msra.mxu0 %v6269_v51  ;;  %v9440_v36 = vld [vmem:[%s15268_s3 + $0x12c] sm:$0xf0]  ;;  %v6398_v39 = vld [vmem:[%s15268_s3 + $0xb0] sm:$0xf0]  ;;  %v9454_v40 = vld [vmem:[%s15268_s3 + $0x1a4] sm:$0xf]  ;;  %v6333_v42 = vor.u32 %v9408_v33, %v6332_v32 }
  0x19   :  { %155 = vmatpush.bf16.msra.mxu1 %v6273_v56  ;;  %565 = vmatpush.bf16.msra.mxu2 %v6365_v14  ;;  %v6526_v41 = vld [vmem:[%s15268_s3 + $0x1b0] sm:$0xf0]  ;;  %v9418_v43 = vld [vmem:[%s15268_s3 + $0x84] sm:$0xf]  ;;  %v6461_v44 = vor.u32 %v9440_v36, %v6460_v35  ;;  %v6316_v45 = vld [vmem:[%s15268_s3] sm:$0xf]  ;;  %v6401_v48 = vor.u32 %v9422_v38, %v6398_v39 }
  0x1a   :  { %v9404_v46 = vld [vmem:[%s15268_s3 + $0xc] sm:$0xf0]  ;;  %v6444_v47 = vld [vmem:[%s15268_s3 + $0x100] sm:$0xf]  ;;  %v6436_v50 = vld [vmem:[%s15268_s3 + $0xe8] sm:$0xf]  ;;  %v6529_v52 = vor.u32 %v9454_v40, %v6526_v41 }
  0x1b   :  { %578 = vmatpush.bf16.msra.mxu3 %v6493_v17  ;;  %v9436_v49 = vld [vmem:[%s15268_s3 + $0x10c] sm:$0xf0]  ;;  %v9433_v51 = vld [vmem:[%s15268_s3 + $0xf4] sm:$0xf0]  ;;  %v6382_v53 = vld [vmem:[%s15268_s3 + $0x90] sm:$0xf0]  ;;  %v6317_v58 = vor.u32 %v9404_v46, %v6316_v45 }
  0x1c   :  { %143 = vmatpush.bf16.msra.mxu0 %v6261_v0  ;;  %v6564_v54 = vld [vmem:[%s15268_s3 + $0x1e8] sm:$0xf]  ;;  %v9465_v55 = vld [vmem:[%s15268_s3 + $0x1f4] sm:$0xf0]  ;;  %v9450_v56 = vld [vmem:[%s15268_s3 + $0x184] sm:$0xf] }
  0x1d   :  { %156 = vmatpush.bf16.msra.mxu1 %v6265_v5  ;;  %566 = vmatpush.bf16.msra.mxu2 %v6349_v30  ;;  %v6510_v57 = vld [vmem:[%s15268_s3 + $0x190] sm:$0xf0] }
  0x1f   :  { %579 = vmatpush.bf16.msra.mxu3 %v6477_v31 }
  0x20   :  { %144 = vmatpush.bf16.msra.mxu0 %v6253_v15 }
  0x21   :  { %157 = vmatpush.bf16.msra.mxu1 %v6257_v20  ;;  %567 = vmatpush.bf16.msra.mxu2 %v6333_v42 }
  0x23   :  { %145 = vmatmul.bf16.vlgmr.msra.gmra.mxu0 %v34_v27 }
  0x24   :  { %587 = vmatpush.bf16.msrb.mxu0 %v6433_v21  ;;  %158 = vmatmul.bf16.vlgmr.msra.gmra.mxu1 %v34_v27 }
  0x25   :  { %600 = vmatpush.bf16.msrb.mxu1 %v6561_v24 }
  0x28   :  { %588 = vmatpush.bf16.msrb.mxu0 %v6417_v34 }
  0x29   :  { %601 = vmatpush.bf16.msrb.mxu1 %v6545_v37 }
  0x2a   :  { %14 = vsyncpa [#allocation3], 0  ;;  %580 = vmatpush.bf16.msra.mxu3 %v6461_v44  ;;  %v6445_v59 = vor.u32 %v9436_v49, %v6444_v47  ;;  %v6437_v60 = vor.u32 %v9433_v51, %v6436_v50  ;;  %v6385_v61 = vor.u32 %v9418_v43, %v6382_v53  ;;  %v9414_v62 = vld [vmem:[%s15268_s3 + $0x64] sm:$0xf]  ;;  %v6565_v63 = vor.u32 %v9465_v55, %v6564_v54  ;;  %v6420_v0 = vld [vmem:[%s15268_s3 + $0xc8] sm:$0xf] }
  0x2b   :  { %v9429_v1 = vld [vmem:[%s15268_s3 + $0xd4] sm:$0xf0]  ;;  %v6513_v2 = vor.u32 %v9450_v56, %v6510_v57  ;;  %v6366_v3 = vld [vmem:[%s15268_s3 + $0x70] sm:$0xf0]  ;;  %v6548_v4 = vld [vmem:[%s15268_s3 + $0x1c8] sm:$0xf]  ;;  %568 = vmatpush.bf16.msra.mxu2 %v6317_v58 }
  0x2c   :  { %589 = vmatpush.bf16.msrb.mxu0 %v6401_v48  ;;  %v9461_v5 = vld [vmem:[%s15268_s3 + $0x1d4] sm:$0xf0]  ;;  %v9446_v6 = vld [vmem:[%s15268_s3 + $0x164] sm:$0xf]  ;;  %v6494_v7 = vld [vmem:[%s15268_s3 + $0x170] sm:$0xf0]  ;;  %v6421_v8 = vor.u32 %v9429_v1, %v6420_v0  ;;  %v6369_v9 = vor.u32 %v9414_v62, %v6366_v3 }
  0x2d   :  { %602 = vmatpush.bf16.msrb.mxu1 %v6529_v52  ;;  %v6549_v10 = vor.u32 %v9461_v5, %v6548_v4  ;;  %v6497_v11 = vor.u32 %v9446_v6, %v6494_v7  ;;  %v9410_v12 = vld [vmem:[%s15268_s3 + $0x44] sm:$0xf]  ;;  %v6350_v13 = vld [vmem:[%s15268_s3 + $0x50] sm:$0xf0]  ;;  %v9431_v28 = vld [vmem:[%s15268_s3 + $0xec] sm:$0xf] }
  0x2e   :  { %581 = vmatpush.bf16.msra.mxu3 %v6445_v59  ;;  %v9442_v14 = vld [vmem:[%s15268_s3 + $0x144] sm:$0xf]  ;;  %v6478_v15 = vld [vmem:[%s15268_s3 + $0x150] sm:$0xf0]  ;;  %v6353_v16 = vor.u32 %v9410_v12, %v6350_v13  ;;  %v6438_v29 = vld [vmem:[%s15268_s3 + $0xf8] sm:$0xf0] }
  0x2f   :  { %613 = vmatpush.bf16.msrb.mxu2 %v6437_v60  ;;  %v6481_v17 = vor.u32 %v9442_v14, %v6478_v15  ;;  %v9406_v18 = vld [vmem:[%s15268_s3 + $0x24] sm:$0xf]  ;;  %v6334_v19 = vld [vmem:[%s15268_s3 + $0x30] sm:$0xf0]  ;;  %v9463_v30 = vld [vmem:[%s15268_s3 + $0x1ec] sm:$0xf]  ;;  %v6441_v34 = vor.u32 %v9431_v28, %v6438_v29 }
  0x30   :  { %590 = vmatpush.bf16.msrb.mxu0 %v6385_v61  ;;  %v9438_v20 = vld [vmem:[%s15268_s3 + $0x124] sm:$0xf]  ;;  %v6462_v21 = vld [vmem:[%s15268_s3 + $0x130] sm:$0xf0]  ;;  %v6337_v22 = vor.u32 %v9406_v18, %v6334_v19  ;;  %v6566_v31 = vld [vmem:[%s15268_s3 + $0x1f8] sm:$0xf0] }
  0x31   :  { %603 = vmatpush.bf16.msrb.mxu1 %v6513_v2  ;;  %v6465_v23 = vor.u32 %v9438_v20, %v6462_v21  ;;  %v9402_v24 = vld [vmem:[%s15268_s3 + $0x4] sm:$0xf]  ;;  %v6318_v25 = vld [vmem:[%s15268_s3 + $0x10] sm:$0xf0]  ;;  %v6569_v35 = vor.u32 %v9463_v30, %v6566_v31  ;;  %v9427_v36 = vld [vmem:[%s15268_s3 + $0xcc] sm:$0xf] }
  0x32   :  { %626 = vmatpush.bf16.msrb.mxu3 %v6565_v63  ;;  %v9434_v26 = vld [vmem:[%s15268_s3 + $0x104] sm:$0xf]  ;;  %v6446_v27 = vld [vmem:[%s15268_s3 + $0x110] sm:$0xf0]  ;;  %v6321_v32 = vor.u32 %v9402_v24, %v6318_v25  ;;  %v6422_v37 = vld [vmem:[%s15268_s3 + $0xd8] sm:$0xf0] }
  0x33   :  { %614 = vmatpush.bf16.msrb.mxu2 %v6421_v8  ;;  %v6449_v33 = vor.u32 %v9434_v26, %v6446_v27  ;;  %v9459_v38 = vld [vmem:[%s15268_s3 + $0x1cc] sm:$0xf]  ;;  %v6550_v39 = vld [vmem:[%s15268_s3 + $0x1d8] sm:$0xf0]  ;;  %v6425_v40 = vor.u32 %v9427_v36, %v6422_v37  ;;  %v6404_v42 = vld [vmem:[%s15268_s3 + $0xa8] sm:$0xf] }
  0x34   :  { %591 = vmatpush.bf16.msrb.mxu0 %v6369_v9  ;;  %v6553_v41 = vor.u32 %v9459_v38, %v6550_v39  ;;  %v9425_v43 = vld [vmem:[%s15268_s3 + $0xb4] sm:$0xf0]  ;;  %v6532_v44 = vld [vmem:[%s15268_s3 + $0x1a8] sm:$0xf]  ;;  %v9423_v47 = vld [vmem:[%s15268_s3 + $0xac] sm:$0xf] }
  0x35   :  { %604 = vmatpush.bf16.msrb.mxu1 %v6497_v11  ;;  %v6405_v45 = vor.u32 %v9425_v43, %v6404_v42  ;;  %v9457_v46 = vld [vmem:[%s15268_s3 + $0x1b4] sm:$0xf0]  ;;  %v6406_v48 = vld [vmem:[%s15268_s3 + $0xb8] sm:$0xf0]  ;;  %v9455_v51 = vld [vmem:[%s15268_s3 + $0x1ac] sm:$0xf] }
  0x36   :  { %627 = vmatpush.bf16.msrb.mxu3 %v6549_v10  ;;  %v6533_v49 = vor.u32 %v9457_v46, %v6532_v44  ;;  %v6409_v50 = vor.u32 %v9423_v47, %v6406_v48  ;;  %v6534_v52 = vld [vmem:[%s15268_s3 + $0x1b8] sm:$0xf0]  ;;  %v6388_v54 = vld [vmem:[%s15268_s3 + $0x88] sm:$0xf]  ;;  %v9421_v55 = vld [vmem:[%s15268_s3 + $0x94] sm:$0xf0] }
  0x37   :  { %615 = vmatpush.bf16.msrb.mxu2 %v6405_v45  ;;  %v6537_v53 = vor.u32 %v9455_v51, %v6534_v52  ;;  %v6516_v56 = vld [vmem:[%s15268_s3 + $0x188] sm:$0xf]  ;;  %v6389_v57 = vor.u32 %v9421_v55, %v6388_v54  ;;  %v9453_v58 = vld [vmem:[%s15268_s3 + $0x194] sm:$0xf0]  ;;  %v9419_v59 = vld [vmem:[%s15268_s3 + $0x8c] sm:$0xf] }
  0x38   :  { %592 = vmatpush.bf16.msrb.mxu0 %v6353_v16  ;;  %v6390_v60 = vld [vmem:[%s15268_s3 + $0x98] sm:$0xf0]  ;;  %v6517_v61 = vor.u32 %v9453_v58, %v6516_v56  ;;  %v9451_v63 = vld [vmem:[%s15268_s3 + $0x18c] sm:$0xf]  ;;  %v6372_v2 = vld [vmem:[%s15268_s3 + $0x68] sm:$0xf] }
  0x39   :  { %605 = vmatpush.bf16.msrb.mxu1 %v6481_v17  ;;  %v6393_v62 = vor.u32 %v9419_v59, %v6390_v60  ;;  %v6518_v0 = vld [vmem:[%s15268_s3 + $0x198] sm:$0xf0]  ;;  %v9417_v3 = vld [vmem:[%s15268_s3 + $0x74] sm:$0xf0]  ;;  %v6500_v4 = vld [vmem:[%s15268_s3 + $0x168] sm:$0xf] }
  0x3a   :  { %628 = vmatpush.bf16.msrb.mxu3 %v6533_v49  ;;  %v6521_v1 = vor.u32 %v9451_v63, %v6518_v0  ;;  %v6373_v5 = vor.u32 %v9417_v3, %v6372_v2  ;;  %v9449_v6 = vld [vmem:[%s15268_s3 + $0x174] sm:$0xf0]  ;;  %v9415_v7 = vld [vmem:[%s15268_s3 + $0x6c] sm:$0xf]  ;;  %v6374_v8 = vld [vmem:[%s15268_s3 + $0x78] sm:$0xf0] }
  0x3b   :  { %616 = vmatpush.bf16.msrb.mxu2 %v6389_v57  ;;  %v6501_v9 = vor.u32 %v9449_v6, %v6500_v4  ;;  %v6377_v10 = vor.u32 %v9415_v7, %v6374_v8  ;;  %v9447_v11 = vld [vmem:[%s15268_s3 + $0x16c] sm:$0xf]  ;;  %v6502_v12 = vld [vmem:[%s15268_s3 + $0x178] sm:$0xf0]  ;;  %v6356_v14 = vld [vmem:[%s15268_s3 + $0x48] sm:$0xf] }
  0x3c   :  { %593 = vmatpush.bf16.msrb.mxu0 %v6337_v22  ;;  %v6505_v13 = vor.u32 %v9447_v11, %v6502_v12  ;;  %v9413_v15 = vld [vmem:[%s15268_s3 + $0x54] sm:$0xf0]  ;;  %v6484_v16 = vld [vmem:[%s15268_s3 + $0x148] sm:$0xf]  ;;  %v9411_v19 = vld [vmem:[%s15268_s3 + $0x4c] sm:$0xf] }
  0x3d   :  { %606 = vmatpush.bf16.msrb.mxu1 %v6465_v23  ;;  %v6357_v17 = vor.u32 %v9413_v15, %v6356_v14  ;;  %v9445_v18 = vld [vmem:[%s15268_s3 + $0x154] sm:$0xf0]  ;;  %v6358_v20 = vld [vmem:[%s15268_s3 + $0x58] sm:$0xf0]  ;;  %v9443_v23 = vld [vmem:[%s15268_s3 + $0x14c] sm:$0xf] }
  0x3e   :  { %629 = vmatpush.bf16.msrb.mxu3 %v6517_v61  ;;  %v6485_v21 = vor.u32 %v9445_v18, %v6484_v16  ;;  %v6361_v22 = vor.u32 %v9411_v19, %v6358_v20  ;;  %v6486_v24 = vld [vmem:[%s15268_s3 + $0x158] sm:$0xf0]  ;;  %v6340_v25 = vld [vmem:[%s15268_s3 + $0x28] sm:$0xf]  ;;  %v9409_v27 = vld [vmem:[%s15268_s3 + $0x34] sm:$0xf0] }
  0x3f   :  { %617 = vmatpush.bf16.msrb.mxu2 %v6373_v5  ;;  %v6489_v26 = vor.u32 %v9443_v23, %v6486_v24  ;;  %v6468_v28 = vld [vmem:[%s15268_s3 + $0x128] sm:$0xf]  ;;  %v9441_v29 = vld [vmem:[%s15268_s3 + $0x134] sm:$0xf0]  ;;  %v6341_v30 = vor.u32 %v9409_v27, %v6340_v25  ;;  %v9407_v31 = vld [vmem:[%s15268_s3 + $0x2c] sm:$0xf] }
  0x40   :  { %594 = vmatpush.bf16.msrb.mxu0 %v6321_v32  ;;  %v6342_v32 = vld [vmem:[%s15268_s3 + $0x38] sm:$0xf0]  ;;  %v6324_v37 = vld [vmem:[%s15268_s3 + $0x8] sm:$0xf]  ;;  %v9405_v38 = vld [vmem:[%s15268_s3 + $0x14] sm:$0xf0] }
  0x41   :  { %607 = vmatpush.bf16.msrb.mxu1 %v6449_v33  ;;  %v9439_v33 = vld [vmem:[%s15268_s3 + $0x12c] sm:$0xf]  ;;  %v6470_v36 = vld [vmem:[%s15268_s3 + $0x138] sm:$0xf0]  ;;  %v6325_v46 = vor.u32 %v9405_v38, %v6324_v37  ;;  %v7052_v56 = vld [vmem:[%s15270_s5 + $0x3c0] sm:$0xf] }
  0x42   :  { %630 = vmatpush.bf16.msrb.mxu3 %v6501_v9  ;;  %v6473_v39 = vor.u32 %v9439_v33, %v6470_v36  ;;  %v9403_v42 = vld [vmem:[%s15268_s3 + $0xc] sm:$0xf]  ;;  %v6326_v43 = vld [vmem:[%s15268_s3 + $0x18] sm:$0xf0]  ;;  %v9590_v57 = vld [vmem:[%s15270_s5 + $0x3dc] sm:$0xf0] }
  0x43   :  { %618 = vmatpush.bf16.msrb.mxu2 %v6357_v17  ;;  %v9435_v44 = vld [vmem:[%s15268_s3 + $0x10c] sm:$0xf]  ;;  %v6454_v45 = vld [vmem:[%s15268_s3 + $0x118] sm:$0xf0]  ;;  %v6329_v48 = vor.u32 %v9403_v42, %v6326_v43  ;;  %v6796_v58 = vld [vmem:[%s15270_s5 + $0x1c0] sm:$0xf]  ;;  %v7053_v4 = vor.u32 %v9590_v57, %v7052_v56 }
  0x44   :  { %639 = vmatpush.bf16.msra.mxu0 %v6441_v34  ;;  %v6469_v34 = vor.u32 %v9441_v29, %v6468_v28  ;;  %v6457_v49 = vor.u32 %v9435_v44, %v6454_v45  ;;  %v9526_v60 = vld [vmem:[%s15270_s5 + $0x1dc] sm:$0xf0]  ;;  %s6241_s10 = sshll.u32 %s15274_s9, 4  ;;  %vm6232_vm0 = vcmask 130048   ;;  %s6242_s10 = int_to_ptr.hbm [resolvable:$true] %s6241_s10 }
  0x45   :  { %652 = vmatpush.bf16.msra.mxu1 %v6569_v35  ;;  %v6345_v35 = vor.u32 %v9407_v31, %v6342_v32  ;;  %v7564_v61 = vld [vmem:[%s15270_s5 + $0x7c0] sm:$0xf]  ;;  %v6797_v7 = vor.u32 %v9526_v60, %v6796_v58 }
  0x46   :  { %631 = vmatpush.bf16.msrb.mxu3 %v6485_v21  ;;  %v7308_v0 = vld [vmem:[%s15270_s5 + $0x5c0] sm:$0xf] }
  0x47   :  { %619 = vmatpush.bf16.msrb.mxu2 %v6341_v30  ;;  %v7020_v5 = vld [vmem:[%s15270_s5 + $0x380] sm:$0xf] }
  0x48   :  { %640 = vmatpush.bf16.msra.mxu0 %v6425_v40  ;;  %v6452_v40 = vld [vmem:[%s15268_s3 + $0x108] sm:$0xf]  ;;  %v9582_v6 = vld [vmem:[%s15270_s5 + $0x39c] sm:$0xf0] }
  0x49   :  { %653 = vmatpush.bf16.msra.mxu1 %v6553_v41  ;;  %v9437_v41 = vld [vmem:[%s15268_s3 + $0x114] sm:$0xf0]  ;;  %v6764_v9 = vld [vmem:[%s15270_s5 + $0x180] sm:$0xf]  ;;  %v7021_v19 = vor.u32 %v9582_v6, %v7020_v5 }
  0x4a   :  { %632 = vmatpush.bf16.msrb.mxu3 %v6469_v34  ;;  %v6453_v47 = vor.u32 %v9437_v41, %v6452_v40  ;;  %v7532_v12 = vld [vmem:[%s15270_s5 + $0x780] sm:$0xf] }
  0x4b   :  { %620 = vmatpush.bf16.msrb.mxu2 %v6325_v46  ;;  %v9710_v14 = vld [vmem:[%s15270_s5 + $0x79c] sm:$0xf0] }
  0x4c   :  { %641 = vmatpush.bf16.msra.mxu0 %v6409_v50  ;;  %v51_v50 = vld [vmem:[%s15267_s2] sm:$0x3]  ;;  %v7533_v25 = vor.u32 %v9710_v14, %v7532_v12 }
  0x4d   :  { %654 = vmatpush.bf16.msra.mxu1 %v6537_v53  ;;  %v53_v51 = vperm.slane %v51_v50, 0  ;;  %v54_v52 = vperm.slane %v51_v50, 1  ;;  %v7276_v15 = vld [vmem:[%s15270_s5 + $0x580] sm:$0xf] }
  0x4e   :  { %633 = vmatpush.bf16.msrb.mxu3 %v6453_v47  ;;  %v9646_v16 = vld [vmem:[%s15270_s5 + $0x59c] sm:$0xf0] }
  0x4f   :  { %v6988_v20 = vld [vmem:[%s15270_s5 + $0x340] sm:$0xf]  ;;  %v7277_v27 = vor.u32 %v9646_v16, %v7276_v15 }
  0x50   :  { %642 = vmatpush.bf16.msra.mxu0 %v6393_v62  ;;  %v9718_v62 = vld [vmem:[%s15270_s5 + $0x7dc] sm:$0xf0] }
  0x51   :  { %655 = vmatpush.bf16.msra.mxu1 %v6521_v1  ;;  %v9654_v1 = vld [vmem:[%s15270_s5 + $0x5dc] sm:$0xf0]  ;;  %v7565_v11 = vor.u32 %v9718_v62, %v7564_v61 }
  0x52   :  { %v9574_v21 = vld [vmem:[%s15270_s5 + $0x35c] sm:$0xf0] }
  0x53   :  { %v6732_v23 = vld [vmem:[%s15270_s5 + $0x140] sm:$0xf]  ;;  %v6989_v31 = vor.u32 %v9574_v21, %v6988_v20 }
  0x54   :  { %643 = vmatpush.bf16.msra.mxu0 %v6377_v10  ;;  %v9518_v10 = vld [vmem:[%s15270_s5 + $0x19c] sm:$0xf0] }
  0x55   :  { %656 = vmatpush.bf16.msra.mxu1 %v6505_v13  ;;  %v7309_v13 = vor.u32 %v9654_v1, %v7308_v0  ;;  %v9510_v24 = vld [vmem:[%s15270_s5 + $0x15c] sm:$0xf0] }
  0x56   :  { %v9702_v28 = vld [vmem:[%s15270_s5 + $0x75c] sm:$0xf0]  ;;  %v6733_v34 = vor.u32 %v9510_v24, %v6732_v23  ;;  %v7054_v24 = vld [vmem:[%s15270_s5 + $0x3e0] sm:$0xf0] }
  0x57   :  { %v7244_v29 = vld [vmem:[%s15270_s5 + $0x540] sm:$0xf] }
  0x58   :  { %644 = vmatpush.bf16.msra.mxu0 %v6361_v22  ;;  %v6765_v22 = vor.u32 %v9518_v10, %v6764_v9  ;;  %v9638_v30 = vld [vmem:[%s15270_s5 + $0x55c] sm:$0xf0] }
  0x59   :  { %657 = vmatpush.bf16.msra.mxu1 %v6489_v26  ;;  %v7500_v26 = vld [vmem:[%s15270_s5 + $0x740] sm:$0xf] }
  0x5a   :  { %v6956_v32 = vld [vmem:[%s15270_s5 + $0x300] sm:$0xf]  ;;  %v7501_v37 = vor.u32 %v9702_v28, %v7500_v26  ;;  %v6798_v26 = vld [vmem:[%s15270_s5 + $0x1e0] sm:$0xf0] }
  0x5b   :  { %v9566_v33 = vld [vmem:[%s15270_s5 + $0x31c] sm:$0xf0] }
  0x5c   :  { %645 = vmatpush.bf16.msra.mxu0 %v6345_v35  ;;  %v6700_v35 = vld [vmem:[%s15270_s5 + $0x100] sm:$0xf]  ;;  %v6957_v43 = vor.u32 %v9566_v33, %v6956_v32  ;;  %v7566_v32 = vld [vmem:[%s15270_s5 + $0x7e0] sm:$0xf0] }
  0x5d   :  { %658 = vmatpush.bf16.msra.mxu1 %v6473_v39  ;;  %v9502_v36 = vld [vmem:[%s15270_s5 + $0x11c] sm:$0xf0]  ;;  %v7245_v39 = vor.u32 %v9638_v30, %v7244_v29 }
  0x5e   :  { %v7468_v38 = vld [vmem:[%s15270_s5 + $0x700] sm:$0xf]  ;;  %v6701_v46 = vor.u32 %v9502_v36, %v6700_v35  ;;  %v7022_v36 = vld [vmem:[%s15270_s5 + $0x3a0] sm:$0xf0] }
  0x5f   :  { %v9694_v40 = vld [vmem:[%s15270_s5 + $0x71c] sm:$0xf0] }
  0x60   :  { %646 = vmatpush.bf16.msra.mxu0 %v6329_v48  ;;  %v7212_v41 = vld [vmem:[%s15270_s5 + $0x500] sm:$0xf] }
  0x61   :  { %659 = vmatpush.bf16.msra.mxu1 %v6457_v49  ;;  %v9630_v42 = vld [vmem:[%s15270_s5 + $0x51c] sm:$0xf0]  ;;  %v7469_v49 = vor.u32 %v9694_v40, %v7468_v38  ;;  %v6766_v38 = vld [vmem:[%s15270_s5 + $0x1a0] sm:$0xf0] }
  0x62   :  { %v6924_v44 = vld [vmem:[%s15270_s5 + $0x2c0] sm:$0xf] }
  0x63   :  { %v9558_v45 = vld [vmem:[%s15270_s5 + $0x2dc] sm:$0xf0] }
  0x64   :  { %v6668_v47 = vld [vmem:[%s15270_s5 + $0xc0] sm:$0xf] }
  0x65   :  { %v9494_v48 = vld [vmem:[%s15270_s5 + $0xdc] sm:$0xf0] }
  0x66   :  { %v7436_v50 = vld [vmem:[%s15270_s5 + $0x6c0] sm:$0xf]  ;;  %v6669_v58 = vor.u32 %v9494_v48, %v6668_v47  ;;  %v9562_v48 = vld [vmem:[%s15270_s5 + $0x304] sm:$0xf] }
  0x67   :  { %v6892_v56 = vld [vmem:[%s15270_s5 + $0x280] sm:$0xf] }
  0x68   :  { %v9550_v57 = vld [vmem:[%s15270_s5 + $0x29c] sm:$0xf0] }
  0x69   :  { %v9486_v60 = vld [vmem:[%s15270_s5 + $0x9c] sm:$0xf0] }
  0x6a   :  { %v7404_v62 = vld [vmem:[%s15270_s5 + $0x680] sm:$0xf] }
  0x6b   :  { %v9678_v0 = vld [vmem:[%s15270_s5 + $0x69c] sm:$0xf0] }
  0x6c   :  { %v7148_v1 = vld [vmem:[%s15270_s5 + $0x480] sm:$0xf]  ;;  %v7405_v9 = vor.u32 %v9678_v0, %v7404_v62  ;;  %v7534_v62 = vld [vmem:[%s15270_s5 + $0x7a0] sm:$0xf0] }
  0x6d   :  { %v9542_v5 = vld [vmem:[%s15270_s5 + $0x25c] sm:$0xf0] }
  0x6e   :  { %v7372_v10 = vld [vmem:[%s15270_s5 + $0x640] sm:$0xf] }
  0x6f   :  { %v9670_v12 = vld [vmem:[%s15270_s5 + $0x65c] sm:$0xf0] }
  0x70   :  { %v9606_v14 = vld [vmem:[%s15270_s5 + $0x45c] sm:$0xf0] }
  0x71   :  { %v6828_v16 = vld [vmem:[%s15270_s5 + $0x200] sm:$0xf] }
  0x72   :  { %v6572_v20 = vld [vmem:[%s15270_s5] sm:$0xf] }
  0x73   :  { %v9470_v21 = vld [vmem:[%s15270_s5 + $0x1c] sm:$0xf0] }
  0x74   :  { %v9662_v28 = vld [vmem:[%s15270_s5 + $0x61c] sm:$0xf0]  ;;  %v6573_v30 = vor.u32 %v9470_v21, %v6572_v20  ;;  %v9530_v21 = vld [vmem:[%s15270_s5 + $0x204] sm:$0xf] }
  0x75   :  { %v9598_v0 = vld [vmem:[%s15270_s5 + $0x41c] sm:$0xf0] }
  0xa0   :  { %v146_v53 = vpop.f32.mrf.mxu0 }
  0xa1   :  { %v147_v54 = vadd.f32 %v146_v53, %v53_v51  ;;  %v159_v55 = vpop.f32.mrf.mxu1  ;;  %v7213_v51 = vor.u32 %v9630_v42, %v7212_v41  ;;  %v7180_v53 = vld [vmem:[%s15270_s5 + $0x4c0] sm:$0xf]  ;;  %v9570_v42 = vld [vmem:[%s15270_s5 + $0x344] sm:$0xf] }
  0xa2   :  { %v160_v59 = vadd.f32 %v159_v55, %v54_v52  ;;  %v9686_v52 = vld [vmem:[%s15270_s5 + $0x6dc] sm:$0xf0]  ;;  %v6925_v55 = vor.u32 %v9558_v45, %v6924_v44  ;;  %v6990_v44 = vld [vmem:[%s15270_s5 + $0x360] sm:$0xf0] }
  0xa3   :  { %v163_v63 = vmax.f32 %v147_v54, 0.0  ;;  %v9622_v54 = vld [vmem:[%s15270_s5 + $0x4dc] sm:$0xf0]  ;;  %v7437_v61 = vor.u32 %v9686_v52, %v7436_v50  ;;  %v9506_v45 = vld [vmem:[%s15270_s5 + $0x144] sm:$0xf]  ;;  %v6993_v47 = vor.u32 %v9570_v42, %v6990_v44 }
  0xa4   :  { %v164_v2 = vmax.f32 %v160_v59, 0.0  ;;  %v6636_v59 = vld [vmem:[%s15270_s5 + $0x80] sm:$0xf]  ;;  %v6958_v50 = vld [vmem:[%s15270_s5 + $0x320] sm:$0xf0] }
  0xa5   :  { %v10775_v3 = vpack.c.bf16 %v163_v63, %v163_v63  ;;  %v7181_v63 = vor.u32 %v9622_v54, %v7180_v53  ;;  %v6637_v6 = vor.u32 %v9486_v60, %v6636_v59  ;;  %v6702_v52 = vld [vmem:[%s15270_s5 + $0x120] sm:$0xf0]  ;;  %v6961_v53 = vor.u32 %v9562_v48, %v6958_v50 }
  0xa6   :  { %v10783_v8 = vpack.c.bf16 %v164_v2, %v164_v2  ;;  %v9614_v2 = vld [vmem:[%s15270_s5 + $0x49c] sm:$0xf0]  ;;  %v6894_v59 = vld [vmem:[%s15270_s5 + $0x2a0] sm:$0xf0] }
  0xa7   :  { %569 = vmatmul.bf16.vlgmr.msra.gmra.mxu2 %v10775_v3  ;;  %595 = vmatmul.bf16.vlgmr.msrb.gmra.mxu0 %v10775_v3  ;;  %v9706_v60 = vld [vmem:[%s15270_s5 + $0x784] sm:$0xf] }
  0xa8   :  { %582 = vmatmul.bf16.vlgmr.msra.gmra.mxu3 %v10783_v8  ;;  %608 = vmatmul.bf16.vlgmr.msrb.gmra.mxu1 %v10783_v8  ;;  %v148_v17 = vpop.f32.mrf.mxu0  ;;  %v9674_v42 = vld [vmem:[%s15270_s5 + $0x684] sm:$0xf] }
  0xa9   :  { %v161_v18 = vpop.f32.mrf.mxu1  ;;  %2240 = vmatpush.bf16.msra.mxu3 %v7053_v4  ;;  %2227 = vmatpush.bf16.msra.mxu2 %v6797_v7  ;;  %v6893_v4 = vor.u32 %v9550_v57, %v6892_v56  ;;  %v6604_v7 = vld [vmem:[%s15270_s5 + $0x40] sm:$0xf]  ;;  %v6926_v56 = vld [vmem:[%s15270_s5 + $0x2e0] sm:$0xf0] }
  0xaa   :  { %2266 = vmatpush.bf16.msrb.mxu1 %v7565_v11  ;;  %2253 = vmatpush.bf16.msrb.mxu0 %v7309_v13  ;;  %v7149_v11 = vor.u32 %v9614_v2, %v7148_v1  ;;  %v7116_v13 = vld [vmem:[%s15270_s5 + $0x440] sm:$0xf]  ;;  %v7537_v1 = vor.u32 %v9706_v60, %v7534_v62  ;;  %v9666_v48 = vld [vmem:[%s15270_s5 + $0x644] sm:$0xf] }
  0xab   :  { %v9534_v17 = vld [vmem:[%s15270_s5 + $0x21c] sm:$0xf0]  ;;  %v7117_v23 = vor.u32 %v9606_v14, %v7116_v13  ;;  %v7502_v13 = vld [vmem:[%s15270_s5 + $0x760] sm:$0xf0] }
  0xac   :  { %v6829_v29 = vor.u32 %v9534_v17, %v6828_v16  ;;  %v6638_v16 = vld [vmem:[%s15270_s5 + $0xa0] sm:$0xf0]  ;;  %v11144_v60 = vld [vmem:[%s15269_s4] sm:$0xf] }
  0xad   :  { %2241 = vmatpush.bf16.msra.mxu3 %v7021_v19  ;;  %2228 = vmatpush.bf16.msra.mxu2 %v6765_v22  ;;  %v9586_v19 = vld [vmem:[%s15270_s5 + $0x3c4] sm:$0xf]  ;;  %v7373_v22 = vor.u32 %v9670_v12, %v7372_v10 }
  0xae   :  { %2267 = vmatpush.bf16.msrb.mxu1 %v7533_v25  ;;  %2254 = vmatpush.bf16.msrb.mxu0 %v7277_v27  ;;  %v9522_v25 = vld [vmem:[%s15270_s5 + $0x1c4] sm:$0xf]  ;;  %v7340_v27 = vld [vmem:[%s15270_s5 + $0x600] sm:$0xf]  ;;  %v7057_v33 = vor.u32 %v9586_v19, %v7054_v24 }
  0xaf   :  { %v6801_v35 = vor.u32 %v9522_v25, %v6798_v26  ;;  %v6862_v10 = vld [vmem:[%s15270_s5 + $0x260] sm:$0xf0] }
  0xb0   :  { %v9642_v17 = vld [vmem:[%s15270_s5 + $0x584] sm:$0xf] }
  0xb1   :  { %2242 = vmatpush.bf16.msra.mxu3 %v6989_v31  ;;  %2229 = vmatpush.bf16.msra.mxu2 %v6733_v34  ;;  %v9714_v31 = vld [vmem:[%s15270_s5 + $0x7c4] sm:$0xf] }
  0xb2   :  { %2268 = vmatpush.bf16.msrb.mxu1 %v7501_v37  ;;  %2255 = vmatpush.bf16.msrb.mxu0 %v7245_v39  ;;  %v9578_v34 = vld [vmem:[%s15270_s5 + $0x384] sm:$0xf]  ;;  %v7341_v39 = vor.u32 %v9662_v28, %v7340_v27  ;;  %v7569_v40 = vor.u32 %v9714_v31, %v7566_v32 }
  0xb3   :  { %v9514_v37 = vld [vmem:[%s15270_s5 + $0x184] sm:$0xf]  ;;  %v7025_v41 = vor.u32 %v9578_v34, %v7022_v36 }
  0xb4   :  { %v7278_v19 = vld [vmem:[%s15270_s5 + $0x5a0] sm:$0xf0] }
  0xb5   :  { %2243 = vmatpush.bf16.msra.mxu3 %v6957_v43  ;;  %2230 = vmatpush.bf16.msra.mxu2 %v6701_v46  ;;  %v6769_v43 = vor.u32 %v9514_v37, %v6766_v38  ;;  %v6734_v46 = vld [vmem:[%s15270_s5 + $0x160] sm:$0xf0]  ;;  %v7281_v20 = vor.u32 %v9642_v17, %v7278_v19  ;;  %v6804_v19 = vld [vmem:[%s15270_s5 + $0x1c8] sm:$0xf] }
  0xb6   :  { %2269 = vmatpush.bf16.msrb.mxu1 %v7469_v49  ;;  %2256 = vmatpush.bf16.msrb.mxu0 %v7213_v51  ;;  %v6737_v49 = vor.u32 %v9506_v45, %v6734_v46  ;;  %v9498_v51 = vld [vmem:[%s15270_s5 + $0x104] sm:$0xf] }
  0xb7   :  { %621 = vmatmul.bf16.vlgmr.msrb.gmra.mxu2 %v10775_v3  ;;  %647 = vmatmul.bf16.vlgmr.msra.gmra.mxu0 %v10775_v3  ;;  %v6860_v3 = vld [vmem:[%s15270_s5 + $0x240] sm:$0xf]  ;;  %v6705_v54 = vor.u32 %v9498_v51, %v6702_v52  ;;  %v9690_v24 = vld [vmem:[%s15270_s5 + $0x704] sm:$0xf] }
  0xb8   :  { %634 = vmatmul.bf16.vlgmr.msrb.gmra.mxu3 %v10783_v8  ;;  %660 = vmatmul.bf16.vlgmr.msra.gmra.mxu1 %v10783_v8  ;;  %v9478_v8 = vld [vmem:[%s15270_s5 + $0x5c] sm:$0xf0]  ;;  %v6861_v15 = vor.u32 %v9542_v5, %v6860_v3  ;;  %v6670_v3 = vld [vmem:[%s15270_s5 + $0xe0] sm:$0xf0] }
  0xb9   :  { %2244 = vmatpush.bf16.msra.mxu3 %v6925_v55  ;;  %2231 = vmatpush.bf16.msra.mxu2 %v6669_v58  ;;  %v6605_v18 = vor.u32 %v9478_v8, %v6604_v7  ;;  %v9554_v55 = vld [vmem:[%s15270_s5 + $0x2c4] sm:$0xf] }
  0xba   :  { %2270 = vmatpush.bf16.msrb.mxu1 %v7437_v61  ;;  %2257 = vmatpush.bf16.msrb.mxu0 %v7181_v63  ;;  %v6929_v57 = vor.u32 %v9554_v55, %v6926_v56  ;;  %v9546_v58 = vld [vmem:[%s15270_s5 + $0x284] sm:$0xf]  ;;  %v7084_v63 = vld [vmem:[%s15270_s5 + $0x400] sm:$0xf] }
  0xbb   :  { %v6897_v61 = vor.u32 %v9546_v58, %v6894_v59  ;;  %v7085_v2 = vor.u32 %v9598_v0, %v7084_v63  ;;  %v9650_v5 = vld [vmem:[%s15270_s5 + $0x5c4] sm:$0xf]  ;;  %v234_v63 = vperm.slane %v11144_v60, 1 }
  0xbc   :  { %v7310_v7 = vld [vmem:[%s15270_s5 + $0x5e0] sm:$0xf0] }
  0xbd   :  { %2245 = vmatpush.bf16.msra.mxu3 %v6893_v4  ;;  %2232 = vmatpush.bf16.msra.mxu2 %v6637_v6  ;;  %v9490_v4 = vld [vmem:[%s15270_s5 + $0xc4] sm:$0xf]  ;;  %v7313_v8 = vor.u32 %v9650_v5, %v7310_v7  ;;  %v233_v5 = vperm.slane %v11144_v60, 0  ;;  %v9591_v7 = vld [vmem:[%s15270_s5 + $0x3e4] sm:$0xf0] }
  0xbe   :  { %2271 = vmatpush.bf16.msrb.mxu1 %v7405_v9  ;;  %2258 = vmatpush.bf16.msrb.mxu0 %v7149_v11  ;;  %v6673_v6 = vor.u32 %v9490_v4, %v6670_v3  ;;  %v9538_v9 = vld [vmem:[%s15270_s5 + $0x244] sm:$0xf] }
  0xbf   :  { %v9698_v11 = vld [vmem:[%s15270_s5 + $0x744] sm:$0xf]  ;;  %v6865_v12 = vor.u32 %v9538_v9, %v6862_v10 }
  0xc0   :  { %v7505_v14 = vor.u32 %v9698_v11, %v7502_v13  ;;  %v7470_v25 = vld [vmem:[%s15270_s5 + $0x720] sm:$0xf0] }
  0xc1   :  { %2246 = vmatpush.bf16.msra.mxu3 %v6861_v15  ;;  %2233 = vmatpush.bf16.msra.mxu2 %v6605_v18  ;;  %v9482_v15 = vld [vmem:[%s15270_s5 + $0x84] sm:$0xf]  ;;  %v7473_v26 = vor.u32 %v9690_v24, %v7470_v25  ;;  %v9575_v24 = vld [vmem:[%s15270_s5 + $0x364] sm:$0xf0] }
  0xc2   :  { %2272 = vmatpush.bf16.msrb.mxu1 %v7373_v22  ;;  %2259 = vmatpush.bf16.msrb.mxu0 %v7117_v23  ;;  %v6641_v18 = vor.u32 %v9482_v15, %v6638_v16  ;;  %v6830_v22 = vld [vmem:[%s15270_s5 + $0x220] sm:$0xf0]  ;;  %v9583_v15 = vld [vmem:[%s15270_s5 + $0x3a4] sm:$0xf0] }
  0xc3   :  { %v6833_v23 = vor.u32 %v9530_v21, %v6830_v22  ;;  %v9474_v27 = vld [vmem:[%s15270_s5 + $0x44] sm:$0xf] }
  0xc4   :  { %v6606_v28 = vld [vmem:[%s15270_s5 + $0x60] sm:$0xf0] }
  0xc5   :  { %2247 = vmatpush.bf16.msra.mxu3 %v6829_v29  ;;  %2234 = vmatpush.bf16.msra.mxu2 %v6573_v30  ;;  %v6609_v29 = vor.u32 %v9474_v27, %v6606_v28  ;;  %v9634_v30 = vld [vmem:[%s15270_s5 + $0x544] sm:$0xf]  ;;  %v236_v27 = vperm.slane %v11144_v60, 3  ;;  %v6772_v28 = vld [vmem:[%s15270_s5 + $0x188] sm:$0xf] }
  0xc6   :  { %2273 = vmatpush.bf16.msrb.mxu1 %v7341_v39  ;;  %2260 = vmatpush.bf16.msrb.mxu0 %v7085_v2  ;;  %v7246_v31 = vld [vmem:[%s15270_s5 + $0x560] sm:$0xf0] }
  0xc7   :  { %v7249_v32 = vor.u32 %v9634_v30, %v7246_v31  ;;  %v7438_v34 = vld [vmem:[%s15270_s5 + $0x6e0] sm:$0xf0] }
  0xc8   :  { %v9466_v36 = vld [vmem:[%s15270_s5 + $0x4] sm:$0xf] }
  0xc9   :  { %2292 = vmatpush.bf16.msrb.mxu3 %v7057_v33  ;;  %2279 = vmatpush.bf16.msrb.mxu2 %v6801_v35  ;;  %v9682_v33 = vld [vmem:[%s15270_s5 + $0x6c4] sm:$0xf] }
  0xca   :  { %2318 = vmatpush.bf16.msra.mxu1 %v7569_v40  ;;  %2305 = vmatpush.bf16.msra.mxu0 %v7313_v8  ;;  %v7441_v35 = vor.u32 %v9682_v33, %v7438_v34  ;;  %v6574_v37 = vld [vmem:[%s15270_s5 + $0x20] sm:$0xf0]  ;;  %v6964_v33 = vld [vmem:[%s15270_s5 + $0x308] sm:$0xf] }
  0xcb   :  { %v9626_v38 = vld [vmem:[%s15270_s5 + $0x504] sm:$0xf]  ;;  %v6577_v39 = vor.u32 %v9466_v36, %v6574_v37  ;;  %v9567_v34 = vld [vmem:[%s15270_s5 + $0x324] sm:$0xf0] }
  0xcc   :  { %v7214_v40 = vld [vmem:[%s15270_s5 + $0x520] sm:$0xf0] }
  0xcd   :  { %2293 = vmatpush.bf16.msrb.mxu3 %v7025_v41  ;;  %2280 = vmatpush.bf16.msrb.mxu2 %v6769_v43  ;;  %v7217_v41 = vor.u32 %v9626_v38, %v7214_v40  ;;  %v7406_v43 = vld [vmem:[%s15270_s5 + $0x6a0] sm:$0xf0]  ;;  %v9511_v40 = vld [vmem:[%s15270_s5 + $0x164] sm:$0xf0] }
  0xce   :  { %2319 = vmatpush.bf16.msra.mxu1 %v7537_v1  ;;  %2306 = vmatpush.bf16.msra.mxu0 %v7281_v20  ;;  %v7409_v44 = vor.u32 %v9674_v42, %v7406_v43  ;;  %v9618_v45 = vld [vmem:[%s15270_s5 + $0x4c4] sm:$0xf]  ;;  %v9527_v20 = vld [vmem:[%s15270_s5 + $0x1e4] sm:$0xf0]  ;;  %v235_v42 = vperm.slane %v11144_v60, 2 }
  0xcf   :  { %v7182_v46 = vld [vmem:[%s15270_s5 + $0x4e0] sm:$0xf0]  ;;  %v6805_v25 = vor.u32 %v9527_v20, %v6804_v19  ;;  %v6932_v43 = vld [vmem:[%s15270_s5 + $0x2c8] sm:$0xf] }
  0xd0   :  { %v9610_v51 = vld [vmem:[%s15270_s5 + $0x484] sm:$0xf]  ;;  %v7540_v60 = vld [vmem:[%s15270_s5 + $0x788] sm:$0xf] }
  0xd1   :  { %2294 = vmatpush.bf16.msrb.mxu3 %v6993_v47  ;;  %2281 = vmatpush.bf16.msrb.mxu2 %v6737_v49  ;;  %v7185_v47 = vor.u32 %v9618_v45, %v7182_v46  ;;  %v7374_v49 = vld [vmem:[%s15270_s5 + $0x660] sm:$0xf0]  ;;  %v9559_v45 = vld [vmem:[%s15270_s5 + $0x2e4] sm:$0xf0] }
  0xd2   :  { %2320 = vmatpush.bf16.msra.mxu1 %v7505_v14  ;;  %2307 = vmatpush.bf16.msra.mxu0 %v7249_v32  ;;  %v7377_v50 = vor.u32 %v9666_v48, %v7374_v49  ;;  %v7150_v52 = vld [vmem:[%s15270_s5 + $0x4a0] sm:$0xf0]  ;;  %v7028_v14 = vld [vmem:[%s15270_s5 + $0x388] sm:$0xf] }
  0xd3   :  { %v7342_v55 = vld [vmem:[%s15270_s5 + $0x620] sm:$0xf0]  ;;  %v7029_v21 = vor.u32 %v9583_v15, %v7028_v14  ;;  %v7572_v46 = vld [vmem:[%s15270_s5 + $0x7c8] sm:$0xf] }
  0xd4   :  { %v7118_v58 = vld [vmem:[%s15270_s5 + $0x460] sm:$0xf0]  ;;  %v7284_v19 = vld [vmem:[%s15270_s5 + $0x588] sm:$0xf] }
  0xd5   :  { %2295 = vmatpush.bf16.msrb.mxu3 %v6961_v53  ;;  %2282 = vmatpush.bf16.msrb.mxu2 %v6705_v54  ;;  %v7153_v53 = vor.u32 %v9610_v51, %v7150_v52  ;;  %v9658_v54 = vld [vmem:[%s15270_s5 + $0x604] sm:$0xf]  ;;  %v9503_v51 = vld [vmem:[%s15270_s5 + $0x124] sm:$0xf0] }
  0xd6   :  { %2321 = vmatpush.bf16.msra.mxu1 %v7473_v26  ;;  %2308 = vmatpush.bf16.msra.mxu0 %v7217_v41  ;;  %v7345_v56 = vor.u32 %v9658_v54, %v7342_v55  ;;  %v7086_v62 = vld [vmem:[%s15270_s5 + $0x420] sm:$0xf0]  ;;  %v6965_v41 = vor.u32 %v9567_v34, %v6964_v33  ;;  %v6900_v55 = vld [vmem:[%s15270_s5 + $0x288] sm:$0xf]  ;;  %v7062_v33 = vld [vmem:[%s15270_s5 + $0x3e8] sm:$0xf0] }
  0xd7   :  { %v9647_v20 = vld [vmem:[%s15270_s5 + $0x5a4] sm:$0xf0] }
  0xd8   :  { %v6612_v34 = vld [vmem:[%s15270_s5 + $0x48] sm:$0xf] }
  0xd9   :  { %2296 = vmatpush.bf16.msrb.mxu3 %v6929_v57  ;;  %2283 = vmatpush.bf16.msrb.mxu2 %v6673_v6  ;;  %v9602_v57 = vld [vmem:[%s15270_s5 + $0x444] sm:$0xf]  ;;  %v7060_v6 = vld [vmem:[%s15270_s5 + $0x3c8] sm:$0xf] }
  0xda   :  { %2322 = vmatpush.bf16.msra.mxu1 %v7441_v35  ;;  %2309 = vmatpush.bf16.msra.mxu0 %v7185_v47  ;;  %v7121_v59 = vor.u32 %v9602_v57, %v7118_v58  ;;  %v7061_v10 = vor.u32 %v9591_v7, %v7060_v6  ;;  %v9719_v47 = vld [vmem:[%s15270_s5 + $0x7e4] sm:$0xf0] }
  0xdb   :  { %v7573_v54 = vor.u32 %v9719_v47, %v7572_v46  ;;  %v7030_v46 = vld [vmem:[%s15270_s5 + $0x3a8] sm:$0xf0]  ;;  %v6580_v47 = vld [vmem:[%s15270_s5 + $0x8] sm:$0xf] }
  0xdd   :  { %2297 = vmatpush.bf16.msrb.mxu3 %v6897_v61  ;;  %2284 = vmatpush.bf16.msrb.mxu2 %v6641_v18  ;;  %v9594_v61 = vld [vmem:[%s15270_s5 + $0x404] sm:$0xf] }
  0xde   :  { %2323 = vmatpush.bf16.msra.mxu1 %v7409_v44  ;;  %2310 = vmatpush.bf16.msra.mxu0 %v7153_v53  ;;  %v7089_v0 = vor.u32 %v9594_v61, %v7086_v62  ;;  %v6933_v53 = vor.u32 %v9559_v45, %v6932_v43  ;;  %v9711_v61 = vld [vmem:[%s15270_s5 + $0x7a4] sm:$0xf0]  ;;  %v9579_v45 = vld [vmem:[%s15270_s5 + $0x38c] sm:$0xf] }
  0xdf   :  { %v7541_v7 = vor.u32 %v9711_v61, %v7540_v60  ;;  %v9571_v60 = vld [vmem:[%s15270_s5 + $0x34c] sm:$0xf] }
  0xe0   :  { %v6998_v61 = vld [vmem:[%s15270_s5 + $0x368] sm:$0xf0] }
  0xe1   :  { %2298 = vmatpush.bf16.msrb.mxu3 %v6865_v12  ;;  %2285 = vmatpush.bf16.msrb.mxu2 %v6609_v29  ;;  %v9519_v29 = vld [vmem:[%s15270_s5 + $0x1a4] sm:$0xf0] }
  0xe2   :  { %2324 = vmatpush.bf16.msra.mxu1 %v7377_v50  ;;  %2311 = vmatpush.bf16.msra.mxu0 %v7121_v59  ;;  %v6773_v36 = vor.u32 %v9519_v29, %v6772_v28  ;;  %v6708_v50 = vld [vmem:[%s15270_s5 + $0x108] sm:$0xf] }
  0xe3   :  { %v9551_v59 = vld [vmem:[%s15270_s5 + $0x2a4] sm:$0xf0] }
  0xe4   :  { %v6901_v6 = vor.u32 %v9551_v59, %v6900_v55  ;;  %v7476_v28 = vld [vmem:[%s15270_s5 + $0x708] sm:$0xf] }
  0xe5   :  { %2299 = vmatpush.bf16.msrb.mxu3 %v6833_v23  ;;  %2286 = vmatpush.bf16.msrb.mxu2 %v6577_v39  ;;  %v6996_v23 = vld [vmem:[%s15270_s5 + $0x348] sm:$0xf] }
  0xe6   :  { %2325 = vmatpush.bf16.msra.mxu1 %v7345_v56  ;;  %2312 = vmatpush.bf16.msra.mxu0 %v7089_v0  ;;  %v6997_v31 = vor.u32 %v9575_v24, %v6996_v23  ;;  %v6740_v39 = vld [vmem:[%s15270_s5 + $0x148] sm:$0xf] }
  0xe7   :  { %v6741_v48 = vor.u32 %v9511_v40, %v6740_v39  ;;  %v6676_v0 = vld [vmem:[%s15270_s5 + $0xc8] sm:$0xf] }
  0xe8   :  { %v6836_v24 = vld [vmem:[%s15270_s5 + $0x208] sm:$0xf] }
  0xe9   :  { %v9695_v29 = vld [vmem:[%s15270_s5 + $0x724] sm:$0xf0] }
  0xea   :  { %v7477_v39 = vor.u32 %v9695_v29, %v7476_v28  ;;  %v7412_v55 = vld [vmem:[%s15270_s5 + $0x688] sm:$0xf] }
  0xeb   :  { %v7124_v28 = vld [vmem:[%s15270_s5 + $0x448] sm:$0xf] }
  0xec   :  { %v9607_v29 = vld [vmem:[%s15270_s5 + $0x464] sm:$0xf0] }
 0x124   :  { %v596_v1 = vpop.f32.mrf.mxu0 }
 0x125   :  { %v597_v2 = vadd.f32 %v596_v1, %v234_v63  ;;  %v609_v4 = vpop.f32.mrf.mxu1  ;;  %v6709_v63 = vor.u32 %v9503_v51, %v6708_v50  ;;  %v9631_v50 = vld [vmem:[%s15270_s5 + $0x524] sm:$0xf0] }
 0x127   :  { %v610_v3 = vadd.f32 %v609_v4, %v597_v2  ;;  %v9495_v4 = vld [vmem:[%s15270_s5 + $0xe4] sm:$0xf0] }
 0x128   :  { %v6677_v14 = vor.u32 %v9495_v4, %v6676_v0  ;;  %v9623_v0 = vld [vmem:[%s15270_s5 + $0x4e4] sm:$0xf0]  ;;  %v6774_v4 = vld [vmem:[%s15270_s5 + $0x1a8] sm:$0xf0] }
 0x129   :  { %v666_v8 = vmax.f32 %v610_v3, 0.0  ;;  %v7316_v3 = vld [vmem:[%s15270_s5 + $0x5c8] sm:$0xf] }
 0x12a   :  { %v570_v9 = vpop.f32.mrf.mxu2 }
 0x12b   :  { %v11160_v11 = vpack.c.bf16 %v666_v8, %v666_v8  ;;  %v571_v12 = vadd.f32 %v570_v9, %v233_v5  ;;  %v583_v13 = vpop.f32.mrf.mxu3  ;;  %v9655_v5 = vld [vmem:[%s15270_s5 + $0x5e4] sm:$0xf0] }
 0x12c   :  { %v598_v16 = vpop.f32.mrf.mxu0  ;;  %v6868_v8 = vld [vmem:[%s15270_s5 + $0x248] sm:$0xf]  ;;  %v7317_v15 = vor.u32 %v9655_v5, %v7316_v3  ;;  %v7001_v3 = vor.u32 %v9571_v60, %v6998_v61  ;;  %v7286_v60 = vld [vmem:[%s15270_s5 + $0x5a8] sm:$0xf0] }
 0x12d   :  { %v584_v17 = vadd.f32 %v583_v13, %v571_v12  ;;  %v611_v18 = vpop.f32.mrf.mxu1  ;;  %2248 = vmatmul.bf16.vlgmr.msra.gmra.mxu3 %v11160_v11  ;;  %v9543_v9 = vld [vmem:[%s15270_s5 + $0x264] sm:$0xf0] }
 0x12e   :  { %2344 = vmatpush.bf16.msra.mxu3 %v7061_v10  ;;  %v7508_v12 = vld [vmem:[%s15270_s5 + $0x748] sm:$0xf] }
 0x12f   :  { %v665_v22 = vmax.f32 %v584_v17, 0.0  ;;  %v9703_v13 = vld [vmem:[%s15270_s5 + $0x764] sm:$0xf0] }
 0x130   :  { %v6644_v16 = vld [vmem:[%s15270_s5 + $0x88] sm:$0xf]  ;;  %v7509_v23 = vor.u32 %v9703_v13, %v7508_v12 }
 0x131   :  { %v11181_v26 = vpack.c.bf16 %v665_v22, %v665_v22  ;;  %v9487_v18 = vld [vmem:[%s15270_s5 + $0xa4] sm:$0xf0]  ;;  %v6869_v22 = vor.u32 %v9543_v9, %v6868_v8  ;;  %v9563_v8 = vld [vmem:[%s15270_s5 + $0x30c] sm:$0xf] }
 0x132   :  { %2345 = vmatpush.bf16.msra.mxu3 %v7029_v21  ;;  %v572_v30 = vpop.f32.mrf.mxu2  ;;  %v7380_v5 = vld [vmem:[%s15270_s5 + $0x648] sm:$0xf]  ;;  %v6966_v9 = vld [vmem:[%s15270_s5 + $0x328] sm:$0xf0] }
 0x133   :  { %v585_v32 = vpop.f32.mrf.mxu3  ;;  %2235 = vmatmul.bf16.vlgmr.msra.gmra.mxu2 %v11181_v26  ;;  %v6645_v30 = vor.u32 %v9487_v18, %v6644_v16  ;;  %v7156_v12 = vld [vmem:[%s15270_s5 + $0x488] sm:$0xf]  ;;  %v6742_v16 = vld [vmem:[%s15270_s5 + $0x168] sm:$0xf0]  ;;  %v6969_v18 = vor.u32 %v9563_v8, %v6966_v9 }
 0x134   :  { %2331 = vmatpush.bf16.msra.mxu2 %v6805_v25  ;;  %v648_v35 = vpop.f32.mrf.mxu0  ;;  %v9587_v32 = vld [vmem:[%s15270_s5 + $0x3cc] sm:$0xf]  ;;  %v9615_v13 = vld [vmem:[%s15270_s5 + $0x4a4] sm:$0xf0] }
 0x135   :  { %v649_v37 = vadd.f32 %v648_v35, %v236_v27  ;;  %v661_v38 = vpop.f32.mrf.mxu1  ;;  %v9535_v27 = vld [vmem:[%s15270_s5 + $0x224] sm:$0xf0]  ;;  %v7065_v40 = vor.u32 %v9587_v32, %v7062_v33  ;;  %v6710_v32 = vld [vmem:[%s15270_s5 + $0x128] sm:$0xf0] }
 0x136   :  { %2346 = vmatpush.bf16.msra.mxu3 %v6997_v31  ;;  %v7285_v31 = vor.u32 %v9647_v20, %v7284_v19  ;;  %v9479_v35 = vld [vmem:[%s15270_s5 + $0x64] sm:$0xf0]  ;;  %v6614_v8 = vld [vmem:[%s15270_s5 + $0x68] sm:$0xf0] }
 0x137   :  { %v662_v44 = vadd.f32 %v661_v38, %v649_v37  ;;  %v9639_v37 = vld [vmem:[%s15270_s5 + $0x564] sm:$0xf0]  ;;  %v6837_v38 = vor.u32 %v9535_v27, %v6836_v24  ;;  %v6613_v43 = vor.u32 %v9479_v35, %v6612_v34  ;;  %v9715_v24 = vld [vmem:[%s15270_s5 + $0x7cc] sm:$0xf] }
 0x138   :  { %2332 = vmatpush.bf16.msra.mxu2 %v6773_v36  ;;  %v7252_v36 = vld [vmem:[%s15270_s5 + $0x548] sm:$0xf]  ;;  %v9547_v35 = vld [vmem:[%s15270_s5 + $0x28c] sm:$0xf] }
 0x139   :  { %v668_v49 = vmax.f32 %v662_v44, 0.0  ;;  %v7253_v44 = vor.u32 %v9639_v37, %v7252_v36  ;;  %v7348_v19 = vld [vmem:[%s15270_s5 + $0x608] sm:$0xf]  ;;  %v7125_v36 = vor.u32 %v9607_v29, %v7124_v28  ;;  %v6902_v37 = vld [vmem:[%s15270_s5 + $0x2a8] sm:$0xf0] }
 0x13a   :  { %2347 = vmatpush.bf16.msra.mxu3 %v6965_v41  ;;  %v622_v52 = vpop.f32.mrf.mxu2  ;;  %v7444_v41 = vld [vmem:[%s15270_s5 + $0x6c8] sm:$0xf]  ;;  %v9635_v9 = vld [vmem:[%s15270_s5 + $0x54c] sm:$0xf]  ;;  %v6812_v28 = vld [vmem:[%s15270_s5 + $0x1d0] sm:$0xf] }
 0x13b   :  { %v11225_v56 = vpack.c.bf16 %v668_v49, %v668_v49  ;;  %v623_v57 = vadd.f32 %v622_v52, %v235_v42  ;;  %v635_v58 = vpop.f32.mrf.mxu3  ;;  %v9687_v42 = vld [vmem:[%s15270_s5 + $0x6e4] sm:$0xf0]  ;;  %v9523_v52 = vld [vmem:[%s15270_s5 + $0x1cc] sm:$0xf]  ;;  %v9528_v29 = vld [vmem:[%s15270_s5 + $0x1ec] sm:$0xf0] }
 0x13c   :  { %2333 = vmatpush.bf16.msra.mxu2 %v6741_v48  ;;  %v650_v62 = vpop.f32.mrf.mxu0  ;;  %v9471_v48 = vld [vmem:[%s15270_s5 + $0x24] sm:$0xf0]  ;;  %v7445_v51 = vor.u32 %v9687_v42, %v7444_v41 }
 0x13d   :  { %v636_v1 = vadd.f32 %v635_v58, %v623_v57  ;;  %v663_v2 = vpop.f32.mrf.mxu1  ;;  %2274 = vmatmul.bf16.vlgmr.msrb.gmra.mxu1 %v11225_v56  ;;  %2300 = vmatmul.bf16.vlgmr.msrb.gmra.mxu3 %v11160_v11  ;;  %v7220_v49 = vld [vmem:[%s15270_s5 + $0x508] sm:$0xf]  ;;  %v6581_v58 = vor.u32 %v9471_v48, %v6580_v47  ;;  %v6905_v47 = vor.u32 %v9547_v35, %v6902_v37  ;;  %v7004_v35 = vld [vmem:[%s15270_s5 + $0x350] sm:$0xf] }
 0x13e   :  { %2348 = vmatpush.bf16.msra.mxu3 %v6933_v53  ;;  %2370 = vmatpush.bf16.msrb.mxu1 %v7573_v54  ;;  %v6806_v53 = vld [vmem:[%s15270_s5 + $0x1e8] sm:$0xf0]  ;;  %v7033_v54 = vor.u32 %v9579_v45, %v7030_v46  ;;  %v9679_v57 = vld [vmem:[%s15270_s5 + $0x6a4] sm:$0xf0]  ;;  %v7221_v59 = vor.u32 %v9631_v50, %v7220_v49  ;;  %v6813_v37 = vor.u32 %v9528_v29, %v6812_v28 }
 0x13f   :  { %v667_v10 = vmax.f32 %v636_v1, 0.0  ;;  %v6809_v62 = vor.u32 %v9523_v52, %v6806_v53  ;;  %v7413_v1 = vor.u32 %v9679_v57, %v7412_v55  ;;  %v9515_v2 = vld [vmem:[%s15270_s5 + $0x18c] sm:$0xf]  ;;  %v9663_v20 = vld [vmem:[%s15270_s5 + $0x624] sm:$0xf0] }
 0x140   :  { %2334 = vmatpush.bf16.msra.mxu2 %v6709_v63  ;;  %v7188_v63 = vld [vmem:[%s15270_s5 + $0x4c8] sm:$0xf]  ;;  %v9651_v45 = vld [vmem:[%s15270_s5 + $0x5cc] sm:$0xf] }
 0x141   :  { %v11265_v17 = vpack.c.bf16 %v667_v10, %v667_v10  ;;  %v6777_v10 = vor.u32 %v9515_v2, %v6774_v4  ;;  %v7092_v41 = vld [vmem:[%s15270_s5 + $0x408] sm:$0xf]  ;;  %v7318_v46 = vld [vmem:[%s15270_s5 + $0x5e8] sm:$0xf0] }
 0x142   :  { %2349 = vmatpush.bf16.msra.mxu3 %v6901_v6  ;;  %2371 = vmatpush.bf16.msrb.mxu1 %v7541_v7  ;;  %v624_v21 = vpop.f32.mrf.mxu2  ;;  %v9671_v6 = vld [vmem:[%s15270_s5 + $0x664] sm:$0xf0]  ;;  %v7189_v7 = vor.u32 %v9623_v0, %v7188_v63  ;;  %v9539_v49 = vld [vmem:[%s15270_s5 + $0x24c] sm:$0xf]  ;;  %v7321_v55 = vor.u32 %v9651_v45, %v7318_v46 }
 0x143   :  { %v637_v25 = vpop.f32.mrf.mxu3  ;;  %2261 = vmatmul.bf16.vlgmr.msrb.gmra.mxu0 %v11265_v17  ;;  %2287 = vmatmul.bf16.vlgmr.msrb.gmra.mxu2 %v11181_v26  ;;  %v9555_v21 = vld [vmem:[%s15270_s5 + $0x2cc] sm:$0xf]  ;;  %v9599_v42 = vld [vmem:[%s15270_s5 + $0x424] sm:$0xf0] }
 0x144   :  { %2335 = vmatpush.bf16.msra.mxu2 %v6677_v14  ;;  %2357 = vmatpush.bf16.msrb.mxu0 %v7317_v15  ;;  %v7381_v14 = vor.u32 %v9671_v6, %v7380_v5  ;;  %v9507_v15 = vld [vmem:[%s15270_s5 + $0x14c] sm:$0xf]  ;;  %v7093_v50 = vor.u32 %v9599_v42, %v7092_v41  ;;  %v7068_v5 = vld [vmem:[%s15270_s5 + $0x3d0] sm:$0xf] }
 0x145   :  { %v7574_v25 = vld [vmem:[%s15270_s5 + $0x7e8] sm:$0xf0]  ;;  %v6745_v27 = vor.u32 %v9507_v15, %v6742_v16  ;;  %v9592_v6 = vld [vmem:[%s15270_s5 + $0x3ec] sm:$0xf0] }
 0x146   :  { %2350 = vmatpush.bf16.msra.mxu3 %v6869_v22  ;;  %2372 = vmatpush.bf16.msrb.mxu1 %v7509_v23  ;;  %v7157_v22 = vor.u32 %v9615_v13, %v7156_v12  ;;  %v6934_v23 = vld [vmem:[%s15270_s5 + $0x2e8] sm:$0xf0]  ;;  %v7577_v34 = vor.u32 %v9715_v24, %v7574_v25  ;;  %v6780_v41 = vld [vmem:[%s15270_s5 + $0x190] sm:$0xf] }
 0x147   :  { %v6937_v33 = vor.u32 %v9555_v21, %v6934_v23  ;;  %v9699_v52 = vld [vmem:[%s15270_s5 + $0x74c] sm:$0xf]  ;;  %v9584_v21 = vld [vmem:[%s15270_s5 + $0x3ac] sm:$0xf0] }
 0x148   :  { %2336 = vmatpush.bf16.msra.mxu2 %v6645_v30  ;;  %2358 = vmatpush.bf16.msrb.mxu0 %v7285_v31  ;;  %v7349_v30 = vor.u32 %v9663_v20, %v7348_v19  ;;  %v9499_v31 = vld [vmem:[%s15270_s5 + $0x10c] sm:$0xf]  ;;  %v7036_v20 = vld [vmem:[%s15270_s5 + $0x390] sm:$0xf] }
 0x149   :  { %v7510_v53 = vld [vmem:[%s15270_s5 + $0x768] sm:$0xf0]  ;;  %v9520_v42 = vld [vmem:[%s15270_s5 + $0x1ac] sm:$0xf0] }
 0x14a   :  { %2351 = vmatpush.bf16.msra.mxu3 %v6837_v38  ;;  %2373 = vmatpush.bf16.msrb.mxu1 %v7477_v39  ;;  %v9707_v38 = vld [vmem:[%s15270_s5 + $0x78c] sm:$0xf] }
 0x14b   :  { %v7542_v39 = vld [vmem:[%s15270_s5 + $0x7a8] sm:$0xf0] }
 0x14c   :  { %2337 = vmatpush.bf16.msra.mxu2 %v6613_v43  ;;  %2359 = vmatpush.bf16.msrb.mxu0 %v7253_v44  ;;  %v9491_v43 = vld [vmem:[%s15270_s5 + $0xcc] sm:$0xf]  ;;  %v7545_v48 = vor.u32 %v9707_v38, %v7542_v39 }
 0x14d   :  { %2326 = vmatmul.bf16.vlgmr.msra.gmra.mxu1 %v11225_v56  ;;  %2352 = vmatmul.bf16.vlgmr.msra.gmra.mxu3 %v11160_v11  ;;  %v6678_v44 = vld [vmem:[%s15270_s5 + $0xe8] sm:$0xf0] }
 0x14e   :  { %2396 = vmatpush.bf16.msrb.mxu3 %v7065_v40  ;;  %2374 = vmatpush.bf16.msrb.mxu1 %v7445_v51  ;;  %v6713_v40 = vor.u32 %v9499_v31, %v6710_v32  ;;  %v6870_v51 = vld [vmem:[%s15270_s5 + $0x268] sm:$0xf0] }
 0x14f   :  { %v9483_v57 = vld [vmem:[%s15270_s5 + $0x8c] sm:$0xf]  ;;  %v6873_v61 = vor.u32 %v9539_v49, %v6870_v51  ;;  %v6781_v49 = vor.u32 %v9520_v42, %v6780_v41  ;;  %v9696_v41 = vld [vmem:[%s15270_s5 + $0x72c] sm:$0xf0] }
 0x150   :  { %2338 = vmatpush.bf16.msra.mxu2 %v6581_v58  ;;  %2360 = vmatpush.bf16.msrb.mxu0 %v7221_v59  ;;  %v6646_v58 = vld [vmem:[%s15270_s5 + $0xa8] sm:$0xf0] }
 0x151   :  { %v9643_v59 = vld [vmem:[%s15270_s5 + $0x58c] sm:$0xf]  ;;  %v6649_v4 = vor.u32 %v9483_v57, %v6646_v58 }
 0x152   :  { %2397 = vmatpush.bf16.msrb.mxu3 %v7033_v54  ;;  %2375 = vmatpush.bf16.msrb.mxu1 %v7413_v1  ;;  %v6681_v54 = vor.u32 %v9491_v43, %v6678_v44  ;;  %v9531_v63 = vld [vmem:[%s15270_s5 + $0x20c] sm:$0xf] }
 0x153   :  { %2313 = vmatmul.bf16.vlgmr.msra.gmra.mxu0 %v11265_v17  ;;  %2339 = vmatmul.bf16.vlgmr.msra.gmra.mxu2 %v11181_v26  ;;  %v6838_v0 = vld [vmem:[%s15270_s5 + $0x228] sm:$0xf0] }
 0x154   :  { %2383 = vmatpush.bf16.msrb.mxu2 %v6809_v62  ;;  %2361 = vmatpush.bf16.msrb.mxu0 %v7189_v7  ;;  %v7513_v62 = vor.u32 %v9699_v52, %v7510_v53  ;;  %v9691_v1 = vld [vmem:[%s15270_s5 + $0x70c] sm:$0xf]  ;;  %v6841_v12 = vor.u32 %v9531_v63, %v6838_v0  ;;  %v6748_v53 = vld [vmem:[%s15270_s5 + $0x150] sm:$0xf] }
 0x155   :  { %v7478_v2 = vld [vmem:[%s15270_s5 + $0x728] sm:$0xf0]  ;;  %v9720_v63 = vld [vmem:[%s15270_s5 + $0x7ec] sm:$0xf0] }
 0x156   :  { %2398 = vmatpush.bf16.msrb.mxu3 %v7001_v3  ;;  %2376 = vmatpush.bf16.msrb.mxu1 %v7381_v14  ;;  %v7289_v3 = vor.u32 %v9643_v59, %v7286_v60  ;;  %v9475_v7 = vld [vmem:[%s15270_s5 + $0x4c] sm:$0xf]  ;;  %v7481_v13 = vor.u32 %v9691_v1, %v7478_v2  ;;  %v7069_v14 = vor.u32 %v9592_v6, %v7068_v5  ;;  %v6940_v59 = vld [vmem:[%s15270_s5 + $0x2d0] sm:$0xf] }
 0x157   :  { %v9683_v15 = vld [vmem:[%s15270_s5 + $0x6cc] sm:$0xf]  ;;  %v9504_v5 = vld [vmem:[%s15270_s5 + $0x12c] sm:$0xf0] }
 0x158   :  { %2384 = vmatpush.bf16.msrb.mxu2 %v6777_v10  ;;  %2362 = vmatpush.bf16.msrb.mxu0 %v7157_v22  ;;  %v7254_v10 = vld [vmem:[%s15270_s5 + $0x568] sm:$0xf0] }
 0x159   :  { %v7446_v16 = vld [vmem:[%s15270_s5 + $0x6e8] sm:$0xf0]  ;;  %v7257_v19 = vor.u32 %v9635_v9, %v7254_v10  ;;  %v9552_v10 = vld [vmem:[%s15270_s5 + $0x2ac] sm:$0xf0] }
 0x15a   :  { %2399 = vmatpush.bf16.msrb.mxu3 %v6969_v18  ;;  %2377 = vmatpush.bf16.msrb.mxu1 %v7349_v30  ;;  %v6617_v18 = vor.u32 %v9475_v7, %v6614_v8  ;;  %v9467_v22 = vld [vmem:[%s15270_s5 + $0xc] sm:$0xf]  ;;  %v7037_v30 = vor.u32 %v9584_v21, %v7036_v20  ;;  %v6908_v8 = vld [vmem:[%s15270_s5 + $0x290] sm:$0xf] }
 0x15b   :  { %v6582_v23 = vld [vmem:[%s15270_s5 + $0x28] sm:$0xf0]  ;;  %v7324_v20 = vld [vmem:[%s15270_s5 + $0x5d0] sm:$0xf] }
 0x15c   :  { %2385 = vmatpush.bf16.msrb.mxu2 %v6745_v27  ;;  %2363 = vmatpush.bf16.msrb.mxu0 %v7125_v36  ;;  %v9627_v24 = vld [vmem:[%s15270_s5 + $0x50c] sm:$0xf]  ;;  %v7449_v27 = vor.u32 %v9683_v15, %v7446_v16  ;;  %v9576_v36 = vld [vmem:[%s15270_s5 + $0x36c] sm:$0xf0] }
 0x15d   :  { %2378 = vmatmul.bf16.vlgmr.msrb.gmra.mxu1 %v11225_v56  ;;  %v7222_v25 = vld [vmem:[%s15270_s5 + $0x528] sm:$0xf0]  ;;  %v7005_v43 = vor.u32 %v9576_v36, %v7004_v35  ;;  %v9656_v21 = vld [vmem:[%s15270_s5 + $0x5ec] sm:$0xf0] }
 0x15e   :  { %2400 = vmatpush.bf16.msrb.mxu3 %v6937_v33  ;;  %2422 = vmatpush.bf16.msra.mxu1 %v7577_v34  ;;  %v9675_v31 = vld [vmem:[%s15270_s5 + $0x68c] sm:$0xf]  ;;  %v6585_v33 = vor.u32 %v9467_v22, %v6582_v23  ;;  %v7225_v34 = vor.u32 %v9627_v24, %v7222_v25  ;;  %v6909_v22 = vor.u32 %v9552_v10, %v6908_v8  ;;  %v6876_v25 = vld [vmem:[%s15270_s5 + $0x250] sm:$0xf]  ;;  %v9572_v8 = vld [vmem:[%s15270_s5 + $0x354] sm:$0xf] }
 0x15f   :  { %v7414_v32 = vld [vmem:[%s15270_s5 + $0x6a8] sm:$0xf0]  ;;  %v7325_v29 = vor.u32 %v9656_v21, %v7324_v20  ;;  %v9648_v35 = vld [vmem:[%s15270_s5 + $0x5ac] sm:$0xf0]  ;;  %v7006_v10 = vld [vmem:[%s15270_s5 + $0x370] sm:$0xf0] }
 0x160   :  { %2386 = vmatpush.bf16.msrb.mxu2 %v6713_v40  ;;  %2364 = vmatpush.bf16.msrb.mxu0 %v7093_v50  ;;  %v9619_v38 = vld [vmem:[%s15270_s5 + $0x4cc] sm:$0xf]  ;;  %v7417_v40 = vor.u32 %v9675_v31, %v7414_v32  ;;  %v9704_v31 = vld [vmem:[%s15270_s5 + $0x76c] sm:$0xf0] }
 0x161   :  { %v7190_v39 = vld [vmem:[%s15270_s5 + $0x4e8] sm:$0xf0]  ;;  %v6652_v32 = vld [vmem:[%s15270_s5 + $0x90] sm:$0xf] }
 0x162   :  { %2401 = vmatpush.bf16.msrb.mxu3 %v6905_v47  ;;  %2423 = vmatpush.bf16.msra.mxu1 %v7545_v48  ;;  %v9667_v44 = vld [vmem:[%s15270_s5 + $0x64c] sm:$0xf]  ;;  %v7193_v46 = vor.u32 %v9619_v38, %v7190_v39  ;;  %v6972_v47 = vld [vmem:[%s15270_s5 + $0x310] sm:$0xf] }
 0x163   :  { %2365 = vmatmul.bf16.vlgmr.msrb.gmra.mxu0 %v11265_v17  ;;  %v7382_v45 = vld [vmem:[%s15270_s5 + $0x668] sm:$0xf0]  ;;  %v9568_v48 = vld [vmem:[%s15270_s5 + $0x32c] sm:$0xf0] }
 0x164   :  { %2387 = vmatpush.bf16.msrb.mxu2 %v6681_v54  ;;  %2409 = vmatpush.bf16.msra.mxu0 %v7321_v55  ;;  %v9611_v50 = vld [vmem:[%s15270_s5 + $0x48c] sm:$0xf]  ;;  %v7385_v52 = vor.u32 %v9667_v44, %v7382_v45  ;;  %v9512_v54 = vld [vmem:[%s15270_s5 + $0x16c] sm:$0xf0]  ;;  %v6973_v55 = vor.u32 %v9568_v48, %v6972_v47  ;;  %v9588_v44 = vld [vmem:[%s15270_s5 + $0x3d4] sm:$0xf] }
 0x165   :  { %v7158_v51 = vld [vmem:[%s15270_s5 + $0x4a8] sm:$0xf0]  ;;  %v6749_v0 = vor.u32 %v9512_v54, %v6748_v53  ;;  %v9536_v39 = vld [vmem:[%s15270_s5 + $0x22c] sm:$0xf0]  ;;  %v7070_v45 = vld [vmem:[%s15270_s5 + $0x3f0] sm:$0xf0] }
 0x166   :  { %2402 = vmatpush.bf16.msrb.mxu3 %v6873_v61  ;;  %2424 = vmatpush.bf16.msra.mxu1 %v7513_v62  ;;  %v9659_v57 = vld [vmem:[%s15270_s5 + $0x60c] sm:$0xf]  ;;  %v7161_v60 = vor.u32 %v9611_v50, %v7158_v51  ;;  %v9560_v61 = vld [vmem:[%s15270_s5 + $0x2ec] sm:$0xf0] }
 0x167   :  { %v7350_v58 = vld [vmem:[%s15270_s5 + $0x628] sm:$0xf0]  ;;  %v7580_v62 = vld [vmem:[%s15270_s5 + $0x7d0] sm:$0xf]  ;;  %v6941_v6 = vor.u32 %v9560_v61, %v6940_v59  ;;  %v7038_v59 = vld [vmem:[%s15270_s5 + $0x3b0] sm:$0xf0] }
 0x168   :  { %2388 = vmatpush.bf16.msrb.mxu2 %v6649_v4  ;;  %2410 = vmatpush.bf16.msra.mxu0 %v7289_v3  ;;  %v9603_v1 = vld [vmem:[%s15270_s5 + $0x44c] sm:$0xf]  ;;  %v7353_v4 = vor.u32 %v9659_v57, %v7350_v58  ;;  %v6716_v3 = vld [vmem:[%s15270_s5 + $0x110] sm:$0xf]  ;;  %v7581_v7 = vor.u32 %v9720_v63, %v7580_v62  ;;  %v9580_v58 = vld [vmem:[%s15270_s5 + $0x394] sm:$0xf] }
 0x169   :  { %v7126_v2 = vld [vmem:[%s15270_s5 + $0x468] sm:$0xf0]  ;;  %v9480_v47 = vld [vmem:[%s15270_s5 + $0x6c] sm:$0xf0] }
 0x16a   :  { %2403 = vmatpush.bf16.msrb.mxu3 %v6841_v12  ;;  %2425 = vmatpush.bf16.msra.mxu1 %v7481_v13  ;;  %v7129_v9 = vor.u32 %v9603_v1, %v7126_v2  ;;  %v7548_v12 = vld [vmem:[%s15270_s5 + $0x790] sm:$0xf]  ;;  %v9595_v15 = vld [vmem:[%s15270_s5 + $0x40c] sm:$0xf]  ;;  %v6814_v1 = vld [vmem:[%s15270_s5 + $0x1f0] sm:$0xf0] }
 0x16b   :  { %v9712_v13 = vld [vmem:[%s15270_s5 + $0x7ac] sm:$0xf0]  ;;  %v7094_v16 = vld [vmem:[%s15270_s5 + $0x428] sm:$0xf0] }
 0x16c   :  { %2389 = vmatpush.bf16.msrb.mxu2 %v6617_v18  ;;  %2411 = vmatpush.bf16.msra.mxu0 %v7257_v19  ;;  %v6684_v18 = vld [vmem:[%s15270_s5 + $0xd0] sm:$0xf]  ;;  %v7549_v23 = vor.u32 %v9712_v13, %v7548_v12  ;;  %v7097_v24 = vor.u32 %v9595_v15, %v7094_v16  ;;  %v6782_v15 = vld [vmem:[%s15270_s5 + $0x1b0] sm:$0xf0] }
 0x16d   :  { %2404 = vmatmul.bf16.vlgmr.msrb.gmra.mxu3 %v11160_v11  ;;  %v9496_v19 = vld [vmem:[%s15270_s5 + $0xec] sm:$0xf0] }
 0x16e   :  { %2448 = vmatpush.bf16.msra.mxu3 %v7069_v14  ;;  %2426 = vmatpush.bf16.msra.mxu1 %v7449_v27  ;;  %v6717_v14 = vor.u32 %v9504_v5, %v6716_v3  ;;  %v9544_v27 = vld [vmem:[%s15270_s5 + $0x26c] sm:$0xf0]  ;;  %v6685_v28 = vor.u32 %v9496_v19, %v6684_v18  ;;  %v7009_v18 = vor.u32 %v9572_v8, %v7006_v10  ;;  %v7294_v8 = vld [vmem:[%s15270_s5 + $0x5b0] sm:$0xf0] }
 0x16f   :  { %v6877_v36 = vor.u32 %v9544_v27, %v6876_v25  ;;  %v7260_v48 = vld [vmem:[%s15270_s5 + $0x550] sm:$0xf]  ;;  %v9532_v10 = vld [vmem:[%s15270_s5 + $0x214] sm:$0xf] }
 0x170   :  { %2390 = vmatpush.bf16.msrb.mxu2 %v6585_v33  ;;  %2412 = vmatpush.bf16.msra.mxu0 %v7225_v34  ;;  %v9488_v33 = vld [vmem:[%s15270_s5 + $0xac] sm:$0xf0] }
 0x171   :  { %v7292_v34 = vld [vmem:[%s15270_s5 + $0x590] sm:$0xf]  ;;  %v6653_v42 = vor.u32 %v9488_v33, %v6652_v32 }
 0x172   :  { %2449 = vmatpush.bf16.msra.mxu3 %v7037_v30  ;;  %2427 = vmatpush.bf16.msra.mxu1 %v7417_v40  ;;  %v7516_v30 = vld [vmem:[%s15270_s5 + $0x750] sm:$0xf] }
 0x173   :  { %2391 = vmatmul.bf16.vlgmr.msrb.gmra.mxu2 %v11181_v26  ;;  %v7517_v38 = vor.u32 %v9704_v31, %v7516_v30  ;;  %v7484_v40 = vld [vmem:[%s15270_s5 + $0x710] sm:$0xf] }
 0x174   :  { %2435 = vmatpush.bf16.msra.mxu2 %v6813_v37  ;;  %2413 = vmatpush.bf16.msra.mxu0 %v7193_v46  ;;  %v6844_v37 = vld [vmem:[%s15270_s5 + $0x210] sm:$0xf]  ;;  %v7485_v51 = vor.u32 %v9696_v41, %v7484_v40 }
 0x175   :  { %v6620_v46 = vld [vmem:[%s15270_s5 + $0x50] sm:$0xf]  ;;  %v6845_v50 = vor.u32 %v9536_v39, %v6844_v37  ;;  %v7582_v39 = vld [vmem:[%s15270_s5 + $0x7f0] sm:$0xf0] }
 0x176   :  { %2450 = vmatpush.bf16.msra.mxu3 %v7005_v43  ;;  %2428 = vmatpush.bf16.msra.mxu1 %v7385_v52  ;;  %v7293_v43 = vor.u32 %v9648_v35, %v7292_v34  ;;  %v7073_v52 = vor.u32 %v9588_v44, %v7070_v45  ;;  %v7452_v53 = vld [vmem:[%s15270_s5 + $0x6d0] sm:$0xf]  ;;  %v9556_v35 = vld [vmem:[%s15270_s5 + $0x2d4] sm:$0xf] }
 0x177   :  { %v9688_v54 = vld [vmem:[%s15270_s5 + $0x6ec] sm:$0xf0] }
 0x178   :  { %2436 = vmatpush.bf16.msra.mxu2 %v6781_v49  ;;  %2414 = vmatpush.bf16.msra.mxu0 %v7161_v60  ;;  %v9640_v49 = vld [vmem:[%s15270_s5 + $0x56c] sm:$0xf0]  ;;  %v7453_v2 = vor.u32 %v9688_v54, %v7452_v53 }
 0x179   :  { %v7261_v57 = vor.u32 %v9640_v49, %v7260_v48  ;;  %v6588_v60 = vld [vmem:[%s15270_s5 + $0x10] sm:$0xf]  ;;  %v6910_v48 = vld [vmem:[%s15270_s5 + $0x2b0] sm:$0xf0] }
 0x17a   :  { %2451 = vmatpush.bf16.msra.mxu3 %v6973_v55  ;;  %2429 = vmatpush.bf16.msra.mxu1 %v7353_v4  ;;  %v6621_v55 = vor.u32 %v9480_v47, %v6620_v46  ;;  %v9472_v61 = vld [vmem:[%s15270_s5 + $0x2c] sm:$0xf0]  ;;  %v7041_v4 = vor.u32 %v9580_v58, %v7038_v59  ;;  %v9548_v47 = vld [vmem:[%s15270_s5 + $0x294] sm:$0xf] }
 0x17b   :  { %v7228_v62 = vld [vmem:[%s15270_s5 + $0x510] sm:$0xf]  ;;  %v6589_v3 = vor.u32 %v9472_v61, %v6588_v60  ;;  %v9652_v58 = vld [vmem:[%s15270_s5 + $0x5d4] sm:$0xf]  ;;  %v6913_v60 = vor.u32 %v9548_v47, %v6910_v48  ;;  %v7012_v47 = vld [vmem:[%s15270_s5 + $0x358] sm:$0xf] }
 0x17c   :  { %2437 = vmatpush.bf16.msra.mxu2 %v6749_v0  ;;  %2415 = vmatpush.bf16.msra.mxu0 %v7129_v9  ;;  %v9632_v63 = vld [vmem:[%s15270_s5 + $0x52c] sm:$0xf0]  ;;  %v9524_v0 = vld [vmem:[%s15270_s5 + $0x1d4] sm:$0xf] }
 0x17d   :  { %2430 = vmatmul.bf16.vlgmr.msra.gmra.mxu1 %v11225_v56  ;;  %v7229_v5 = vor.u32 %v9632_v63, %v7228_v62  ;;  %v6817_v9 = vor.u32 %v9524_v0, %v6814_v1  ;;  %v7196_v12 = vld [vmem:[%s15270_s5 + $0x4d0] sm:$0xf]  ;;  %v7326_v59 = vld [vmem:[%s15270_s5 + $0x5f0] sm:$0xf0] }
 0x17e   :  { %2452 = vmatpush.bf16.msra.mxu3 %v6941_v6  ;;  %2474 = vmatpush.bf16.msrb.mxu1 %v7581_v7  ;;  %v7420_v6 = vld [vmem:[%s15270_s5 + $0x690] sm:$0xf]  ;;  %v9540_v0 = vld [vmem:[%s15270_s5 + $0x254] sm:$0xf] }
 0x17f   :  { %v9680_v7 = vld [vmem:[%s15270_s5 + $0x6ac] sm:$0xf0]  ;;  %v6878_v1 = vld [vmem:[%s15270_s5 + $0x270] sm:$0xf0] }
 0x180   :  { %2438 = vmatpush.bf16.msra.mxu2 %v6717_v14  ;;  %2416 = vmatpush.bf16.msra.mxu0 %v7097_v24  ;;  %v9624_v13 = vld [vmem:[%s15270_s5 + $0x4ec] sm:$0xf0]  ;;  %v9516_v14 = vld [vmem:[%s15270_s5 + $0x194] sm:$0xf]  ;;  %v7421_v16 = vor.u32 %v9680_v7, %v7420_v6 }
 0x181   :  { %v7197_v19 = vor.u32 %v9624_v13, %v7196_v12  ;;  %v7388_v20 = vld [vmem:[%s15270_s5 + $0x650] sm:$0xf]  ;;  %v6974_v24 = vld [vmem:[%s15270_s5 + $0x330] sm:$0xf0] }
 0x182   :  { %2453 = vmatpush.bf16.msra.mxu3 %v6909_v22  ;;  %2475 = vmatpush.bf16.msrb.mxu1 %v7549_v23  ;;  %v9672_v21 = vld [vmem:[%s15270_s5 + $0x66c] sm:$0xf0]  ;;  %v9564_v22 = vld [vmem:[%s15270_s5 + $0x314] sm:$0xf]  ;;  %v6785_v23 = vor.u32 %v9516_v14, %v6782_v15 }
 0x183   :  { %2417 = vmatmul.bf16.vlgmr.msra.gmra.mxu0 %v11265_v17  ;;  %v7164_v25 = vld [vmem:[%s15270_s5 + $0x490] sm:$0xf]  ;;  %v7389_v30 = vor.u32 %v9672_v21, %v7388_v20  ;;  %v6977_v32 = vor.u32 %v9564_v22, %v6974_v24  ;;  %v6654_v6 = vld [vmem:[%s15270_s5 + $0xb0] sm:$0xf0]  ;;  %v9593_v20 = vld [vmem:[%s15270_s5 + $0x3f4] sm:$0xf0] }
 0x184   :  { %2439 = vmatpush.bf16.msra.mxu2 %v6685_v28  ;;  %2461 = vmatpush.bf16.msrb.mxu0 %v7325_v29  ;;  %v9616_v27 = vld [vmem:[%s15270_s5 + $0x4ac] sm:$0xf0]  ;;  %v9508_v28 = vld [vmem:[%s15270_s5 + $0x154] sm:$0xf] }
 0x185   :  { %v6750_v29 = vld [vmem:[%s15270_s5 + $0x170] sm:$0xf0]  ;;  %v7356_v31 = vld [vmem:[%s15270_s5 + $0x610] sm:$0xf]  ;;  %v7165_v33 = vor.u32 %v9616_v27, %v7164_v25 }
 0x186   :  { %2454 = vmatpush.bf16.msra.mxu3 %v6877_v36  ;;  %2476 = vmatpush.bf16.msrb.mxu1 %v7517_v38  ;;  %v9664_v34 = vld [vmem:[%s15270_s5 + $0x62c] sm:$0xf0]  ;;  %v6942_v36 = vld [vmem:[%s15270_s5 + $0x2f0] sm:$0xf0]  ;;  %v6753_v37 = vor.u32 %v9508_v28, %v6750_v29 }
 0x187   :  { %v9716_v38 = vld [vmem:[%s15270_s5 + $0x7d4] sm:$0xf]  ;;  %v7132_v40 = vld [vmem:[%s15270_s5 + $0x450] sm:$0xf]  ;;  %v7357_v44 = vor.u32 %v9664_v34, %v7356_v31  ;;  %v6945_v45 = vor.u32 %v9556_v35, %v6942_v36  ;;  %v9585_v34 = vld [vmem:[%s15270_s5 + $0x3b4] sm:$0xf0] }
 0x188   :  { %2440 = vmatpush.bf16.msra.mxu2 %v6653_v42  ;;  %2462 = vmatpush.bf16.msrb.mxu0 %v7293_v43  ;;  %v9608_v41 = vld [vmem:[%s15270_s5 + $0x46c] sm:$0xf0]  ;;  %v9500_v42 = vld [vmem:[%s15270_s5 + $0x114] sm:$0xf]  ;;  %v7585_v46 = vor.u32 %v9716_v38, %v7582_v39  ;;  %v6820_v39 = vld [vmem:[%s15270_s5 + $0x1d8] sm:$0xf] }
 0x189   :  { %v6718_v43 = vld [vmem:[%s15270_s5 + $0x130] sm:$0xf0]  ;;  %v7133_v49 = vor.u32 %v9608_v41, %v7132_v40  ;;  %v7100_v53 = vld [vmem:[%s15270_s5 + $0x410] sm:$0xf]  ;;  %v9529_v40 = vld [vmem:[%s15270_s5 + $0x1f4] sm:$0xf0] }
 0x18a   :  { %2455 = vmatpush.bf16.msra.mxu3 %v6845_v50  ;;  %2477 = vmatpush.bf16.msrb.mxu1 %v7485_v51  ;;  %v6721_v50 = vor.u32 %v9500_v42, %v6718_v43  ;;  %v9708_v51 = vld [vmem:[%s15270_s5 + $0x794] sm:$0xf]  ;;  %v9600_v54 = vld [vmem:[%s15270_s5 + $0x42c] sm:$0xf0]  ;;  %v6821_v48 = vor.u32 %v9529_v40, %v6820_v39 }
 0x18b   :  { %v7101_v62 = vor.u32 %v9600_v54, %v7100_v53  ;;  %v9644_v7 = vld [vmem:[%s15270_s5 + $0x594] sm:$0xf]  ;;  %v9521_v53 = vld [vmem:[%s15270_s5 + $0x1b4] sm:$0xf0] }
 0x18c   :  { %2441 = vmatpush.bf16.msra.mxu2 %v6621_v55  ;;  %2463 = vmatpush.bf16.msrb.mxu0 %v7261_v57  ;;  %v9492_v55 = vld [vmem:[%s15270_s5 + $0xd4] sm:$0xf] }
 0x18d   :  { %2456 = vmatmul.bf16.vlgmr.msra.gmra.mxu3 %v11160_v11  ;;  %v6686_v57 = vld [vmem:[%s15270_s5 + $0xf0] sm:$0xf0] }
 0x18e   :  { %2500 = vmatpush.bf16.msrb.mxu3 %v7073_v52  ;;  %2478 = vmatpush.bf16.msrb.mxu1 %v7453_v2  ;;  %v7550_v52 = vld [vmem:[%s15270_s5 + $0x7b0] sm:$0xf0]  ;;  %v6689_v63 = vor.u32 %v9492_v55, %v6686_v57 }
 0x18f   :  { %v7553_v61 = vor.u32 %v9708_v51, %v7550_v52  ;;  %v9700_v2 = vld [vmem:[%s15270_s5 + $0x754] sm:$0xf]  ;;  %v6788_v52 = vld [vmem:[%s15270_s5 + $0x198] sm:$0xf] }
 0x190   :  { %2442 = vmatpush.bf16.msra.mxu2 %v6589_v3  ;;  %2464 = vmatpush.bf16.msrb.mxu0 %v7229_v5  ;;  %v7518_v3 = vld [vmem:[%s15270_s5 + $0x770] sm:$0xf0] }
 0x191   :  { %v9484_v5 = vld [vmem:[%s15270_s5 + $0x94] sm:$0xf]  ;;  %v7521_v12 = vor.u32 %v9700_v2, %v7518_v3  ;;  %v9513_v2 = vld [vmem:[%s15270_s5 + $0x174] sm:$0xf0] }
 0x192   :  { %2501 = vmatpush.bf16.msrb.mxu3 %v7041_v4  ;;  %2479 = vmatpush.bf16.msrb.mxu1 %v7421_v16  ;;  %v7329_v4 = vor.u32 %v9652_v58, %v7326_v59  ;;  %v6657_v13 = vor.u32 %v9484_v5, %v6654_v6  ;;  %v6846_v14 = vld [vmem:[%s15270_s5 + $0x230] sm:$0xf0] }
 0x193   :  { %2443 = vmatmul.bf16.vlgmr.msra.gmra.mxu2 %v11181_v26  ;;  %v9692_v15 = vld [vmem:[%s15270_s5 + $0x714] sm:$0xf]  ;;  %v6849_v25 = vor.u32 %v9532_v10, %v6846_v14 }
 0x194   :  { %2487 = vmatpush.bf16.msrb.mxu2 %v6817_v9  ;;  %2465 = vmatpush.bf16.msrb.mxu0 %v7197_v19  ;;  %v6881_v9 = vor.u32 %v9540_v0, %v6878_v1  ;;  %v7486_v16 = vld [vmem:[%s15270_s5 + $0x730] sm:$0xf0]  ;;  %v7076_v19 = vld [vmem:[%s15270_s5 + $0x3d8] sm:$0xf] }
 0x195   :  { %v9476_v21 = vld [vmem:[%s15270_s5 + $0x54] sm:$0xf]  ;;  %v7489_v27 = vor.u32 %v9692_v15, %v7486_v16  ;;  %v7077_v28 = vor.u32 %v9593_v20, %v7076_v19  ;;  %v6756_v1 = vld [vmem:[%s15270_s5 + $0x158] sm:$0xf] }
 0x196   :  { %2502 = vmatpush.bf16.msrb.mxu3 %v7009_v18  ;;  %2480 = vmatpush.bf16.msrb.mxu1 %v7389_v30  ;;  %v7297_v18 = vor.u32 %v9644_v7, %v7294_v8  ;;  %v6622_v22 = vld [vmem:[%s15270_s5 + $0x70] sm:$0xf0]  ;;  %v6948_v8 = vld [vmem:[%s15270_s5 + $0x2d8] sm:$0xf]  ;;  %v6757_v10 = vor.u32 %v9513_v2, %v6756_v1  ;;  %v9589_v1 = vld [vmem:[%s15270_s5 + $0x3dc] sm:$0xf] }
 0x197   :  { %v7262_v24 = vld [vmem:[%s15270_s5 + $0x570] sm:$0xf0]  ;;  %v6625_v31 = vor.u32 %v9476_v21, %v6622_v22  ;;  %v6724_v16 = vld [vmem:[%s15270_s5 + $0x118] sm:$0xf]  ;;  %v7078_v2 = vld [vmem:[%s15270_s5 + $0x3f8] sm:$0xf0] }
 0x198   :  { %2488 = vmatpush.bf16.msrb.mxu2 %v6785_v23  ;;  %2466 = vmatpush.bf16.msrb.mxu0 %v7165_v33  ;;  %v9636_v23 = vld [vmem:[%s15270_s5 + $0x554] sm:$0xf]  ;;  %v7044_v33 = vld [vmem:[%s15270_s5 + $0x398] sm:$0xf] }
 0x199   :  { %v9684_v29 = vld [vmem:[%s15270_s5 + $0x6d4] sm:$0xf]  ;;  %v7045_v42 = vor.u32 %v9585_v34, %v7044_v33  ;;  %v6692_v33 = vld [vmem:[%s15270_s5 + $0xd8] sm:$0xf] }
 0x19a   :  { %2503 = vmatpush.bf16.msrb.mxu3 %v6977_v32  ;;  %2481 = vmatpush.bf16.msrb.mxu1 %v7357_v44  ;;  %v7454_v30 = vld [vmem:[%s15270_s5 + $0x6f0] sm:$0xf0]  ;;  %v7265_v32 = vor.u32 %v9636_v23, %v7262_v24  ;;  %v6916_v23 = vld [vmem:[%s15270_s5 + $0x298] sm:$0xf] }
 0x19b   :  { %v9468_v35 = vld [vmem:[%s15270_s5 + $0x14] sm:$0xf]  ;;  %v7457_v41 = vor.u32 %v9684_v29, %v7454_v30  ;;  %v9553_v24 = vld [vmem:[%s15270_s5 + $0x2b4] sm:$0xf0] }
 0x19c   :  { %2489 = vmatpush.bf16.msrb.mxu2 %v6753_v37  ;;  %2467 = vmatpush.bf16.msrb.mxu0 %v7133_v49  ;;  %v6590_v36 = vld [vmem:[%s15270_s5 + $0x30] sm:$0xf0]  ;;  %v9577_v49 = vld [vmem:[%s15270_s5 + $0x374] sm:$0xf0] }
 0x19d   :  { %2482 = vmatmul.bf16.vlgmr.msrb.gmra.mxu1 %v11225_v56  ;;  %v9628_v37 = vld [vmem:[%s15270_s5 + $0x514] sm:$0xf]  ;;  %v6593_v43 = vor.u32 %v9468_v35, %v6590_v36  ;;  %v7013_v55 = vor.u32 %v9577_v49, %v7012_v47  ;;  %v7556_v29 = vld [vmem:[%s15270_s5 + $0x798] sm:$0xf] }
 0x19e   :  { %2504 = vmatpush.bf16.msrb.mxu3 %v6945_v45  ;;  %2526 = vmatpush.bf16.msra.mxu1 %v7585_v46  ;;  %v7230_v38 = vld [vmem:[%s15270_s5 + $0x530] sm:$0xf0]  ;;  %v9713_v30 = vld [vmem:[%s15270_s5 + $0x7b4] sm:$0xf0] }
 0x19f   :  { %v7233_v44 = vor.u32 %v9628_v37, %v7230_v38  ;;  %v9676_v45 = vld [vmem:[%s15270_s5 + $0x694] sm:$0xf]  ;;  %v9497_v34 = vld [vmem:[%s15270_s5 + $0xf4] sm:$0xf0]  ;;  %v6917_v38 = vor.u32 %v9553_v24, %v6916_v23  ;;  %v7557_v39 = vor.u32 %v9713_v30, %v7556_v29 }
 0x1a0   :  { %2490 = vmatpush.bf16.msrb.mxu2 %v6721_v50  ;;  %2468 = vmatpush.bf16.msrb.mxu0 %v7101_v62  ;;  %v7422_v46 = vld [vmem:[%s15270_s5 + $0x6b0] sm:$0xf0]  ;;  %v9569_v62 = vld [vmem:[%s15270_s5 + $0x334] sm:$0xf0] }
 0x1a1   :  { %v9620_v50 = vld [vmem:[%s15270_s5 + $0x4d4] sm:$0xf]  ;;  %v7425_v54 = vor.u32 %v9676_v45, %v7422_v46  ;;  %v7332_v36 = vld [vmem:[%s15270_s5 + $0x5d8] sm:$0xf] }
 0x1a2   :  { %2505 = vmatpush.bf16.msrb.mxu3 %v6913_v60  ;;  %2527 = vmatpush.bf16.msra.mxu1 %v7553_v61  ;;  %v7198_v51 = vld [vmem:[%s15270_s5 + $0x4f0] sm:$0xf0]  ;;  %v6980_v60 = vld [vmem:[%s15270_s5 + $0x318] sm:$0xf]  ;;  %v6789_v61 = vor.u32 %v9521_v53, %v6788_v52 }
 0x1a3   :  { %2469 = vmatmul.bf16.vlgmr.msrb.gmra.mxu0 %v11265_v17  ;;  %v7201_v57 = vor.u32 %v9620_v50, %v7198_v51  ;;  %v9668_v58 = vld [vmem:[%s15270_s5 + $0x654] sm:$0xf]  ;;  %v6981_v5 = vor.u32 %v9569_v62, %v6980_v60  ;;  %v9657_v37 = vld [vmem:[%s15270_s5 + $0x5f4] sm:$0xf0] }
 0x1a4   :  { %2491 = vmatpush.bf16.msrb.mxu2 %v6689_v63  ;;  %2513 = vmatpush.bf16.msra.mxu0 %v7329_v4  ;;  %v7390_v59 = vld [vmem:[%s15270_s5 + $0x670] sm:$0xf0]  ;;  %v7333_v46 = vor.u32 %v9657_v37, %v7332_v36  ;;  %v9705_v47 = vld [vmem:[%s15270_s5 + $0x774] sm:$0xf0]  ;;  %v9573_v37 = vld [vmem:[%s15270_s5 + $0x35c] sm:$0xf] }
 0x1a5   :  { %v9612_v63 = vld [vmem:[%s15270_s5 + $0x494] sm:$0xf]  ;;  %v7393_v4 = vor.u32 %v9668_v58, %v7390_v59  ;;  %v9489_v49 = vld [vmem:[%s15270_s5 + $0xb4] sm:$0xf0] }
 0x1a6   :  { %2506 = vmatpush.bf16.msrb.mxu3 %v6881_v9  ;;  %2528 = vmatpush.bf16.msra.mxu1 %v7521_v12  ;;  %v7166_v0 = vld [vmem:[%s15270_s5 + $0x4b0] sm:$0xf0]  ;;  %v9561_v9 = vld [vmem:[%s15270_s5 + $0x2f4] sm:$0xf0] }
 0x1a7   :  { %v9660_v3 = vld [vmem:[%s15270_s5 + $0x614] sm:$0xf]  ;;  %v7169_v6 = vor.u32 %v9612_v63, %v7166_v0  ;;  %v7588_v12 = vld [vmem:[%s15270_s5 + $0x7d8] sm:$0xf]  ;;  %v6949_v21 = vor.u32 %v9561_v9, %v6948_v8  ;;  %v7081_v9 = vor.u32 %v9589_v1, %v7078_v2 }
 0x1a8   :  { %2492 = vmatpush.bf16.msrb.mxu2 %v6657_v13  ;;  %2514 = vmatpush.bf16.msra.mxu0 %v7297_v18  ;;  %v7358_v7 = vld [vmem:[%s15270_s5 + $0x630] sm:$0xf0]  ;;  %v9721_v13 = vld [vmem:[%s15270_s5 + $0x7f4] sm:$0xf0] }
 0x1a9   :  { %v9604_v14 = vld [vmem:[%s15270_s5 + $0x454] sm:$0xf]  ;;  %v9505_v18 = vld [vmem:[%s15270_s5 + $0x134] sm:$0xf0]  ;;  %v7361_v19 = vor.u32 %v9660_v3, %v7358_v7  ;;  %v7589_v22 = vor.u32 %v9721_v13, %v7588_v12 }
 0x1aa   :  { %2507 = vmatpush.bf16.msrb.mxu3 %v6849_v25  ;;  %2529 = vmatpush.bf16.msra.mxu1 %v7489_v27  ;;  %v7134_v15 = vld [vmem:[%s15270_s5 + $0x470] sm:$0xf0]  ;;  %v12017_v25 = vld [vmem:[%s15271_s6] sm:$0xff]  ;;  %v7300_v51 = vld [vmem:[%s15270_s5 + $0x598] sm:$0xf] }
 0x1ab   :  { %v7137_v27 = vor.u32 %v9604_v14, %v7134_v15  ;;  %v931_v35 = vperm.slane %v12017_v25, 0  ;;  %v9649_v52 = vld [vmem:[%s15270_s5 + $0x5b4] sm:$0xf0] }
 0x1ac   :  { %2493 = vmatpush.bf16.msrb.mxu2 %v6625_v31  ;;  %2515 = vmatpush.bf16.msra.mxu0 %v7265_v32  ;;  %v9596_v31 = vld [vmem:[%s15270_s5 + $0x414] sm:$0xf]  ;;  %v9537_v59 = vld [vmem:[%s15270_s5 + $0x234] sm:$0xf0]  ;;  %v7301_v0 = vor.u32 %v9649_v52, %v7300_v51  ;;  %v9565_v51 = vld [vmem:[%s15270_s5 + $0x31c] sm:$0xf] }
 0x1ad   :  { %2508 = vmatmul.bf16.vlgmr.msrb.gmra.mxu3 %v11160_v11  ;;  %v7102_v32 = vld [vmem:[%s15270_s5 + $0x430] sm:$0xf0]  ;;  %v7492_v60 = vld [vmem:[%s15270_s5 + $0x718] sm:$0xf] }
 0x1ae   :  { %2552 = vmatpush.bf16.msra.mxu3 %v7077_v28  ;;  %2530 = vmatpush.bf16.msra.mxu1 %v7457_v41  ;;  %v6725_v28 = vor.u32 %v9505_v18, %v6724_v16  ;;  %v7105_v40 = vor.u32 %v9596_v31, %v7102_v32  ;;  %v6693_v41 = vor.u32 %v9497_v34, %v6692_v33  ;;  %v9481_v3 = vld [vmem:[%s15270_s5 + $0x74] sm:$0xf0]  ;;  %v9581_v16 = vld [vmem:[%s15270_s5 + $0x39c] sm:$0xf] }
 0x1af   :  { %v9689_v12 = vld [vmem:[%s15270_s5 + $0x6f4] sm:$0xf0]  ;;  %v7046_v18 = vld [vmem:[%s15270_s5 + $0x3b8] sm:$0xf0] }
 0x1b0   :  { %2494 = vmatpush.bf16.msrb.mxu2 %v6593_v43  ;;  %2516 = vmatpush.bf16.msra.mxu0 %v7233_v44  ;;  %v2249_v20 = vpop.f32.mrf.mxu3  ;;  %v9545_v43 = vld [vmem:[%s15270_s5 + $0x274] sm:$0xf0]  ;;  %v7049_v31 = vor.u32 %v9581_v16, %v7046_v18  ;;  %v9549_v18 = vld [vmem:[%s15270_s5 + $0x29c] sm:$0xf] }
 0x1b1   :  { %v7524_v44 = vld [vmem:[%s15270_s5 + $0x758] sm:$0xf] }
 0x1b2   :  { %2553 = vmatpush.bf16.msra.mxu3 %v7045_v42  ;;  %2531 = vmatpush.bf16.msra.mxu1 %v7425_v54  ;;  %v6884_v42 = vld [vmem:[%s15270_s5 + $0x258] sm:$0xf] }
 0x1b3   :  { %2495 = vmatmul.bf16.vlgmr.msrb.gmra.mxu2 %v11181_v26  ;;  %v6885_v54 = vor.u32 %v9545_v43, %v6884_v42  ;;  %v9681_v36 = vld [vmem:[%s15270_s5 + $0x6b4] sm:$0xf0]  ;;  %v9517_v43 = vld [vmem:[%s15270_s5 + $0x19c] sm:$0xf] }
 0x1b4   :  { %2539 = vmatpush.bf16.msra.mxu2 %v6821_v48  ;;  %2517 = vmatpush.bf16.msra.mxu0 %v7201_v57  ;;  %v6660_v48 = vld [vmem:[%s15270_s5 + $0x98] sm:$0xf]  ;;  %v7525_v57 = vor.u32 %v9705_v47, %v7524_v44  ;;  %v6790_v44 = vld [vmem:[%s15270_s5 + $0x1b8] sm:$0xf0] }
 0x1b5   :  { %v6661_v58 = vor.u32 %v9489_v49, %v6660_v48  ;;  %v9625_v42 = vld [vmem:[%s15270_s5 + $0x4f4] sm:$0xf0]  ;;  %v6793_v52 = vor.u32 %v9517_v43, %v6790_v44  ;;  %v9701_v43 = vld [vmem:[%s15270_s5 + $0x75c] sm:$0xf] }
 0x1b6   :  { %2554 = vmatpush.bf16.msra.mxu3 %v7013_v55  ;;  %2532 = vmatpush.bf16.msra.mxu1 %v7393_v4  ;;  %v2236_v45 = vpop.f32.mrf.mxu2  ;;  %v6852_v55 = vld [vmem:[%s15270_s5 + $0x218] sm:$0xf] }
 0x1b7   :  { %v2237_v50 = vadd.f32 %v2236_v45, %v931_v35  ;;  %v6628_v4 = vld [vmem:[%s15270_s5 + $0x58] sm:$0xf]  ;;  %v6853_v7 = vor.u32 %v9537_v59, %v6852_v55  ;;  %v9509_v59 = vld [vmem:[%s15270_s5 + $0x15c] sm:$0xf] }
 0x1b8   :  { %2540 = vmatpush.bf16.msra.mxu2 %v6789_v61  ;;  %2518 = vmatpush.bf16.msra.mxu0 %v7169_v6  ;;  %v2251_v53 = vpop.f32.mrf.mxu3  ;;  %v9697_v61 = vld [vmem:[%s15270_s5 + $0x734] sm:$0xf0]  ;;  %v6629_v14 = vor.u32 %v9481_v3, %v6628_v4  ;;  %v9557_v4 = vld [vmem:[%s15270_s5 + $0x2dc] sm:$0xf] }
 0x1b9   :  { %v2250_v62 = vadd.f32 %v2249_v20, %v2237_v50  ;;  %v9641_v6 = vld [vmem:[%s15270_s5 + $0x574] sm:$0xf0]  ;;  %v7493_v8 = vor.u32 %v9697_v61, %v7492_v60  ;;  %v6982_v53 = vld [vmem:[%s15270_s5 + $0x338] sm:$0xf0] }
 0x1ba   :  { %2555 = vmatpush.bf16.msra.mxu3 %v6981_v5  ;;  %2533 = vmatpush.bf16.msra.mxu1 %v7361_v19  ;;  %v2275_v63 = vpop.f32.mrf.mxu1  ;;  %v7268_v5 = vld [vmem:[%s15270_s5 + $0x558] sm:$0xf]  ;;  %v6758_v60 = vld [vmem:[%s15270_s5 + $0x178] sm:$0xf0] }
 0x1bb   :  { %v7269_v15 = vor.u32 %v9641_v6, %v7268_v5  ;;  %v6596_v19 = vld [vmem:[%s15270_s5 + $0x18] sm:$0xf]  ;;  %v6950_v3 = vld [vmem:[%s15270_s5 + $0x2f8] sm:$0xf0]  ;;  %v6761_v5 = vor.u32 %v9509_v59, %v6758_v60 }
 0x1bc   :  { %2541 = vmatpush.bf16.msra.mxu2 %v6757_v10  ;;  %2519 = vmatpush.bf16.msra.mxu0 %v7137_v27  ;;  %v7460_v10 = vld [vmem:[%s15270_s5 + $0x6d8] sm:$0xf]  ;;  %v9525_v27 = vld [vmem:[%s15270_s5 + $0x1dc] sm:$0xf] }
 0x1bd   :  { %2534 = vmatmul.bf16.vlgmr.msra.gmra.mxu1 %v11225_v56  ;;  %v9473_v20 = vld [vmem:[%s15270_s5 + $0x34] sm:$0xf0]  ;;  %v7461_v30 = vor.u32 %v9689_v12, %v7460_v10  ;;  %v9717_v6 = vld [vmem:[%s15270_s5 + $0x7dc] sm:$0xf] }
 0x1be   :  { %2556 = vmatpush.bf16.msra.mxu3 %v6949_v21  ;;  %2578 = vmatpush.bf16.msrb.mxu1 %v7589_v22  ;;  %v2238_v13 = vpop.f32.mrf.mxu2  ;;  %v7236_v21 = vld [vmem:[%s15270_s5 + $0x518] sm:$0xf]  ;;  %v6597_v33 = vor.u32 %v9473_v20, %v6596_v19  ;;  %v9501_v10 = vld [vmem:[%s15270_s5 + $0x11c] sm:$0xf] }
 0x1bf   :  { %v9633_v22 = vld [vmem:[%s15270_s5 + $0x534] sm:$0xf0]  ;;  %v6726_v12 = vld [vmem:[%s15270_s5 + $0x138] sm:$0xf0] }
 0x1c0   :  { %2542 = vmatpush.bf16.msra.mxu2 %v6725_v28  ;;  %2520 = vmatpush.bf16.msra.mxu0 %v7105_v40  ;;  %v2262_v23 = vpop.f32.mrf.mxu0  ;;  %v12124_v24 = vpop.f32.mrf.mxu3  ;;  %v6822_v28 = vld [vmem:[%s15270_s5 + $0x1f8] sm:$0xf0]  ;;  %v7237_v34 = vor.u32 %v9633_v22, %v7236_v21  ;;  %v7428_v35 = vld [vmem:[%s15270_s5 + $0x698] sm:$0xf]  ;;  %v6729_v21 = vor.u32 %v9501_v10, %v6726_v12 }
 0x1c1   :  { %v2263_v29 = vadd.f32 %v2262_v23, %v2250_v62  ;;  %v7014_v40 = vld [vmem:[%s15270_s5 + $0x378] sm:$0xf0]  ;;  %v7429_v45 = vor.u32 %v9681_v36, %v7428_v35  ;;  %v7396_v49 = vld [vmem:[%s15270_s5 + $0x658] sm:$0xf] }
 0x1c2   :  { %2557 = vmatpush.bf16.msra.mxu3 %v6917_v38  ;;  %2579 = vmatpush.bf16.msrb.mxu1 %v7557_v39  ;;  %v2277_v32 = vpop.f32.mrf.mxu1  ;;  %v6825_v39 = vor.u32 %v9525_v27, %v6822_v28  ;;  %v7017_v47 = vor.u32 %v9573_v37, %v7014_v40  ;;  %v9673_v50 = vld [vmem:[%s15270_s5 + $0x674] sm:$0xf0]  ;;  %v6918_v19 = vld [vmem:[%s15270_s5 + $0x2b8] sm:$0xf0] }
 0x1c3   :  { %2521 = vmatmul.bf16.vlgmr.msra.gmra.mxu0 %v11265_v17  ;;  %v12141_v38 = vadd.f32 %v2275_v63, %v2263_v29  ;;  %v9617_v55 = vld [vmem:[%s15270_s5 + $0x4b4] sm:$0xf0]  ;;  %v7397_v61 = vor.u32 %v9673_v50, %v7396_v49  ;;  %v9709_v22 = vld [vmem:[%s15270_s5 + $0x79c] sm:$0xf]  ;;  %v6921_v36 = vor.u32 %v9549_v18, %v6918_v19 }
 0x1c4   :  { %2543 = vmatpush.bf16.msra.mxu2 %v6693_v41  ;;  %2565 = vmatpush.bf16.msrb.mxu0 %v7333_v46  ;;  %v7204_v41 = vld [vmem:[%s15270_s5 + $0x4d8] sm:$0xf]  ;;  %v7558_v23 = vld [vmem:[%s15270_s5 + $0x7b8] sm:$0xf0] }
 0x1c5   :  { %v7205_v48 = vor.u32 %v9625_v42, %v7204_v41  ;;  %v7364_v62 = vld [vmem:[%s15270_s5 + $0x618] sm:$0xf]  ;;  %v6694_v32 = vld [vmem:[%s15270_s5 + $0xf8] sm:$0xf0]  ;;  %v7561_v37 = vor.u32 %v9709_v22, %v7558_v23  ;;  %v7792_v22 = vld [vmem:[%s15272_s7 + $0x188] sm:$0xf] }
 0x1c6   :  { %2558 = vmatpush.bf16.msra.mxu3 %v6885_v54  ;;  %2580 = vmatpush.bf16.msrb.mxu1 %v7525_v57  ;;  %v12159_v46 = vpop.f32.mrf.mxu2  ;;  %v7172_v54 = vld [vmem:[%s15270_s5 + $0x498] sm:$0xf]  ;;  %v9541_v41 = vld [vmem:[%s15270_s5 + $0x25c] sm:$0xf]  ;;  %v9774_v23 = vld [vmem:[%s15272_s7 + $0x1a0] sm:$0xf0] }
 0x1c7   :  { %v7173_v1 = vor.u32 %v9617_v55, %v7172_v54  ;;  %v9665_v2 = vld [vmem:[%s15270_s5 + $0x634] sm:$0xf0]  ;;  %v6886_v42 = vld [vmem:[%s15270_s5 + $0x278] sm:$0xf0] }
 0x1c8   :  { %2544 = vmatpush.bf16.msra.mxu2 %v6661_v58  ;;  %2566 = vmatpush.bf16.msrb.mxu0 %v7301_v0  ;;  %v2264_v57 = vpop.f32.mrf.mxu0  ;;  %v2303_v58 = vpop.f32.mrf.mxu3  ;;  %v6985_v0 = vor.u32 %v9565_v51, %v6982_v53  ;;  %v7365_v13 = vor.u32 %v9665_v2, %v7364_v62  ;;  %v7108_v27 = vld [vmem:[%s15270_s5 + $0x418] sm:$0xf]  ;;  %v9645_v49 = vld [vmem:[%s15270_s5 + $0x59c] sm:$0xf]  ;;  %v6889_v51 = vor.u32 %v9541_v41, %v6886_v42 }
 0x1c9   :  { %v7302_v50 = vld [vmem:[%s15270_s5 + $0x5b8] sm:$0xf0] }
 0x1ca   :  { %2559 = vmatpush.bf16.msra.mxu3 %v6853_v7  ;;  %2581 = vmatpush.bf16.msrb.mxu1 %v7493_v8  ;;  %v12189_v63 = vpop.f32.mrf.mxu1  ;;  %v7590_v7 = vld [vmem:[%s15270_s5 + $0x7f8] sm:$0xf0]  ;;  %v7140_v8 = vld [vmem:[%s15270_s5 + $0x458] sm:$0xf]  ;;  %v7305_v62 = vor.u32 %v9645_v49, %v7302_v50 }
 0x1cb   :  { %v7593_v16 = vor.u32 %v9717_v6, %v7590_v7  ;;  %v6854_v57 = vld [vmem:[%s15270_s5 + $0x238] sm:$0xf0] }
 0x1cc   :  { %2545 = vmatpush.bf16.msra.mxu2 %v6629_v14  ;;  %2567 = vmatpush.bf16.msrb.mxu0 %v7269_v15  ;;  %v6953_v15 = vor.u32 %v9557_v4, %v6950_v3  ;;  %v9693_v58 = vld [vmem:[%s15270_s5 + $0x71c] sm:$0xf] }
 0x1cd   :  { %2560 = vmatmul.bf16.vlgmr.msra.gmra.mxu3 %v11160_v11  ;;  %v7494_v59 = vld [vmem:[%s15270_s5 + $0x738] sm:$0xf0] }
 0x1ce   :  { %2604 = vmatpush.bf16.msrb.mxu3 %v7081_v9  ;;  %2582 = vmatpush.bf16.msrb.mxu1 %v7461_v30  ;;  %v9609_v9 = vld [vmem:[%s15270_s5 + $0x474] sm:$0xf0]  ;;  %v2290_v14 = vpop.f32.mrf.mxu2  ;;  %v9477_v2 = vld [vmem:[%s15270_s5 + $0x5c] sm:$0xf] }
 0x1cf   :  { %v7141_v20 = vor.u32 %v9609_v9, %v7140_v8  ;;  %v9601_v30 = vld [vmem:[%s15270_s5 + $0x434] sm:$0xf0]  ;;  %v6630_v4 = vld [vmem:[%s15270_s5 + $0x78] sm:$0xf0]  ;;  %v7497_v8 = vor.u32 %v9693_v58, %v7494_v59  ;;  %v9760_v59 = vld [vmem:[%s15272_s7 + $0x130] sm:$0xf0] }
 0x1d0   :  { %2546 = vmatpush.bf16.msra.mxu2 %v6597_v33  ;;  %2568 = vmatpush.bf16.msrb.mxu0 %v7237_v34  ;;  %v12233_v28 = vpop.f32.mrf.mxu0  ;;  %v12235_v29 = vpop.f32.mrf.mxu3  ;;  %v9653_v33 = vld [vmem:[%s15270_s5 + $0x5dc] sm:$0xf]  ;;  %v7736_v58 = vld [vmem:[%s15272_s7 + $0x118] sm:$0xf] }
 0x1d1   :  { %v7334_v34 = vld [vmem:[%s15270_s5 + $0x5f8] sm:$0xf0] }
 0x1d2   :  { %2605 = vmatpush.bf16.msrb.mxu3 %v7049_v31  ;;  %2583 = vmatpush.bf16.msrb.mxu1 %v7429_v45  ;;  %v9493_v31 = vld [vmem:[%s15270_s5 + $0xdc] sm:$0xf]  ;;  %v2329_v35 = vpop.f32.mrf.mxu1  ;;  %v7337_v44 = vor.u32 %v9653_v33, %v7334_v34 }
 0x1d3   :  { %2547 = vmatmul.bf16.vlgmr.msra.gmra.mxu2 %v11181_v26  ;;  %v6697_v40 = vor.u32 %v9493_v31, %v6694_v32  ;;  %v7526_v45 = vld [vmem:[%s15270_s5 + $0x778] sm:$0xf0] }
 0x1d4   :  { %2591 = vmatpush.bf16.msrb.mxu2 %v6825_v39  ;;  %2569 = vmatpush.bf16.msrb.mxu0 %v7205_v48  ;;  %v7109_v39 = vor.u32 %v9601_v30, %v7108_v27  ;;  %v6662_v48 = vld [vmem:[%s15270_s5 + $0xb8] sm:$0xf0]  ;;  %v7529_v54 = vor.u32 %v9701_v43, %v7526_v45 }
 0x1d5   :  { %v9637_v3 = vld [vmem:[%s15270_s5 + $0x55c] sm:$0xf] }
 0x1d6   :  { %2606 = vmatpush.bf16.msrb.mxu3 %v7017_v47  ;;  %2584 = vmatpush.bf16.msrb.mxu1 %v7397_v61  ;;  %v9485_v47 = vld [vmem:[%s15270_s5 + $0x9c] sm:$0xf]  ;;  %v12280_v53 = vpop.f32.mrf.mxu2 }
 0x1d7   :  { %v6665_v55 = vor.u32 %v9485_v47, %v6662_v48  ;;  %v9685_v10 = vld [vmem:[%s15270_s5 + $0x6dc] sm:$0xf] }
 0x1d8   :  { %2592 = vmatpush.bf16.msrb.mxu2 %v6793_v52  ;;  %2570 = vmatpush.bf16.msrb.mxu0 %v7173_v1  ;;  %v9533_v52 = vld [vmem:[%s15270_s5 + $0x21c] sm:$0xf]  ;;  %v2316_v60 = vpop.f32.mrf.mxu0  ;;  %v2355_v61 = vpop.f32.mrf.mxu3  ;;  %v9830_v1 = vld [vmem:[%s15272_s7 + $0x360] sm:$0xf0] }
 0x1d9   :  { %v6857_v7 = vor.u32 %v9533_v52, %v6854_v57  ;;  %v7462_v12 = vld [vmem:[%s15270_s5 + $0x6f8] sm:$0xf0]  ;;  %v932_v60 = vperm.slane %v12017_v25, 1 }
 0x1da   :  { %2607 = vmatpush.bf16.msrb.mxu3 %v6985_v0  ;;  %2585 = vmatpush.bf16.msrb.mxu1 %v7365_v13  ;;  %v8016_v0 = vld [vmem:[%s15272_s7 + $0x348] sm:$0xf]  ;;  %v12310_v6 = vpop.f32.mrf.mxu1  ;;  %v6633_v13 = vor.u32 %v9477_v2, %v6630_v4  ;;  %v9469_v18 = vld [vmem:[%s15270_s5 + $0x1c] sm:$0xf]  ;;  %v7465_v30 = vor.u32 %v9685_v10, %v7462_v12  ;;  %v7708_v12 = vld [vmem:[%s15272_s7 + $0xe0] sm:$0xf] }
 0x1db   :  { %v8017_v9 = vor.u32 %v9830_v1, %v8016_v0  ;;  %v6598_v19 = vld [vmem:[%s15270_s5 + $0x38] sm:$0xf0]  ;;  %v7904_v4 = vld [vmem:[%s15272_s7 + $0x268] sm:$0xf] }
 0x1dc   :  { %2593 = vmatpush.bf16.msrb.mxu2 %v6761_v5  ;;  %2571 = vmatpush.bf16.msrb.mxu0 %v7141_v20  ;;  %v7270_v5 = vld [vmem:[%s15270_s5 + $0x578] sm:$0xf0]  ;;  %v6601_v32 = vor.u32 %v9469_v18, %v6598_v19  ;;  %v7876_v19 = vld [vmem:[%s15272_s7 + $0x230] sm:$0xf] }
 0x1dd   :  { %2586 = vmatmul.bf16.vlgmr.msrb.gmra.mxu1 %v11225_v56  ;;  %v7273_v14 = vor.u32 %v9637_v3, %v7270_v5  ;;  %v9629_v20 = vld [vmem:[%s15270_s5 + $0x51c] sm:$0xf]  ;;  %v7737_v5 = vor.u32 %v9760_v59, %v7736_v58 }
 0x1de   :  { %2608 = vmatpush.bf16.msrb.mxu3 %v6953_v15  ;;  %2630 = vmatpush.bf16.msra.mxu1 %v7593_v16  ;;  %v7988_v15 = vld [vmem:[%s15272_s7 + $0x310] sm:$0xf]  ;;  %v9823_v16 = vld [vmem:[%s15272_s7 + $0x328] sm:$0xf0]  ;;  %v2342_v27 = vpop.f32.mrf.mxu2  ;;  %v9677_v34 = vld [vmem:[%s15270_s5 + $0x69c] sm:$0xf] }
 0x1df   :  { %v7989_v31 = vor.u32 %v9823_v16, %v7988_v15  ;;  %v7430_v35 = vld [vmem:[%s15270_s5 + $0x6b8] sm:$0xf0]  ;;  %v9935_v27 = vld [vmem:[%s15272_s7 + $0x6a8] sm:$0xf0] }
 0x1e0   :  { %2594 = vmatpush.bf16.msrb.mxu2 %v6729_v21  ;;  %2572 = vmatpush.bf16.msrb.mxu0 %v7109_v39  ;;  %v7238_v21 = vld [vmem:[%s15270_s5 + $0x538] sm:$0xf0]  ;;  %v7793_v39 = vor.u32 %v9774_v23, %v7792_v22  ;;  %v7433_v45 = vor.u32 %v9677_v34, %v7430_v35  ;;  %v8240_v35 = vld [vmem:[%s15272_s7 + $0x508] sm:$0xf] }
 0x1e1   :  { %v7241_v33 = vor.u32 %v9629_v20, %v7238_v21  ;;  %v9621_v41 = vld [vmem:[%s15270_s5 + $0x4dc] sm:$0xf]  ;;  %v9795_v20 = vld [vmem:[%s15272_s7 + $0x248] sm:$0xf0] }
 0x1e2   :  { %2609 = vmatpush.bf16.msrb.mxu3 %v6921_v36  ;;  %2631 = vmatpush.bf16.msra.mxu1 %v7561_v37  ;;  %v7960_v36 = vld [vmem:[%s15272_s7 + $0x2d8] sm:$0xf]  ;;  %v12352_v37 = vpop.f32.mrf.mxu0  ;;  %v7206_v42 = vld [vmem:[%s15270_s5 + $0x4f8] sm:$0xf0]  ;;  %v2381_v43 = vpop.f32.mrf.mxu1 }
 0x1e3   :  { %2573 = vmatmul.bf16.vlgmr.msrb.gmra.mxu0 %v11265_v17  ;;  %v7209_v48 = vor.u32 %v9621_v41, %v7206_v42  ;;  %v9669_v49 = vld [vmem:[%s15270_s5 + $0x65c] sm:$0xf] }
 0x1e4   :  { %2595 = vmatpush.bf16.msrb.mxu2 %v6697_v40  ;;  %2617 = vmatpush.bf16.msra.mxu0 %v7337_v44  ;;  %v9816_v40 = vld [vmem:[%s15272_s7 + $0x2f0] sm:$0xf0]  ;;  %v9767_v44 = vld [vmem:[%s15272_s7 + $0x168] sm:$0xf0]  ;;  %v7398_v50 = vld [vmem:[%s15270_s5 + $0x678] sm:$0xf0] }
 0x1e5   :  { %v7961_v47 = vor.u32 %v9816_v40, %v7960_v36  ;;  %v7174_v57 = vld [vmem:[%s15270_s5 + $0x4b8] sm:$0xf0]  ;;  %v7401_v61 = vor.u32 %v9669_v49, %v7398_v50  ;;  %v9886_v36 = vld [vmem:[%s15272_s7 + $0x520] sm:$0xf0]  ;;  %v8212_v50 = vld [vmem:[%s15272_s7 + $0x4d0] sm:$0xf] }
 0x1e6   :  { %2610 = vmatpush.bf16.msrb.mxu3 %v6889_v51  ;;  %2632 = vmatpush.bf16.msra.mxu1 %v7529_v54  ;;  %v7932_v51 = vld [vmem:[%s15272_s7 + $0x2a0] sm:$0xf]  ;;  %v9809_v54 = vld [vmem:[%s15272_s7 + $0x2b8] sm:$0xf0] }
 0x1e7   :  { %v7933_v0 = vor.u32 %v9809_v54, %v7932_v51  ;;  %v7366_v2 = vld [vmem:[%s15270_s5 + $0x638] sm:$0xf0] }
 0x1e8   :  { %2596 = vmatpush.bf16.msrb.mxu2 %v6665_v55  ;;  %2618 = vmatpush.bf16.msra.mxu0 %v7305_v62  ;;  %v9613_v55 = vld [vmem:[%s15270_s5 + $0x49c] sm:$0xf] }
 0x1e9   :  { %v9661_v62 = vld [vmem:[%s15270_s5 + $0x61c] sm:$0xf]  ;;  %v7177_v1 = vor.u32 %v9613_v55, %v7174_v57 }
 0x1ea   :  { %2611 = vmatpush.bf16.msrb.mxu3 %v6857_v7  ;;  %2633 = vmatpush.bf16.msra.mxu1 %v7497_v8  ;;  %v2368_v3 = vpop.f32.mrf.mxu0  ;;  %v8464_v7 = vld [vmem:[%s15272_s7 + $0x6c8] sm:$0xf]  ;;  %v9942_v8 = vld [vmem:[%s15272_s7 + $0x6e0] sm:$0xf0]  ;;  %v7142_v10 = vld [vmem:[%s15270_s5 + $0x478] sm:$0xf0]  ;;  %v7369_v15 = vor.u32 %v9661_v62, %v7366_v2 }
 0x1eb   :  { %v8465_v18 = vor.u32 %v9942_v8, %v8464_v7  ;;  %v9781_v59 = vld [vmem:[%s15272_s7 + $0x1d8] sm:$0xf0]  ;;  %v10054_v3 = vld [vmem:[%s15272_s7 + $0xa60] sm:$0xf0] }
 0x1ec   :  { %2597 = vmatpush.bf16.msrb.mxu2 %v6633_v13  ;;  %2619 = vmatpush.bf16.msra.mxu0 %v7273_v14  ;;  %v9753_v13 = vld [vmem:[%s15272_s7 + $0xf8] sm:$0xf0]  ;;  %v2289_v14 = vadd.f32 %v12159_v46, %v932_v60  ;;  %v8436_v46 = vld [vmem:[%s15272_s7 + $0x690] sm:$0xf]  ;;  %v8380_v60 = vld [vmem:[%s15272_s7 + $0x620] sm:$0xf] }
 0x1ed   :  { %2612 = vmatmul.bf16.vlgmr.msrb.gmra.mxu3 %v11160_v11  ;;  %v7764_v11 = vld [vmem:[%s15272_s7 + $0x150] sm:$0xf]  ;;  %v7709_v23 = vor.u32 %v9753_v13, %v7708_v12  ;;  %v8437_v40 = vor.u32 %v9935_v27, %v8436_v46  ;;  %v8352_v13 = vld [vmem:[%s15272_s7 + $0x5e8] sm:$0xf]  ;;  %v9998_v46 = vld [vmem:[%s15272_s7 + $0x8a0] sm:$0xf0] }
 0x1ee   :  { %5504 = vmatpush.bf16.msra.mxu3 %v8017_v9  ;;  %2634 = vmatpush.bf16.msra.mxu1 %v7465_v30  ;;  %v7765_v52 = vor.u32 %v9767_v44, %v7764_v11  ;;  %v9605_v9 = vld [vmem:[%s15270_s5 + $0x45c] sm:$0xf]  ;;  %v2302_v34 = vadd.f32 %v12124_v24, %v2289_v14  ;;  %v7848_v24 = vld [vmem:[%s15272_s7 + $0x1f8] sm:$0xf]  ;;  %v9788_v11 = vld [vmem:[%s15272_s7 + $0x210] sm:$0xf0] }
 0x1ef   :  { %v7145_v22 = vor.u32 %v9605_v9, %v7142_v10  ;;  %v9597_v30 = vld [vmem:[%s15270_s5 + $0x41c] sm:$0xf]  ;;  %v8408_v44 = vld [vmem:[%s15272_s7 + $0x658] sm:$0xf]  ;;  %v7849_v51 = vor.u32 %v9788_v11, %v7848_v24  ;;  %v933_v9 = vperm.slane %v12017_v25, 2 }
 0x1f0   :  { %2598 = vmatpush.bf16.msrb.mxu2 %v6601_v32  ;;  %2620 = vmatpush.bf16.msra.mxu0 %v7241_v33  ;;  %v12432_v21 = vpop.f32.mrf.mxu3  ;;  %v7680_v32 = vld [vmem:[%s15272_s7 + $0xa8] sm:$0xf]  ;;  %v9746_v33 = vld [vmem:[%s15272_s7 + $0xc0] sm:$0xf0]  ;;  %v2315_v41 = vadd.f32 %v12233_v28, %v2302_v34  ;;  %v9928_v28 = vld [vmem:[%s15272_s7 + $0x670] sm:$0xf0] }
 0x1f1   :  { %v7681_v43 = vor.u32 %v9746_v33, %v7680_v32  ;;  %v8409_v55 = vor.u32 %v9928_v28, %v8408_v44  ;;  %v9914_v14 = vld [vmem:[%s15272_s7 + $0x600] sm:$0xf0]  ;;  %v2643_v32 = vmax.f32 %v12141_v38, 0.0  ;;  %v8128_v38 = vld [vmem:[%s15272_s7 + $0x428] sm:$0xf] }
 0x1f2   :  { %5505 = vmatpush.bf16.msra.mxu3 %v7989_v31  ;;  %2635 = vmatpush.bf16.msra.mxu1 %v7433_v45  ;;  %v7110_v31 = vld [vmem:[%s15270_s5 + $0x438] sm:$0xf0]  ;;  %v8241_v45 = vor.u32 %v9886_v36, %v8240_v35  ;;  %v2328_v54 = vadd.f32 %v12189_v63, %v2315_v41  ;;  %v7624_v63 = vld [vmem:[%s15272_s7 + $0x38] sm:$0xf]  ;;  %v8353_v34 = vor.u32 %v9914_v14, %v8352_v13  ;;  %v8324_v41 = vld [vmem:[%s15272_s7 + $0x5b0] sm:$0xf] }
 0x1f3   :  { %2599 = vmatmul.bf16.vlgmr.msrb.gmra.mxu2 %v11181_v26  ;;  %v9802_v26 = vld [vmem:[%s15272_s7 + $0x280] sm:$0xf0]  ;;  %v7113_v42 = vor.u32 %v9597_v30, %v7110_v31  ;;  %v8884_v30 = vld [vmem:[%s15272_s7 + $0xa10] sm:$0xf]  ;;  %v10047_v31 = vld [vmem:[%s15272_s7 + $0xa28] sm:$0xf0] }
 0x1f4   :  { %5491 = vmatpush.bf16.msra.mxu2 %v7793_v39  ;;  %2621 = vmatpush.bf16.msra.mxu0 %v7209_v48  ;;  %v7905_v16 = vor.u32 %v9802_v26, %v7904_v4  ;;  %v7877_v39 = vor.u32 %v9795_v20, %v7876_v19  ;;  %v9739_v48 = vld [vmem:[%s15272_s7 + $0x88] sm:$0xf0]  ;;  %v9872_v4 = vld [vmem:[%s15272_s7 + $0x4b0] sm:$0xf0]  ;;  %v8912_v26 = vld [vmem:[%s15272_s7 + $0xa48] sm:$0xf]  ;;  %v8885_v28 = vor.u32 %v10047_v31, %v8884_v30 }
 0x1f5   :  { %v2644_v8 = vmax.f32 %v2328_v54, 0.0  ;;  %v8913_v19 = vor.u32 %v10054_v3, %v8912_v26  ;;  %v9858_v11 = vld [vmem:[%s15272_s7 + $0x440] sm:$0xf0]  ;;  %v8660_v44 = vld [vmem:[%s15272_s7 + $0x850] sm:$0xf] }
 0x1f6   :  { %5506 = vmatpush.bf16.msra.mxu3 %v7961_v47  ;;  %2636 = vmatpush.bf16.msra.mxu1 %v7401_v61  ;;  %v7652_v47 = vld [vmem:[%s15272_s7 + $0x70] sm:$0xf]  ;;  %v2392_v49 = vpop.f32.mrf.mxu2  ;;  %v9921_v61 = vld [vmem:[%s15272_s7 + $0x638] sm:$0xf0]  ;;  %v9900_v54 = vld [vmem:[%s15272_s7 + $0x590] sm:$0xf0] }
 0x1f7   :  { %v7653_v58 = vor.u32 %v9739_v48, %v7652_v47  ;;  %v8381_v10 = vor.u32 %v9921_v61, %v8380_v60  ;;  %v12552_v33 = vpack.c.bf16 %v2644_v8, %v2644_v8  ;;  %v10040_v48 = vld [vmem:[%s15272_s7 + $0x9f0] sm:$0xf0]  ;;  %v8604_v8 = vld [vmem:[%s15272_s7 + $0x7e0] sm:$0xf]  ;;  %v10026_v13 = vld [vmem:[%s15272_s7 + $0x980] sm:$0xf0] }
 0x1f8   :  { %5492 = vmatpush.bf16.msra.mxu2 %v7765_v52  ;;  %2622 = vmatpush.bf16.msra.mxu0 %v7177_v1  ;;  %v7820_v52 = vld [vmem:[%s15272_s7 + $0x1c0] sm:$0xf]  ;;  %v2407_v57 = vpop.f32.mrf.mxu3  ;;  %v8184_v1 = vld [vmem:[%s15272_s7 + $0x498] sm:$0xf]  ;;  %v9984_v60 = vld [vmem:[%s15272_s7 + $0x830] sm:$0xf0] }
 0x1f9   :  { %v7821_v7 = vor.u32 %v9781_v59, %v7820_v52  ;;  %v8632_v59 = vld [vmem:[%s15272_s7 + $0x818] sm:$0xf]  ;;  %v10019_v30 = vld [vmem:[%s15272_s7 + $0x948] sm:$0xf0]  ;;  %v9136_v31 = vld [vmem:[%s15272_s7 + $0xc08] sm:$0xf] }
 0x1fa   :  { %5507 = vmatpush.bf16.msra.mxu3 %v7933_v0  ;;  %2637 = vmatpush.bf16.msra.mxu1 %v7369_v15  ;;  %v9732_v0 = vld [vmem:[%s15272_s7 + $0x50] sm:$0xf0]  ;;  %v12507_v2 = vpop.f32.mrf.mxu1  ;;  %v8185_v15 = vor.u32 %v9872_v4, %v8184_v1  ;;  %v8633_v3 = vor.u32 %v9984_v60, %v8632_v59  ;;  %v8018_v59 = vld [vmem:[%s15272_s7 + $0x364] sm:$0xf0] }
 0x1fb   :  { %v7625_v12 = vor.u32 %v9732_v0, %v7624_v63 }
 0x1fc   :  { %5493 = vmatpush.bf16.msra.mxu2 %v7737_v5  ;;  %2623 = vmatpush.bf16.msra.mxu0 %v7145_v22  ;;  %v934_v5 = vperm.slane %v12017_v25, 3  ;;  %v9865_v22 = vld [vmem:[%s15272_s7 + $0x478] sm:$0xf0] }
 0x1fd   :  { %2638 = vmatmul.bf16.vlgmr.msra.gmra.mxu1 %v11225_v56  ;;  %v9879_v56 = vld [vmem:[%s15272_s7 + $0x4e8] sm:$0xf0] }
 0x1fe   :  { %5508 = vmatpush.bf16.msra.mxu3 %v7905_v16  ;;  %5530 = vmatpush.bf16.msrb.mxu1 %v8465_v18  ;;  %v8213_v62 = vor.u32 %v9879_v56, %v8212_v50  ;;  %v9725_v16 = vld [vmem:[%s15272_s7 + $0x18] sm:$0xf0]  ;;  %v8156_v18 = vld [vmem:[%s15272_s7 + $0x460] sm:$0xf]  ;;  %v2394_v20 = vpop.f32.mrf.mxu2  ;;  %v2393_v27 = vadd.f32 %v2392_v49, %v934_v5  ;;  %v12581_v49 = vpack.c.bf16 %v2643_v32, %v2643_v32  ;;  %v10110_v32 = vld [vmem:[%s15272_s7 + $0xc20] sm:$0xf0] }
 0x1ff   :  { %v8268_v5 = vld [vmem:[%s15272_s7 + $0x540] sm:$0xf] }
 0x200   :  { %5494 = vmatpush.bf16.msra.mxu2 %v7709_v23  ;;  %2624 = vmatpush.bf16.msra.mxu0 %v7113_v42  ;;  %v8688_v23 = vld [vmem:[%s15272_s7 + $0x888] sm:$0xf]  ;;  %v2418_v35 = vpop.f32.mrf.mxu0  ;;  %v9907_v42 = vld [vmem:[%s15272_s7 + $0x5c8] sm:$0xf0]  ;;  %v2406_v47 = vadd.f32 %v12432_v21, %v2393_v27  ;;  %v8296_v21 = vld [vmem:[%s15272_s7 + $0x578] sm:$0xf] }
 0x201   :  { %v8325_v50 = vor.u32 %v9907_v42, %v8324_v41  ;;  %v8297_v0 = vor.u32 %v9900_v54, %v8296_v21  ;;  %v8044_v20 = vld [vmem:[%s15272_s7 + $0x380] sm:$0xf]  ;;  %v8772_v27 = vld [vmem:[%s15272_s7 + $0x930] sm:$0xf]  ;;  %v9963_v41 = vld [vmem:[%s15272_s7 + $0x788] sm:$0xf0] }
 0x202   :  { %5509 = vmatpush.bf16.msra.mxu3 %v7877_v39  ;;  %5531 = vmatpush.bf16.msrb.mxu1 %v8437_v40  ;;  %v8157_v39 = vor.u32 %v9865_v22, %v8156_v18  ;;  %v8689_v40 = vor.u32 %v9998_v46, %v8688_v23  ;;  %v2433_v24 = vpop.f32.mrf.mxu1  ;;  %v2419_v56 = vadd.f32 %v2418_v35, %v2406_v47  ;;  %v9837_v22 = vld [vmem:[%s15272_s7 + $0x398] sm:$0xf0]  ;;  %v8576_v23 = vld [vmem:[%s15272_s7 + $0x7a8] sm:$0xf]  ;;  %v9080_v54 = vld [vmem:[%s15272_s7 + $0xb98] sm:$0xf] }
 0x203   :  { %2625 = vmatmul.bf16.vlgmr.msra.gmra.mxu0 %v11265_v17  ;;  %v7596_v17 = vld [vmem:[%s15272_s7] sm:$0xf]  ;;  %v8773_v42 = vor.u32 %v10019_v30, %v8772_v27  ;;  %v10005_v21 = vld [vmem:[%s15272_s7 + $0x8d8] sm:$0xf0]  ;;  %v7738_v30 = vld [vmem:[%s15272_s7 + $0x134] sm:$0xf0] }
 0x204   :  { %5495 = vmatpush.bf16.msra.mxu2 %v7681_v43  ;;  %5517 = vmatpush.bf16.msrb.mxu0 %v8241_v45  ;;  %v7597_v36 = vor.u32 %v9725_v16, %v7596_v17  ;;  %v2341_v43 = vadd.f32 %v12280_v53, %v933_v9  ;;  %v9991_v45 = vld [vmem:[%s15272_s7 + $0x868] sm:$0xf0]  ;;  %v8856_v53 = vld [vmem:[%s15272_s7 + $0x9d8] sm:$0xf]  ;;  %v2432_v4 = vadd.f32 %v12507_v2, %v2419_v56  ;;  %v9844_v2 = vld [vmem:[%s15272_s7 + $0x3d0] sm:$0xf0] }
 0x205   :  { %v8661_v52 = vor.u32 %v9991_v45, %v8660_v44  ;;  %v8857_v61 = vor.u32 %v10040_v48, %v8856_v53  ;;  %v9977_v9 = vld [vmem:[%s15272_s7 + $0x7f8] sm:$0xf0]  ;;  %v9108_v44 = vld [vmem:[%s15272_s7 + $0xbd0] sm:$0xf]  ;;  %v10103_v45 = vld [vmem:[%s15272_s7 + $0xbe8] sm:$0xf0] }
 0x206   :  { %5510 = vmatpush.bf16.msra.mxu3 %v7849_v51  ;;  %5532 = vmatpush.bf16.msrb.mxu1 %v8409_v55  ;;  %v8129_v51 = vor.u32 %v9858_v11, %v8128_v38  ;;  %v8100_v55 = vld [vmem:[%s15272_s7 + $0x3f0] sm:$0xf]  ;;  %v2354_v57 = vadd.f32 %v12235_v29, %v2341_v43  ;;  %v8828_v29 = vld [vmem:[%s15272_s7 + $0x9a0] sm:$0xf]  ;;  %v2646_v17 = vmax.f32 %v2432_v4, 0.0  ;;  %v9137_v43 = vor.u32 %v10110_v32, %v9136_v31 }
 0x207   :  { %v8744_v38 = vld [vmem:[%s15272_s7 + $0x8f8] sm:$0xf]  ;;  %v10012_v11 = vld [vmem:[%s15272_s7 + $0x910] sm:$0xf0]  ;;  %v9757_v27 = vld [vmem:[%s15272_s7 + $0x11c] sm:$0xf] }
 0x208   :  { %5496 = vmatpush.bf16.msra.mxu2 %v7653_v58  ;;  %5518 = vmatpush.bf16.msrb.mxu0 %v8213_v62  ;;  %v9851_v58 = vld [vmem:[%s15272_s7 + $0x408] sm:$0xf0]  ;;  %v10033_v62 = vld [vmem:[%s15272_s7 + $0x9b8] sm:$0xf0]  ;;  %v2367_v63 = vadd.f32 %v12352_v37, %v2354_v57  ;;  %v2420_v1 = vpop.f32.mrf.mxu0  ;;  %v8072_v37 = vld [vmem:[%s15272_s7 + $0x3b8] sm:$0xf]  ;;  %v12662_v35 = vpack.c.bf16 %v2646_v17, %v2646_v17 }
 0x209   :  { %v8101_v26 = vor.u32 %v9851_v58, %v8100_v55  ;;  %v8073_v18 = vor.u32 %v9844_v2, %v8072_v37  ;;  %v9956_v56 = vld [vmem:[%s15272_s7 + $0x750] sm:$0xf0]  ;;  %v9827_v58 = vld [vmem:[%s15272_s7 + $0x34c] sm:$0xf]  ;;  %v7990_v2 = vld [vmem:[%s15272_s7 + $0x32c] sm:$0xf0] }
 0x20a   :  { %5511 = vmatpush.bf16.msra.mxu3 %v7821_v7  ;;  %5533 = vmatpush.bf16.msrb.mxu1 %v8381_v10  ;;  %v9893_v7 = vld [vmem:[%s15272_s7 + $0x558] sm:$0xf0]  ;;  %v8829_v10 = vor.u32 %v10033_v62, %v8828_v29  ;;  %v10096_v55 = vld [vmem:[%s15272_s7 + $0xbb0] sm:$0xf0]  ;;  %v8492_v29 = vld [vmem:[%s15272_s7 + $0x700] sm:$0xf] }
 0x20b   :  { %v8269_v14 = vor.u32 %v9893_v7, %v8268_v5  ;;  %v9949_v62 = vld [vmem:[%s15272_s7 + $0x718] sm:$0xf0]  ;;  %v9081_v1 = vor.u32 %v10096_v55, %v9080_v54  ;;  %v9052_v5 = vld [vmem:[%s15272_s7 + $0xb60] sm:$0xf]  ;;  %v9820_v37 = vld [vmem:[%s15272_s7 + $0x314] sm:$0xf] }
 0x20c   :  { %5497 = vmatpush.bf16.msra.mxu2 %v7625_v12  ;;  %5519 = vmatpush.bf16.msrb.mxu0 %v8185_v15  ;;  %v8800_v12 = vld [vmem:[%s15272_s7 + $0x968] sm:$0xf]  ;;  %v2380_v15 = vadd.f32 %v12310_v6, %v2367_v63  ;;  %v9970_v6 = vld [vmem:[%s15272_s7 + $0x7c0] sm:$0xf0]  ;;  %v9771_v63 = vld [vmem:[%s15272_s7 + $0x18c] sm:$0xf] }
 0x20d   :  { %5512 = vmatmul.bf16.vlgmr.msra.gmra.mxu3 %v12552_v33  ;;  %v8801_v46 = vor.u32 %v10026_v13, %v8800_v12  ;;  %v10089_v7 = vld [vmem:[%s15272_s7 + $0xb78] sm:$0xf0]  ;;  %v9764_v13 = vld [vmem:[%s15272_s7 + $0x154] sm:$0xf]  ;;  %v7766_v17 = vld [vmem:[%s15272_s7 + $0x16c] sm:$0xf0] }
 0x20e   :  { %5556 = vmatpush.bf16.msrb.mxu3 %v8913_v19  ;;  %5534 = vmatpush.bf16.msrb.mxu1 %v8353_v34  ;;  %v8605_v19 = vor.u32 %v9977_v9, %v8604_v8  ;;  %v2645_v34 = vmax.f32 %v2380_v15, 0.0  ;;  %v8493_v9 = vor.u32 %v9949_v62, %v8492_v29  ;;  %v10159_v54 = vld [vmem:[%s15272_s7 + $0xda8] sm:$0xf0] }
 0x210   :  { %5498 = vmatpush.bf16.msra.mxu2 %v7597_v36  ;;  %5520 = vmatpush.bf16.msrb.mxu0 %v8157_v39  ;;  %v12636_v16 = vpop.f32.mrf.mxu3  ;;  %v8045_v36 = vor.u32 %v9837_v22, %v8044_v20  ;;  %v8577_v39 = vor.u32 %v9970_v6, %v8576_v23  ;;  %v12684_v48 = vpack.c.bf16 %v2645_v34, %v2645_v34  ;;  %v9813_v22 = vld [vmem:[%s15272_s7 + $0x2dc] sm:$0xf]  ;;  %v7962_v23 = vld [vmem:[%s15272_s7 + $0x2f4] sm:$0xf0] }
 0x211   :  { %v7965_v34 = vor.u32 %v9813_v22, %v7962_v23  ;;  %v9729_v23 = vld [vmem:[%s15272_s7 + $0x3c] sm:$0xf] }
 0x212   :  { %5557 = vmatpush.bf16.msrb.mxu3 %v8885_v28  ;;  %5535 = vmatpush.bf16.msrb.mxu1 %v8325_v50  ;;  %v935_v28 = vperm.slane %v12017_v25, 4  ;;  %v8520_v50 = vld [vmem:[%s15272_s7 + $0x738] sm:$0xf]  ;;  %v9109_v25 = vor.u32 %v10103_v45, %v9108_v44  ;;  %v9750_v44 = vld [vmem:[%s15272_s7 + $0xe4] sm:$0xf] }
 0x213   :  { %5499 = vmatmul.bf16.vlgmr.msra.gmra.mxu2 %v12581_v49 }
 0x214   :  { %5543 = vmatpush.bf16.msrb.mxu2 %v8689_v40  ;;  %5521 = vmatpush.bf16.msrb.mxu0 %v8129_v51  ;;  %v8548_v40 = vld [vmem:[%s15272_s7 + $0x770] sm:$0xf]  ;;  %v8745_v51 = vor.u32 %v10012_v11, %v8744_v38  ;;  %v9360_v38 = vld [vmem:[%s15272_s7 + $0xdc8] sm:$0xf]  ;;  %v7741_v11 = vor.u32 %v9757_v27, %v7738_v30 }
 0x215   :  { %v8549_v53 = vor.u32 %v9963_v41, %v8548_v40  ;;  %v9806_v40 = vld [vmem:[%s15272_s7 + $0x2a4] sm:$0xf]  ;;  %v7934_v41 = vld [vmem:[%s15272_s7 + $0x2bc] sm:$0xf0] }
 0x216   :  { %5558 = vmatpush.bf16.msrb.mxu3 %v8857_v61  ;;  %5536 = vmatpush.bf16.msrb.mxu1 %v8297_v0  ;;  %v2444_v24 = vpop.f32.mrf.mxu2  ;;  %v8521_v61 = vor.u32 %v9956_v56, %v8520_v50  ;;  %v8968_v50 = vld [vmem:[%s15272_s7 + $0xab8] sm:$0xf]  ;;  %v10068_v56 = vld [vmem:[%s15272_s7 + $0xad0] sm:$0xf0] }
 0x217   :  { %v2445_v60 = vadd.f32 %v2444_v24, %v935_v28 }
 0x218   :  { %5544 = vmatpush.bf16.msrb.mxu2 %v8661_v52  ;;  %5522 = vmatpush.bf16.msrb.mxu0 %v8101_v26  ;;  %v2459_v47 = vpop.f32.mrf.mxu3  ;;  %v8716_v52 = vld [vmem:[%s15272_s7 + $0x8c0] sm:$0xf]  ;;  %v7794_v26 = vld [vmem:[%s15272_s7 + $0x1a4] sm:$0xf0] }
 0x219   :  { %v8717_v0 = vor.u32 %v10005_v21, %v8716_v52  ;;  %v2458_v8 = vadd.f32 %v12636_v16, %v2445_v60  ;;  %v7797_v12 = vor.u32 %v9771_v63, %v7794_v26  ;;  %v9024_v16 = vld [vmem:[%s15272_s7 + $0xb28] sm:$0xf]  ;;  %v7710_v47 = vld [vmem:[%s15272_s7 + $0xfc] sm:$0xf0]  ;;  %v9332_v21 = vld [vmem:[%s15272_s7 + $0xd90] sm:$0xf]  ;;  %v8969_v60 = vor.u32 %v10068_v56, %v8968_v50 }
 0x21a   :  { %5559 = vmatpush.bf16.msrb.mxu3 %v8829_v10  ;;  %5537 = vmatpush.bf16.msrb.mxu1 %v8269_v14  ;;  %v2483_v57 = vpop.f32.mrf.mxu1  ;;  %v9053_v14 = vor.u32 %v10089_v7, %v9052_v5  ;;  %v7906_v52 = vld [vmem:[%s15272_s7 + $0x284] sm:$0xf0]  ;;  %v7713_v55 = vor.u32 %v9750_v44, %v7710_v47  ;;  %v8940_v63 = vld [vmem:[%s15272_s7 + $0xa80] sm:$0xf]  ;;  %v9722_v44 = vld [vmem:[%s15272_s7 + $0x4] sm:$0xf] }
 0x21b   :  { %v8242_v26 = vld [vmem:[%s15272_s7 + $0x524] sm:$0xf0]  ;;  %v9862_v56 = vld [vmem:[%s15272_s7 + $0x464] sm:$0xf] }
 0x21c   :  { %5545 = vmatpush.bf16.msrb.mxu2 %v8633_v3  ;;  %5523 = vmatpush.bf16.msrb.mxu0 %v8073_v18  ;;  %v8021_v3 = vor.u32 %v9827_v58, %v8018_v59  ;;  %v7993_v18 = vor.u32 %v9820_v37, %v7990_v2  ;;  %v9792_v58 = vld [vmem:[%s15272_s7 + $0x234] sm:$0xf]  ;;  %v7878_v59 = vld [vmem:[%s15272_s7 + $0x24c] sm:$0xf0]  ;;  %v8690_v50 = vld [vmem:[%s15272_s7 + $0x8a4] sm:$0xf0] }
 0x21d   :  { %5538 = vmatmul.bf16.vlgmr.msrb.gmra.mxu1 %v12662_v35  ;;  %v9736_v2 = vld [vmem:[%s15272_s7 + $0x74] sm:$0xf] }
 0x21e   :  { %5560 = vmatpush.bf16.msrb.mxu3 %v8801_v46  ;;  %v2446_v4 = vpop.f32.mrf.mxu2  ;;  %v7769_v46 = vor.u32 %v9764_v13, %v7766_v17  ;;  %v7850_v13 = vld [vmem:[%s15272_s7 + $0x214] sm:$0xf0] }
 0x21f   :  { %v9883_v4 = vld [vmem:[%s15272_s7 + $0x50c] sm:$0xf] }
 0x220   :  { %5546 = vmatpush.bf16.msrb.mxu2 %v8605_v19  ;;  %5524 = vmatpush.bf16.msrb.mxu0 %v8045_v36  ;;  %v2470_v10 = vpop.f32.mrf.mxu0  ;;  %v10082_v19 = vld [vmem:[%s15272_s7 + $0xb40] sm:$0xf0]  ;;  %v8996_v36 = vld [vmem:[%s15272_s7 + $0xaf0] sm:$0xf] }
 0x221   :  { %v2471_v15 = vadd.f32 %v2470_v10, %v2458_v8  ;;  %v9025_v31 = vor.u32 %v10082_v19, %v9024_v16  ;;  %v7654_v8 = vld [vmem:[%s15272_s7 + $0x8c] sm:$0xf0]  ;;  %v9785_v10 = vld [vmem:[%s15272_s7 + $0x1fc] sm:$0xf]  ;;  %v12864_v19 = vld [vmem:[%s15271_s6] sm:$0xff] }
 0x222   :  { %5561 = vmatpush.bf16.msrb.mxu3 %v8773_v42  ;;  %v2485_v20 = vpop.f32.mrf.mxu1  ;;  %v10145_v16 = vld [vmem:[%s15272_s7 + $0xd38] sm:$0xf0]  ;;  %v7657_v22 = vor.u32 %v9736_v2, %v7654_v8  ;;  %v7853_v30 = vor.u32 %v9785_v10, %v7850_v13  ;;  %v8914_v2 = vld [vmem:[%s15272_s7 + $0xa64] sm:$0xf0]  ;;  %v8634_v10 = vld [vmem:[%s15272_s7 + $0x834] sm:$0xf0] }
 0x223   :  { %5525 = vmatmul.bf16.vlgmr.msrb.gmra.mxu0 %v12684_v48  ;;  %v2484_v6 = vadd.f32 %v2483_v57, %v2471_v15  ;;  %v7682_v57 = vld [vmem:[%s15272_s7 + $0xc4] sm:$0xf0]  ;;  %v8214_v15 = vld [vmem:[%s15272_s7 + $0x4ec] sm:$0xf0]  ;;  %v936_v20 = vperm.slane %v12864_v19, 5 }
 0x224   :  { %5547 = vmatpush.bf16.msrb.mxu2 %v8577_v39  ;;  %5569 = vmatpush.bf16.msra.mxu0 %v9137_v43  ;;  %v10075_v39 = vld [vmem:[%s15272_s7 + $0xb08] sm:$0xf0]  ;;  %v10166_v43 = vld [vmem:[%s15272_s7 + $0xde0] sm:$0xf0]  ;;  %v9981_v8 = vld [vmem:[%s15272_s7 + $0x81c] sm:$0xf] }
 0x225   :  { %v2647_v32 = vmax.f32 %v2484_v6, 0.0  ;;  %v8997_v45 = vor.u32 %v10075_v39, %v8996_v36  ;;  %v9361_v28 = vor.u32 %v10166_v43, %v9360_v38  ;;  %v7626_v6 = vld [vmem:[%s15272_s7 + $0x54] sm:$0xf0]  ;;  %v9869_v36 = vld [vmem:[%s15272_s7 + $0x49c] sm:$0xf] }
 0x226   :  { %5562 = vmatpush.bf16.msrb.mxu3 %v8745_v51  ;;  %v9799_v51 = vld [vmem:[%s15272_s7 + $0x26c] sm:$0xf]  ;;  %v8186_v39 = vld [vmem:[%s15272_s7 + $0x4b4] sm:$0xf0]  ;;  %v8102_v13 = vld [vmem:[%s15272_s7 + $0x40c] sm:$0xf0] }
 0x227   :  { %v12772_v42 = vpack.c.bf16 %v2647_v32, %v2647_v32  ;;  %5582 = vmatpush.bf16.msra.mxu1 %v9361_v28  ;;  %v7909_v62 = vor.u32 %v9799_v51, %v7906_v52  ;;  %v7822_v32 = vld [vmem:[%s15272_s7 + $0x1dc] sm:$0xf0]  ;;  %v9995_v28 = vld [vmem:[%s15272_s7 + $0x88c] sm:$0xf] }
 0x228   :  { %5548 = vmatpush.bf16.msrb.mxu2 %v8549_v53  ;;  %5570 = vmatpush.bf16.msra.mxu0 %v9109_v25  ;;  %v2472_v24 = vpop.f32.mrf.mxu0  ;;  %v7937_v53 = vor.u32 %v9806_v40, %v7934_v41  ;;  %v9743_v25 = vld [vmem:[%s15272_s7 + $0xac] sm:$0xf]  ;;  %v9248_v40 = vld [vmem:[%s15272_s7 + $0xce8] sm:$0xf]  ;;  %v10138_v41 = vld [vmem:[%s15272_s7 + $0xd00] sm:$0xf0] }
 0x229   :  { %v7685_v7 = vor.u32 %v9743_v25, %v7682_v57  ;;  %v9249_v38 = vor.u32 %v10138_v41, %v9248_v40  ;;  %v7629_v24 = vor.u32 %v9729_v23, %v7626_v6  ;;  %v8158_v51 = vld [vmem:[%s15272_s7 + $0x47c] sm:$0xf0]  ;;  %v9220_v25 = vld [vmem:[%s15272_s7 + $0xcb0] sm:$0xf]  ;;  %v8637_v6 = vor.u32 %v9981_v8, %v8634_v10  ;;  %v8354_v10 = vld [vmem:[%s15272_s7 + $0x604] sm:$0xf0] }
 0x22a   :  { %5563 = vmatpush.bf16.msrb.mxu3 %v8717_v0  ;;  %v10061_v0 = vld [vmem:[%s15272_s7 + $0xa98] sm:$0xf0] }
 0x22b   :  { %v8941_v37 = vor.u32 %v10061_v0, %v8940_v63  ;;  %v9855_v63 = vld [vmem:[%s15272_s7 + $0x42c] sm:$0xf] }
 0x22c   :  { %5549 = vmatpush.bf16.msrb.mxu2 %v8521_v61  ;;  %5571 = vmatpush.bf16.msra.mxu0 %v9081_v1  ;;  %v9333_v61 = vor.u32 %v10159_v54, %v9332_v21  ;;  %v9304_v1 = vld [vmem:[%s15272_s7 + $0xd58] sm:$0xf]  ;;  %v10131_v21 = vld [vmem:[%s15272_s7 + $0xcc8] sm:$0xf0] }
 0x22e   :  { %5608 = vmatpush.bf16.msra.mxu3 %v8021_v3  ;;  %5583 = vmatpush.bf16.msra.mxu1 %v9333_v61  ;;  %v10152_v3 = vld [vmem:[%s15272_s7 + $0xd70] sm:$0xf0] }
 0x22f   :  { %v9305_v5 = vor.u32 %v10152_v3, %v9304_v1  ;;  %v9192_v1 = vld [vmem:[%s15272_s7 + $0xc78] sm:$0xf] }
 0x230   :  { %5550 = vmatpush.bf16.msrb.mxu2 %v8493_v9  ;;  %5572 = vmatpush.bf16.msra.mxu0 %v9053_v14  ;;  %v12817_v29 = vpop.f32.mrf.mxu3  ;;  %v7881_v9 = vor.u32 %v9792_v58, %v7878_v59  ;;  %v9876_v14 = vld [vmem:[%s15272_s7 + $0x4d4] sm:$0xf]  ;;  %v8693_v58 = vor.u32 %v9995_v28, %v8690_v50  ;;  %v8578_v28 = vld [vmem:[%s15272_s7 + $0x7c4] sm:$0xf0]  ;;  %v9834_v50 = vld [vmem:[%s15272_s7 + $0x384] sm:$0xf] }
 0x231   :  { %v9988_v59 = vld [vmem:[%s15272_s7 + $0x854] sm:$0xf] }
 0x232   :  { %5609 = vmatpush.bf16.msra.mxu3 %v7993_v18  ;;  %5584 = vmatpush.bf16.msra.mxu1 %v9305_v5  ;;  %v9276_v18 = vld [vmem:[%s15272_s7 + $0xd20] sm:$0xf] }
 0x233   :  { %5551 = vmatmul.bf16.vlgmr.msrb.gmra.mxu2 %v12772_v42 }
 0x234   :  { %5595 = vmatpush.bf16.msra.mxu2 %v7797_v12  ;;  %5573 = vmatpush.bf16.msra.mxu0 %v9025_v31  ;;  %v8245_v12 = vor.u32 %v9883_v4, %v8242_v26  ;;  %v9778_v31 = vld [vmem:[%s15272_s7 + $0x1c4] sm:$0xf]  ;;  %v10124_v4 = vld [vmem:[%s15272_s7 + $0xc90] sm:$0xf0] }
 0x235   :  { %v7825_v47 = vor.u32 %v9778_v31, %v7822_v32  ;;  %v9193_v3 = vor.u32 %v10124_v4, %v9192_v1  ;;  %v8466_v31 = vld [vmem:[%s15272_s7 + $0x6e4] sm:$0xf0]  ;;  %v10023_v4 = vld [vmem:[%s15272_s7 + $0x96c] sm:$0xf] }
 0x236   :  { %5610 = vmatpush.bf16.msra.mxu3 %v7965_v34  ;;  %v2496_v17 = vpop.f32.mrf.mxu2  ;;  %v8217_v34 = vor.u32 %v9876_v14, %v8214_v15  ;;  %v9164_v15 = vld [vmem:[%s15272_s7 + $0xc40] sm:$0xf] }
 0x238   :  { %5596 = vmatpush.bf16.msra.mxu2 %v7769_v46  ;;  %5574 = vmatpush.bf16.msra.mxu0 %v8997_v45  ;;  %v9277_v46 = vor.u32 %v10145_v16, %v9276_v18  ;;  %v2511_v27 = vpop.f32.mrf.mxu3  ;;  %v7598_v45 = vld [vmem:[%s15272_s7 + $0x1c] sm:$0xf0]  ;;  %v10044_v16 = vld [vmem:[%s15272_s7 + $0xa14] sm:$0xf] }
 0x239   :  { %v7601_v54 = vor.u32 %v9722_v44, %v7598_v45  ;;  %v8858_v44 = vld [vmem:[%s15272_s7 + $0x9f4] sm:$0xf0]  ;;  %v9967_v45 = vld [vmem:[%s15272_s7 + $0x7ac] sm:$0xf] }
 0x23a   :  { %5611 = vmatpush.bf16.msra.mxu3 %v7937_v53  ;;  %5585 = vmatpush.bf16.msra.mxu1 %v9277_v46  ;;  %v2535_v43 = vpop.f32.mrf.mxu1  ;;  %v8189_v53 = vor.u32 %v9869_v36, %v8186_v39  ;;  %v9974_v46 = vld [vmem:[%s15272_s7 + $0x7e4] sm:$0xf]  ;;  %v9841_v36 = vld [vmem:[%s15272_s7 + $0x3bc] sm:$0xf]  ;;  %v8074_v39 = vld [vmem:[%s15272_s7 + $0x3d4] sm:$0xf0] }
 0x23c   :  { %5597 = vmatpush.bf16.msra.mxu2 %v7741_v11  ;;  %5575 = vmatpush.bf16.msra.mxu0 %v8969_v60  ;;  %v2497_v11 = vadd.f32 %v2496_v17, %v936_v20  ;;  %v8161_v60 = vor.u32 %v9862_v56, %v8158_v51  ;;  %v10117_v17 = vld [vmem:[%s15272_s7 + $0xc58] sm:$0xf0]  ;;  %v8886_v20 = vld [vmem:[%s15272_s7 + $0xa2c] sm:$0xf0]  ;;  %v8046_v56 = vld [vmem:[%s15272_s7 + $0x39c] sm:$0xf0] }
 0x23d   :  { %v8889_v41 = vor.u32 %v10044_v16, %v8886_v20  ;;  %v9925_v51 = vld [vmem:[%s15272_s7 + $0x65c] sm:$0xf]  ;;  %v8494_v16 = vld [vmem:[%s15272_s7 + $0x71c] sm:$0xf0] }
 0x23e   :  { %5612 = vmatpush.bf16.msra.mxu3 %v7909_v62  ;;  %5586 = vmatpush.bf16.msra.mxu1 %v9249_v38  ;;  %v2498_v52 = vpop.f32.mrf.mxu2  ;;  %v2510_v57 = vadd.f32 %v12817_v29, %v2497_v11  ;;  %v8662_v62 = vld [vmem:[%s15272_s7 + $0x86c] sm:$0xf0]  ;;  %v8130_v29 = vld [vmem:[%s15272_s7 + $0x444] sm:$0xf0]  ;;  %v10037_v38 = vld [vmem:[%s15272_s7 + $0x9dc] sm:$0xf] }
 0x240   :  { %5598 = vmatpush.bf16.msra.mxu2 %v7713_v55  ;;  %5576 = vmatpush.bf16.msra.mxu0 %v8941_v37  ;;  %v9221_v55 = vor.u32 %v10131_v21, %v9220_v25  ;;  %v2522_v61 = vpop.f32.mrf.mxu0  ;;  %v10051_v37 = vld [vmem:[%s15272_s7 + $0xa4c] sm:$0xf]  ;;  %v8410_v25 = vld [vmem:[%s15272_s7 + $0x674] sm:$0xf0]  ;;  %v8861_v21 = vor.u32 %v10037_v38, %v8858_v44  ;;  %v9897_v44 = vld [vmem:[%s15272_s7 + $0x57c] sm:$0xf] }
 0x241   :  { %v2523_v0 = vadd.f32 %v2522_v61, %v2510_v57  ;;  %v8917_v18 = vor.u32 %v10051_v37, %v8914_v2  ;;  %v10030_v57 = vld [vmem:[%s15272_s7 + $0x9a4] sm:$0xf]  ;;  %v8550_v61 = vld [vmem:[%s15272_s7 + $0x78c] sm:$0xf0]  ;;  %v937_v37 = vperm.slane %v12864_v19, 6 }
 0x242   :  { %5613 = vmatpush.bf16.msra.mxu3 %v7881_v9  ;;  %5587 = vmatpush.bf16.msra.mxu1 %v9221_v55  ;;  %v2537_v26 = vpop.f32.mrf.mxu1  ;;  %v8133_v9 = vor.u32 %v9855_v63, %v8130_v29  ;;  %v8581_v55 = vor.u32 %v9967_v45, %v8578_v28  ;;  %v9918_v63 = vld [vmem:[%s15272_s7 + $0x624] sm:$0xf]  ;;  %v8382_v29 = vld [vmem:[%s15272_s7 + $0x63c] sm:$0xf0]  ;;  %v7772_v38 = vld [vmem:[%s15272_s7 + $0x158] sm:$0xf] }
 0x243   :  { %v2536_v5 = vadd.f32 %v2535_v43, %v2523_v0  ;;  %v9932_v43 = vld [vmem:[%s15272_s7 + $0x694] sm:$0xf]  ;;  %v8802_v26 = vld [vmem:[%s15272_s7 + $0x984] sm:$0xf0]  ;;  %v8298_v45 = vld [vmem:[%s15272_s7 + $0x594] sm:$0xf0] }
 0x244   :  { %5599 = vmatpush.bf16.msra.mxu2 %v7685_v7  ;;  %5621 = vmatpush.bf16.msrb.mxu0 %v8245_v12  ;;  %v8665_v7 = vor.u32 %v9988_v59, %v8662_v62  ;;  %v9848_v12 = vld [vmem:[%s15272_s7 + $0x3f4] sm:$0xf]  ;;  %v8049_v59 = vor.u32 %v9834_v50, %v8046_v56  ;;  %v8805_v8 = vor.u32 %v10023_v4, %v8802_v26  ;;  %v7996_v4 = vld [vmem:[%s15272_s7 + $0x318] sm:$0xf] }
 0x245   :  { %v2648_v14 = vmax.f32 %v2536_v5, 0.0  ;;  %v8105_v27 = vor.u32 %v9848_v12, %v8102_v13  ;;  %v9953_v5 = vld [vmem:[%s15272_s7 + $0x73c] sm:$0xf]  ;;  %v10016_v13 = vld [vmem:[%s15272_s7 + $0x934] sm:$0xf]  ;;  %v8301_v50 = vor.u32 %v9897_v44, %v8298_v45 }
 0x246   :  { %5614 = vmatpush.bf16.msra.mxu3 %v7853_v30  ;;  %5588 = vmatpush.bf16.msra.mxu1 %v9193_v3  ;;  %v9939_v30 = vld [vmem:[%s15272_s7 + $0x6cc] sm:$0xf]  ;;  %v8385_v3 = vor.u32 %v9918_v63, %v8382_v29  ;;  %v9824_v26 = vld [vmem:[%s15272_s7 + $0x330] sm:$0xf0]  ;;  %v9026_v44 = vld [vmem:[%s15272_s7 + $0xb44] sm:$0xf0] }
 0x247   :  { %v12965_v23 = vpack.c.bf16 %v2648_v14, %v2648_v14  ;;  %v8469_v40 = vor.u32 %v9939_v30, %v8466_v31  ;;  %v8774_v14 = vld [vmem:[%s15272_s7 + $0x94c] sm:$0xf0]  ;;  %v7632_v45 = vld [vmem:[%s15272_s7 + $0x40] sm:$0xf] }
 0x248   :  { %5600 = vmatpush.bf16.msra.mxu2 %v7657_v22  ;;  %5622 = vmatpush.bf16.msrb.mxu0 %v8217_v34  ;;  %v9165_v22 = vor.u32 %v10117_v17, %v9164_v15  ;;  %v2524_v32 = vpop.f32.mrf.mxu0  ;;  %v8606_v34 = vld [vmem:[%s15272_s7 + $0x7fc] sm:$0xf0]  ;;  %v8326_v30 = vld [vmem:[%s15272_s7 + $0x5cc] sm:$0xf0] }
 0x249   :  { %5564 = vmatmul.bf16.vlgmr.msrb.gmra.mxu3 %v12965_v23  ;;  %v8609_v11 = vor.u32 %v9974_v46, %v8606_v34  ;;  %v8777_v46 = vor.u32 %v10016_v13, %v8774_v14  ;;  %v10009_v34 = vld [vmem:[%s15272_s7 + $0x8fc] sm:$0xf]  ;;  %v7968_v14 = vld [vmem:[%s15272_s7 + $0x2e0] sm:$0xf] }
 0x24a   :  { %5615 = vmatpush.bf16.msra.mxu3 %v7825_v47  ;;  %5589 = vmatpush.bf16.msra.mxu1 %v9165_v22  ;;  %v8077_v47 = vor.u32 %v9841_v36, %v8074_v39  ;;  %v7800_v22 = vld [vmem:[%s15272_s7 + $0x190] sm:$0xf]  ;;  %v8746_v36 = vld [vmem:[%s15272_s7 + $0x914] sm:$0xf0]  ;;  %v10093_v13 = vld [vmem:[%s15272_s7 + $0xb9c] sm:$0xf] }
 0x24c   :  { %5601 = vmatpush.bf16.msra.mxu2 %v7629_v24  ;;  %5623 = vmatpush.bf16.msrb.mxu0 %v8189_v53  ;;  %v8438_v24 = vld [vmem:[%s15272_s7 + $0x6ac] sm:$0xf0] }
 0x24d   :  { %v8441_v53 = vor.u32 %v9932_v43, %v8438_v24  ;;  %v9768_v43 = vld [vmem:[%s15272_s7 + $0x170] sm:$0xf0] }
 0x24e   :  { %5660 = vmatpush.bf16.msrb.mxu3 %v8917_v18  ;;  %5634 = vmatpush.bf16.msrb.mxu1 %v8469_v40  ;;  %v9946_v18 = vld [vmem:[%s15272_s7 + $0x704] sm:$0xf] }
 0x24f   :  { %v8497_v32 = vor.u32 %v9946_v18, %v8494_v16  ;;  %v7688_v18 = vld [vmem:[%s15272_s7 + $0xb0] sm:$0xf]  ;;  %v9747_v16 = vld [vmem:[%s15272_s7 + $0xc8] sm:$0xf0] }
 0x250   :  { %5602 = vmatpush.bf16.msra.mxu2 %v7601_v54  ;;  %5624 = vmatpush.bf16.msrb.mxu0 %v8161_v60  ;;  %v2561_v52 = vpop.f32.mrf.mxu3  ;;  %v8413_v54 = vor.u32 %v9925_v51, %v8410_v25  ;;  %v9960_v60 = vld [vmem:[%s15272_s7 + $0x774] sm:$0xf]  ;;  %v7773_v51 = vor.u32 %v9768_v43, %v7772_v38  ;;  %v8024_v25 = vld [vmem:[%s15272_s7 + $0x350] sm:$0xf]  ;;  %v10079_v38 = vld [vmem:[%s15272_s7 + $0xb2c] sm:$0xf] }
 0x251   :  { %v8553_v1 = vor.u32 %v9960_v60, %v8550_v61  ;;  %v9890_v60 = vld [vmem:[%s15272_s7 + $0x544] sm:$0xf]  ;;  %v8270_v61 = vld [vmem:[%s15272_s7 + $0x55c] sm:$0xf0]  ;;  %v7912_v43 = vld [vmem:[%s15272_s7 + $0x270] sm:$0xf] }
 0x252   :  { %5661 = vmatpush.bf16.msrb.mxu3 %v8889_v41  ;;  %5635 = vmatpush.bf16.msrb.mxu1 %v8441_v53  ;;  %v8718_v53 = vld [vmem:[%s15272_s7 + $0x8dc] sm:$0xf0] }
 0x253   :  { %5603 = vmatmul.bf16.vlgmr.msra.gmra.mxu2 %v12581_v49 }
 0x254   :  { %5647 = vmatpush.bf16.msrb.mxu2 %v8693_v58  ;;  %5625 = vmatpush.bf16.msrb.mxu0 %v8133_v9  ;;  %v8830_v58 = vld [vmem:[%s15272_s7 + $0x9bc] sm:$0xf0]  ;;  %v9911_v9 = vld [vmem:[%s15272_s7 + $0x5ec] sm:$0xf] }
 0x255   :  { %v8833_v62 = vor.u32 %v10030_v57, %v8830_v58  ;;  %v8357_v15 = vor.u32 %v9911_v9, %v8354_v10  ;;  %v7744_v57 = vld [vmem:[%s15272_s7 + $0x120] sm:$0xf]  ;;  %v9761_v58 = vld [vmem:[%s15272_s7 + $0x138] sm:$0xf0]  ;;  %v7997_v9 = vor.u32 %v9824_v26, %v7996_v4 }
 0x256   :  { %5662 = vmatpush.bf16.msrb.mxu3 %v8861_v21  ;;  %5636 = vmatpush.bf16.msrb.mxu1 %v8413_v54  ;;  %v2548_v0 = vpop.f32.mrf.mxu2  ;;  %v9831_v21 = vld [vmem:[%s15272_s7 + $0x368] sm:$0xf0]  ;;  %v10065_v26 = vld [vmem:[%s15272_s7 + $0xabc] sm:$0xf] }
 0x257   :  { %v2549_v20 = vadd.f32 %v2548_v0, %v937_v37  ;;  %v8025_v63 = vor.u32 %v9831_v21, %v8024_v25  ;;  %v7745_v0 = vor.u32 %v9761_v58, %v7744_v57  ;;  %v9754_v37 = vld [vmem:[%s15272_s7 + $0x100] sm:$0xf0]  ;;  %v7884_v25 = vld [vmem:[%s15272_s7 + $0x238] sm:$0xf]  ;;  %v9796_v21 = vld [vmem:[%s15272_s7 + $0x250] sm:$0xf0] }
 0x258   :  { %5648 = vmatpush.bf16.msrb.mxu2 %v8665_v7  ;;  %5626 = vmatpush.bf16.msrb.mxu0 %v8105_v27  ;;  %v8522_v7 = vld [vmem:[%s15272_s7 + $0x754] sm:$0xf0]  ;;  %v2563_v2 = vpop.f32.mrf.mxu3  ;;  %v9904_v27 = vld [vmem:[%s15272_s7 + $0x5b4] sm:$0xf]  ;;  %v8696_v58 = vld [vmem:[%s15272_s7 + $0x890] sm:$0xf] }
 0x259   :  { %v8525_v12 = vor.u32 %v9953_v5, %v8522_v7  ;;  %5616 = vmatmul.bf16.vlgmr.msra.gmra.mxu3 %v12552_v33  ;;  %v8329_v39 = vor.u32 %v9904_v27, %v8326_v30  ;;  %v2562_v41 = vadd.f32 %v2561_v52, %v2549_v20  ;;  %v10107_v52 = vld [vmem:[%s15272_s7 + $0xc0c] sm:$0xf]  ;;  %v9110_v5 = vld [vmem:[%s15272_s7 + $0xbec] sm:$0xf0]  ;;  %v7716_v7 = vld [vmem:[%s15272_s7 + $0xe8] sm:$0xf]  ;;  %v8273_v2 = vor.u32 %v9890_v60, %v8270_v61 }
 0x25a   :  { %5663 = vmatpush.bf16.msrb.mxu3 %v8833_v62  ;;  %5637 = vmatpush.bf16.msrb.mxu1 %v8385_v3  ;;  %v2587_v17 = vpop.f32.mrf.mxu1  ;;  %v10086_v27 = vld [vmem:[%s15272_s7 + $0xb64] sm:$0xf]  ;;  %v7940_v30 = vld [vmem:[%s15272_s7 + $0x2a8] sm:$0xf]  ;;  %v7885_v61 = vor.u32 %v9796_v21, %v7884_v25 }
 0x25c   :  { %5649 = vmatpush.bf16.msrb.mxu2 %v8637_v6  ;;  %5627 = vmatpush.bf16.msrb.mxu0 %v8077_v47  ;;  %v9775_v6 = vld [vmem:[%s15272_s7 + $0x1a8] sm:$0xf0]  ;;  %v10002_v47 = vld [vmem:[%s15272_s7 + $0x8c4] sm:$0xf] }
 0x25d   :  { %v7801_v40 = vor.u32 %v9775_v6, %v7800_v22 }
 0x25e   :  { %5664 = vmatpush.bf16.msrb.mxu3 %v8805_v8  ;;  %5638 = vmatpush.bf16.msrb.mxu1 %v8357_v15  ;;  %v2550_v31 = vpop.f32.mrf.mxu2  ;;  %v9817_v15 = vld [vmem:[%s15272_s7 + $0x2f8] sm:$0xf0] }
 0x25f   :  { %v7969_v22 = vor.u32 %v9817_v15, %v7968_v14  ;;  %v9810_v31 = vld [vmem:[%s15272_s7 + $0x2c0] sm:$0xf0] }
 0x260   :  { %5650 = vmatpush.bf16.msrb.mxu2 %v8609_v11  ;;  %5628 = vmatpush.bf16.msrb.mxu0 %v8049_v59  ;;  %v2574_v24 = vpop.f32.mrf.mxu0  ;;  %v8749_v11 = vor.u32 %v10009_v34, %v8746_v36  ;;  %v8721_v59 = vor.u32 %v10002_v47, %v8718_v53  ;;  %v7660_v34 = vld [vmem:[%s15272_s7 + $0x78] sm:$0xf]  ;;  %v9740_v36 = vld [vmem:[%s15272_s7 + $0x90] sm:$0xf0]  ;;  %v938_v47 = vperm.slane %v12864_v19, 7 }
 0x261   :  { %v2575_v28 = vadd.f32 %v2574_v24, %v2562_v41  ;;  %v7661_v41 = vor.u32 %v9740_v36, %v7660_v34  ;;  %v9803_v24 = vld [vmem:[%s15272_s7 + $0x288] sm:$0xf0]  ;;  %v8998_v19 = vld [vmem:[%s15272_s7 + $0xb0c] sm:$0xf0]  ;;  %v9782_v14 = vld [vmem:[%s15272_s7 + $0x1e0] sm:$0xf0] }
 0x262   :  { %5665 = vmatpush.bf16.msrb.mxu3 %v8777_v46  ;;  %5639 = vmatpush.bf16.msrb.mxu1 %v8329_v39  ;;  %v2589_v56 = vpop.f32.mrf.mxu1  ;;  %v7689_v46 = vor.u32 %v9747_v16, %v7688_v18  ;;  %v7941_v39 = vor.u32 %v9810_v31, %v7940_v30  ;;  %v8942_v18 = vld [vmem:[%s15272_s7 + $0xa9c] sm:$0xf0]  ;;  %v8920_v16 = vld [vmem:[%s15272_s7 + $0xa50] sm:$0xf]  ;;  %v9985_v36 = vld [vmem:[%s15272_s7 + $0x838] sm:$0xf0] }
 0x263   :  { %v2588_v54 = vadd.f32 %v2587_v17, %v2575_v28  ;;  %v9082_v17 = vld [vmem:[%s15272_s7 + $0xbb4] sm:$0xf0]  ;;  %v9733_v28 = vld [vmem:[%s15272_s7 + $0x58] sm:$0xf0]  ;;  %v9029_v56 = vor.u32 %v10079_v38, %v9026_v44  ;;  %v8640_v34 = vld [vmem:[%s15272_s7 + $0x820] sm:$0xf] }
 0x264   :  { %5651 = vmatpush.bf16.msrb.mxu2 %v8581_v55  ;;  %v9138_v55 = vld [vmem:[%s15272_s7 + $0xc24] sm:$0xf0]  ;;  %v9085_v6 = vor.u32 %v10093_v13, %v9082_v17  ;;  %v8641_v44 = vor.u32 %v9985_v36, %v8640_v34  ;;  %v8528_v34 = vld [vmem:[%s15272_s7 + $0x740] sm:$0xf]  ;;  %v9957_v36 = vld [vmem:[%s15272_s7 + $0x758] sm:$0xf0] }
 0x265   :  { %v2649_v62 = vmax.f32 %v2588_v54, 0.0  ;;  %v9141_v29 = vor.u32 %v10107_v52, %v9138_v55  ;;  %v10072_v52 = vld [vmem:[%s15272_s7 + $0xaf4] sm:$0xf]  ;;  %v7604_v54 = vld [vmem:[%s15272_s7 + $0x8] sm:$0xf] }
 0x266   :  { %5666 = vmatpush.bf16.msrb.mxu3 %v8749_v11  ;;  %5640 = vmatpush.bf16.msrb.mxu1 %v8301_v50  ;;  %v7913_v50 = vor.u32 %v9803_v24, %v7912_v43  ;;  %v9726_v55 = vld [vmem:[%s15272_s7 + $0x20] sm:$0xf0]  ;;  %v7828_v13 = vld [vmem:[%s15272_s7 + $0x1c8] sm:$0xf]  ;;  %v8892_v43 = vld [vmem:[%s15272_s7 + $0xa18] sm:$0xf] }
 0x267   :  { %v13136_v3 = vpack.c.bf16 %v2649_v62, %v2649_v62  ;;  %v9001_v62 = vor.u32 %v10072_v52, %v8998_v19  ;;  %v7829_v31 = vor.u32 %v9782_v14, %v7828_v13  ;;  %v10048_v24 = vld [vmem:[%s15272_s7 + $0xa30] sm:$0xf0]  ;;  %v10149_v19 = vld [vmem:[%s15272_s7 + $0xd5c] sm:$0xf]  ;;  %v8556_v13 = vld [vmem:[%s15272_s7 + $0x778] sm:$0xf] }
 0x268   :  { %5652 = vmatpush.bf16.msrb.mxu2 %v8553_v1  ;;  %v10100_v1 = vld [vmem:[%s15272_s7 + $0xbd4] sm:$0xf]  ;;  %v2576_v8 = vpop.f32.mrf.mxu0  ;;  %v8893_v25 = vor.u32 %v10048_v24, %v8892_v43  ;;  %v8780_v43 = vld [vmem:[%s15272_s7 + $0x938] sm:$0xf] }
 0x269   :  { %5577 = vmatmul.bf16.vlgmr.msra.gmra.mxu0 %v13136_v3  ;;  %v9113_v10 = vor.u32 %v10100_v1, %v9110_v5  ;;  %v8970_v5 = vld [vmem:[%s15272_s7 + $0xad4] sm:$0xf0]  ;;  %v9964_v14 = vld [vmem:[%s15272_s7 + $0x790] sm:$0xf0] }
 0x26a   :  { %5667 = vmatpush.bf16.msrb.mxu3 %v8721_v59  ;;  %5673 = vmatpush.bf16.msra.mxu0 %v9141_v29  ;;  %v9999_v59 = vld [vmem:[%s15272_s7 + $0x8a8] sm:$0xf0]  ;;  %v7856_v29 = vld [vmem:[%s15272_s7 + $0x200] sm:$0xf]  ;;  %v10020_v24 = vld [vmem:[%s15272_s7 + $0x950] sm:$0xf0] }
 0x26b   :  { %5641 = vmatpush.bf16.msrb.mxu1 %v8273_v2  ;;  %v8697_v4 = vor.u32 %v9999_v59, %v8696_v58  ;;  %v8192_v59 = vld [vmem:[%s15272_s7 + $0x4a0] sm:$0xf] }
 0x26c   :  { %5653 = vmatpush.bf16.msrb.mxu2 %v8525_v12  ;;  %v7717_v12 = vor.u32 %v9754_v37, %v7716_v7  ;;  %v8668_v7 = vld [vmem:[%s15272_s7 + $0x858] sm:$0xf]  ;;  %v9992_v37 = vld [vmem:[%s15272_s7 + $0x870] sm:$0xf0] }
 0x26d   :  { %5668 = vmatmul.bf16.vlgmr.msrb.gmra.mxu3 %v12965_v23  ;;  %v8669_v17 = vor.u32 %v9992_v37, %v8668_v7  ;;  %v10034_v7 = vld [vmem:[%s15272_s7 + $0x9c0] sm:$0xf0] }
 0x26e   :  { %5712 = vmatpush.bf16.msra.mxu3 %v8025_v63  ;;  %5674 = vmatpush.bf16.msra.mxu0 %v9113_v10  ;;  %v7605_v63 = vor.u32 %v9726_v55, %v7604_v54  ;;  %v8973_v10 = vor.u32 %v10065_v26, %v8970_v5  ;;  %v8864_v54 = vld [vmem:[%s15272_s7 + $0x9e0] sm:$0xf]  ;;  %v10041_v55 = vld [vmem:[%s15272_s7 + $0x9f8] sm:$0xf0]  ;;  %v8836_v5 = vld [vmem:[%s15272_s7 + $0x9a8] sm:$0xf] }
 0x270   :  { %5654 = vmatpush.bf16.msrb.mxu2 %v8497_v32  ;;  %v2613_v20 = vpop.f32.mrf.mxu3  ;;  %v9054_v32 = vld [vmem:[%s15272_s7 + $0xb7c] sm:$0xf0] }
 0x272   :  { %5713 = vmatpush.bf16.msra.mxu3 %v7997_v9  ;;  %5675 = vmatpush.bf16.msra.mxu0 %v9085_v6  ;;  %v10163_v6 = vld [vmem:[%s15272_s7 + $0xdcc] sm:$0xf] }
 0x273   :  { %5655 = vmatmul.bf16.vlgmr.msrb.gmra.mxu2 %v12772_v42 }
 0x274   :  { %5699 = vmatpush.bf16.msra.mxu2 %v7801_v40  ;;  %v9057_v40 = vor.u32 %v10086_v27, %v9054_v32  ;;  %v9887_v27 = vld [vmem:[%s15272_s7 + $0x528] sm:$0xf0]  ;;  %v9362_v32 = vld [vmem:[%s15272_s7 + $0xde4] sm:$0xf0] }
 0x276   :  { %5714 = vmatpush.bf16.msra.mxu3 %v7969_v22  ;;  %v2600_v11 = vpop.f32.mrf.mxu2  ;;  %5676 = vmatpush.bf16.msra.mxu0 %v9057_v40 }
 0x277   :  { %v2601_v60 = vadd.f32 %v2600_v11, %v938_v47  ;;  %v9365_v11 = vor.u32 %v10163_v6, %v9362_v32  ;;  %v9880_v47 = vld [vmem:[%s15272_s7 + $0x4f0] sm:$0xf0]  ;;  %v8557_v6 = vor.u32 %v9964_v14, %v8556_v13  ;;  %v9250_v32 = vld [vmem:[%s15272_s7 + $0xd04] sm:$0xf0]  ;;  %v9838_v14 = vld [vmem:[%s15272_s7 + $0x3a0] sm:$0xf0] }
 0x278   :  { %5700 = vmatpush.bf16.msra.mxu2 %v7773_v51  ;;  %v2615_v53 = vpop.f32.mrf.mxu3  ;;  %v7633_v51 = vor.u32 %v9733_v28, %v7632_v45  ;;  %v10156_v45 = vld [vmem:[%s15272_s7 + $0xd94] sm:$0xf]  ;;  %v8220_v28 = vld [vmem:[%s15272_s7 + $0x4d8] sm:$0xf] }
 0x279   :  { %5629 = vmatmul.bf16.vlgmr.msrb.gmra.mxu0 %v12684_v48  ;;  %v2614_v2 = vadd.f32 %v2613_v20, %v2601_v60  ;;  %v10055_v20 = vld [vmem:[%s15272_s7 + $0xa68] sm:$0xf0]  ;;  %v8221_v21 = vor.u32 %v9880_v47, %v8220_v28  ;;  %v9873_v60 = vld [vmem:[%s15272_s7 + $0x4b8] sm:$0xf0]  ;;  %v8108_v28 = vld [vmem:[%s15272_s7 + $0x3f8] sm:$0xf] }
 0x27a   :  { %5715 = vmatpush.bf16.msra.mxu3 %v7941_v39  ;;  %v2639_v57 = vpop.f32.mrf.mxu1  ;;  %5677 = vmatpush.bf16.msra.mxu0 %v9029_v56  ;;  %v8921_v40 = vor.u32 %v10055_v20, %v8920_v16  ;;  %v8612_v56 = vld [vmem:[%s15272_s7 + $0x7e8] sm:$0xf]  ;;  %v10027_v16 = vld [vmem:[%s15272_s7 + $0x988] sm:$0xf0]  ;;  %v9852_v47 = vld [vmem:[%s15272_s7 + $0x410] sm:$0xf0] }
 0x27c   :  { %5701 = vmatpush.bf16.msra.mxu2 %v7745_v0  ;;  %v9789_v0 = vld [vmem:[%s15272_s7 + $0x218] sm:$0xf0] }
 0x27d   :  { %v7857_v8 = vor.u32 %v9789_v0, %v7856_v29  ;;  %v9971_v29 = vld [vmem:[%s15272_s7 + $0x7c8] sm:$0xf0]  ;;  %v8865_v0 = vor.u32 %v10041_v55, %v8864_v54  ;;  %v8109_v54 = vor.u32 %v9852_v47, %v8108_v28  ;;  %v8752_v55 = vld [vmem:[%s15272_s7 + $0x900] sm:$0xf]  ;;  %v9936_v28 = vld [vmem:[%s15272_s7 + $0x6b0] sm:$0xf0] }
 0x27e   :  { %5716 = vmatpush.bf16.msra.mxu3 %v7913_v50  ;;  %v2602_v1 = vpop.f32.mrf.mxu2  ;;  %5678 = vmatpush.bf16.msra.mxu0 %v9001_v62  ;;  %v9334_v50 = vld [vmem:[%s15272_s7 + $0xdac] sm:$0xf0]  ;;  %v9306_v62 = vld [vmem:[%s15272_s7 + $0xd74] sm:$0xf0]  ;;  %v9751_v47 = vld [vmem:[%s15272_s7 + $0xec] sm:$0xf] }
 0x27f   :  { %v9309_v37 = vor.u32 %v10149_v19, %v9306_v62  ;;  %v7802_v19 = vld [vmem:[%s15272_s7 + $0x1ac] sm:$0xf0]  ;;  %v9845_v62 = vld [vmem:[%s15272_s7 + $0x3d8] sm:$0xf0] }
 0x280   :  { %5702 = vmatpush.bf16.msra.mxu2 %v7717_v12  ;;  %v2626_v9 = vpop.f32.mrf.mxu0  ;;  %v10058_v12 = vld [vmem:[%s15272_s7 + $0xa84] sm:$0xf] }
 0x281   :  { %v2627_v15 = vadd.f32 %v2626_v9, %v2614_v2  ;;  %v8945_v39 = vor.u32 %v10058_v12, %v8942_v18  ;;  %v8164_v9 = vld [vmem:[%s15272_s7 + $0x468] sm:$0xf]  ;;  %v9278_v12 = vld [vmem:[%s15272_s7 + $0xd3c] sm:$0xf0]  ;;  %v8808_v18 = vld [vmem:[%s15272_s7 + $0x970] sm:$0xf] }
 0x282   :  { %5717 = vmatpush.bf16.msra.mxu3 %v7885_v61  ;;  %v2641_v22 = vpop.f32.mrf.mxu1  ;;  %5679 = vmatpush.bf16.msra.mxu0 %v8973_v10  ;;  %v3171_v61 = vld [vmem:[%s15273_s8] sm:$0x7f] }
 0x283   :  { %v2640_v30 = vadd.f32 %v2639_v57, %v2627_v15  ;;  %v9337_v57 = vor.u32 %v10156_v45, %v9334_v50  ;;  %v3173_v26 = vperm.slane %v3171_v61, 0  ;;  %v9866_v10 = vld [vmem:[%s15272_s7 + $0x480] sm:$0xf0]  ;;  %v8837_v15 = vor.u32 %v10034_v7, %v8836_v5  ;;  %v10128_v45 = vld [vmem:[%s15272_s7 + $0xcb4] sm:$0xf] }
 0x284   :  { %5703 = vmatpush.bf16.msra.mxu2 %v7689_v46  ;;  %v8248_v46 = vld [vmem:[%s15272_s7 + $0x510] sm:$0xf]  ;;  %v8080_v61 = vld [vmem:[%s15272_s7 + $0x3c0] sm:$0xf] }
 0x285   :  { %v8249_v38 = vor.u32 %v9887_v27, %v8248_v46  ;;  %v10135_v46 = vld [vmem:[%s15272_s7 + $0xcec] sm:$0xf]  ;;  %v8136_v27 = vld [vmem:[%s15272_s7 + $0x430] sm:$0xf]  ;;  %v8081_v7 = vor.u32 %v9845_v62, %v8080_v61 }
 0x286   :  { %5718 = vmatpush.bf16.msra.mxu3 %v7857_v8  ;;  %5680 = vmatpush.bf16.msra.mxu0 %v8945_v39  ;;  %v10142_v8 = vld [vmem:[%s15272_s7 + $0xd24] sm:$0xf]  ;;  %v8809_v39 = vor.u32 %v10027_v16, %v8808_v18  ;;  %v9222_v50 = vld [vmem:[%s15272_s7 + $0xccc] sm:$0xf0] }
 0x287   :  { %v9281_v22 = vor.u32 %v10142_v8, %v9278_v12  ;;  %v8052_v8 = vld [vmem:[%s15272_s7 + $0x388] sm:$0xf]  ;;  %v8472_v16 = vld [vmem:[%s15272_s7 + $0x6d0] sm:$0xf] }
 0x288   :  { %5704 = vmatpush.bf16.msra.mxu2 %v7661_v41  ;;  %v2650_v41 = vmax.f32 %v2640_v30, 0.0  ;;  %v2628_v52 = vpop.f32.mrf.mxu0  ;;  %v9859_v30 = vld [vmem:[%s15272_s7 + $0x448] sm:$0xf0]  ;;  %v7690_v61 = vld [vmem:[%s15272_s7 + $0xcc] sm:$0xf0] }
 0x289   :  { %5681 = vmatmul.bf16.vlgmr.msra.gmra.mxu0 %v13136_v3 }
 0x28a   :  { %v13299_v53 = vpack.c.bf16 %v2650_v41, %v2650_v41  ;;  %5719 = vmatpush.bf16.msra.mxu3 %v7829_v31  ;;  %5725 = vmatpush.bf16.msrb.mxu0 %v8249_v38  ;;  %v8137_v41 = vor.u32 %v9859_v30, %v8136_v27  ;;  %v9943_v27 = vld [vmem:[%s15272_s7 + $0x6e8] sm:$0xf0]  ;;  %v9758_v30 = vld [vmem:[%s15272_s7 + $0x124] sm:$0xf] }
 0x28c   :  { %5705 = vmatpush.bf16.msra.mxu2 %v7633_v51  ;;  %v9978_v51 = vld [vmem:[%s15272_s7 + $0x800] sm:$0xf0]  ;;  %5590 = vmatmul.bf16.vlgmr.msra.gmra.mxu1 %v13299_v53 }
 0x28d   :  { %5686 = vmatpush.bf16.msra.mxu1 %v9365_v11  ;;  %v8613_v58 = vor.u32 %v9978_v51, %v8612_v56  ;;  %5720 = vmatmul.bf16.vlgmr.msra.gmra.mxu3 %v12552_v33  ;;  %v9253_v11 = vor.u32 %v10135_v46, %v9250_v32  ;;  %v8500_v56 = vld [vmem:[%s15272_s7 + $0x708] sm:$0xf]  ;;  %v9950_v51 = vld [vmem:[%s15272_s7 + $0x720] sm:$0xf0] }
 0x28e   :  { %5764 = vmatpush.bf16.msrb.mxu3 %v8921_v40  ;;  %5726 = vmatpush.bf16.msrb.mxu0 %v8221_v21  ;;  %v9772_v21 = vld [vmem:[%s15272_s7 + $0x194] sm:$0xf] }
 0x290   :  { %5706 = vmatpush.bf16.msra.mxu2 %v7605_v63  ;;  %v8584_v63 = vld [vmem:[%s15272_s7 + $0x7b0] sm:$0xf]  ;;  %v5513_v1 = vpop.f32.mrf.mxu3 }
 0x291   :  { %5687 = vmatpush.bf16.msra.mxu1 %v9337_v57  ;;  %v8585_v2 = vor.u32 %v9971_v29, %v8584_v63  ;;  %v10013_v57 = vld [vmem:[%s15272_s7 + $0x918] sm:$0xf0]  ;;  %v7805_v63 = vor.u32 %v9772_v21, %v7802_v19  ;;  %v7970_v21 = vld [vmem:[%s15272_s7 + $0x2fc] sm:$0xf0] }
 0x292   :  { %5765 = vmatpush.bf16.msrb.mxu3 %v8893_v25  ;;  %v8781_v25 = vor.u32 %v10020_v24, %v8780_v43  ;;  %v10121_v29 = vld [vmem:[%s15272_s7 + $0xc7c] sm:$0xf]  ;;  %v8473_v43 = vor.u32 %v9943_v27, %v8472_v16  ;;  %v10083_v16 = vld [vmem:[%s15272_s7 + $0xb48] sm:$0xf0] }
 0x293   :  { %5707 = vmatmul.bf16.vlgmr.msra.gmra.mxu2 %v12581_v49 }
 0x294   :  { %5751 = vmatpush.bf16.msrb.mxu2 %v8697_v4  ;;  %v8193_v4 = vor.u32 %v9873_v60, %v8192_v59  ;;  %v9225_v59 = vor.u32 %v10128_v45, %v9222_v50  ;;  %v8501_v60 = vor.u32 %v9950_v51, %v8500_v56  ;;  %v10104_v45 = vld [vmem:[%s15272_s7 + $0xbf0] sm:$0xf0]  ;;  %v7718_v50 = vld [vmem:[%s15272_s7 + $0x104] sm:$0xf0] }
 0x295   :  { %5688 = vmatpush.bf16.msra.mxu1 %v9309_v37  ;;  %v10114_v37 = vld [vmem:[%s15272_s7 + $0xc44] sm:$0xf] }
 0x296   :  { %5766 = vmatpush.bf16.msrb.mxu3 %v8865_v0  ;;  %5727 = vmatpush.bf16.msrb.mxu0 %v8193_v4  ;;  %v5500_v20 = vpop.f32.mrf.mxu2  ;;  %v9194_v0 = vld [vmem:[%s15272_s7 + $0xc94] sm:$0xf0]  ;;  %v9765_v4 = vld [vmem:[%s15272_s7 + $0x15c] sm:$0xf] }
 0x297   :  { %v5501_v31 = vadd.f32 %v5500_v20, %v3173_v26  ;;  %v7774_v26 = vld [vmem:[%s15272_s7 + $0x174] sm:$0xf0]  ;;  %v9197_v13 = vor.u32 %v10121_v29, %v9194_v0  ;;  %v9144_v20 = vld [vmem:[%s15272_s7 + $0xc10] sm:$0xf]  ;;  %v9807_v29 = vld [vmem:[%s15272_s7 + $0x2ac] sm:$0xf] }
 0x298   :  { %5752 = vmatpush.bf16.msrb.mxu2 %v8669_v17  ;;  %v8165_v17 = vor.u32 %v9866_v10, %v8164_v9  ;;  %v5515_v40 = vpop.f32.mrf.mxu3  ;;  %v8724_v9 = vld [vmem:[%s15272_s7 + $0x8c8] sm:$0xf]  ;;  %v10006_v10 = vld [vmem:[%s15272_s7 + $0x8e0] sm:$0xf0]  ;;  %v7777_v18 = vor.u32 %v9765_v4, %v7774_v26 }
 0x299   :  { %v5514_v38 = vadd.f32 %v5513_v1, %v5501_v31  ;;  %5689 = vmatpush.bf16.msra.mxu1 %v9281_v22  ;;  %v8753_v1 = vor.u32 %v10013_v57, %v8752_v55  ;;  %v10111_v22 = vld [vmem:[%s15272_s7 + $0xc28] sm:$0xf0]  ;;  %v8725_v46 = vor.u32 %v10006_v10, %v8724_v9  ;;  %v7746_v31 = vld [vmem:[%s15272_s7 + $0x13c] sm:$0xf0]  ;;  %v7942_v0 = vld [vmem:[%s15272_s7 + $0x2c4] sm:$0xf0] }
 0x29a   :  { %5767 = vmatpush.bf16.msrb.mxu3 %v8837_v15  ;;  %5728 = vmatpush.bf16.msrb.mxu0 %v8165_v17  ;;  %v5539_v52 = vpop.f32.mrf.mxu1  ;;  %v9828_v15 = vld [vmem:[%s15272_s7 + $0x354] sm:$0xf]  ;;  %v8026_v17 = vld [vmem:[%s15272_s7 + $0x36c] sm:$0xf0]  ;;  %v9145_v40 = vor.u32 %v10111_v22, %v9144_v20  ;;  %v7749_v24 = vor.u32 %v9758_v30, %v7746_v31  ;;  %v8416_v55 = vld [vmem:[%s15272_s7 + $0x660] sm:$0xf]  ;;  %v7945_v9 = vor.u32 %v9807_v29, %v7942_v0 }
 0x29b   :  { %v9088_v57 = vld [vmem:[%s15272_s7 + $0xba0] sm:$0xf]  ;;  %v8388_v26 = vld [vmem:[%s15272_s7 + $0x628] sm:$0xf]  ;;  %v9915_v20 = vld [vmem:[%s15272_s7 + $0x608] sm:$0xf0] }
 0x29c   :  { %5753 = vmatpush.bf16.msrb.mxu2 %v8641_v44  ;;  %v8529_v44 = vor.u32 %v9957_v36, %v8528_v34  ;;  %5642 = vmatmul.bf16.vlgmr.msrb.gmra.mxu1 %v12662_v35  ;;  %v8053_v34 = vor.u32 %v9838_v14, %v8052_v8  ;;  %v8029_v36 = vor.u32 %v9828_v15, %v8026_v17  ;;  %v7662_v8 = vld [vmem:[%s15272_s7 + $0x94] sm:$0xf0]  ;;  %v8360_v17 = vld [vmem:[%s15272_s7 + $0x5f0] sm:$0xf]  ;;  %v9730_v22 = vld [vmem:[%s15272_s7 + $0x44] sm:$0xf] }
 0x29d   :  { %5690 = vmatpush.bf16.msra.mxu1 %v9253_v11  ;;  %v8444_v11 = vld [vmem:[%s15272_s7 + $0x698] sm:$0xf]  ;;  %v9793_v31 = vld [vmem:[%s15272_s7 + $0x23c] sm:$0xf]  ;;  %v8948_v29 = vld [vmem:[%s15272_s7 + $0xa88] sm:$0xf] }
 0x29e   :  { %5768 = vmatpush.bf16.msrb.mxu3 %v8809_v39  ;;  %5729 = vmatpush.bf16.msrb.mxu0 %v8137_v41  ;;  %v9821_v41 = vld [vmem:[%s15272_s7 + $0x31c] sm:$0xf]  ;;  %v8445_v19 = vor.u32 %v9936_v28, %v8444_v11  ;;  %v7606_v11 = vld [vmem:[%s15272_s7 + $0x24] sm:$0xf0]  ;;  %v8698_v28 = vld [vmem:[%s15272_s7 + $0x8ac] sm:$0xf0] }
 0x29f   :  { %v9779_v0 = vld [vmem:[%s15272_s7 + $0x1cc] sm:$0xf] }
 0x2a0   :  { %5754 = vmatpush.bf16.msrb.mxu2 %v8613_v58  ;;  %v5502_v58 = vpop.f32.mrf.mxu2  ;;  %v5526_v5 = vpop.f32.mrf.mxu0 }
 0x2a1   :  { %v5527_v12 = vadd.f32 %v5526_v5, %v5514_v38  ;;  %5691 = vmatpush.bf16.msra.mxu1 %v9225_v59  ;;  %v7998_v38 = vld [vmem:[%s15272_s7 + $0x334] sm:$0xf0]  ;;  %v10097_v58 = vld [vmem:[%s15272_s7 + $0xbb8] sm:$0xf0]  ;;  %v9060_v5 = vld [vmem:[%s15272_s7 + $0xb68] sm:$0xf] }
 0x2a2   :  { %5769 = vmatpush.bf16.msrb.mxu3 %v8781_v25  ;;  %5730 = vmatpush.bf16.msrb.mxu0 %v8109_v54  ;;  %v8001_v51 = vor.u32 %v9821_v41, %v7998_v38  ;;  %v9814_v25 = vld [vmem:[%s15272_s7 + $0x2e4] sm:$0xf]  ;;  %v7721_v54 = vor.u32 %v9751_v47, %v7718_v50  ;;  %v9929_v59 = vld [vmem:[%s15272_s7 + $0x678] sm:$0xf0]  ;;  %v8332_v41 = vld [vmem:[%s15272_s7 + $0x5b8] sm:$0xf] }
 0x2a3   :  { %v13485_v32 = vadd.f32 %v5539_v52, %v5527_v12  ;;  %v7973_v62 = vor.u32 %v9814_v25, %v7970_v21  ;;  %v9800_v12 = vld [vmem:[%s15272_s7 + $0x274] sm:$0xf]  ;;  %v9004_v38 = vld [vmem:[%s15272_s7 + $0xaf8] sm:$0xf]  ;;  %v9786_v50 = vld [vmem:[%s15272_s7 + $0x204] sm:$0xf] }
 0x2a4   :  { %5755 = vmatpush.bf16.msrb.mxu2 %v8585_v2  ;;  %v9166_v2 = vld [vmem:[%s15272_s7 + $0xc5c] sm:$0xf0]  ;;  %v10069_v21 = vld [vmem:[%s15272_s7 + $0xad8] sm:$0xf0] }
 0x2a5   :  { %5692 = vmatpush.bf16.msra.mxu1 %v9197_v13  ;;  %v9169_v39 = vor.u32 %v10114_v37, %v9166_v2  ;;  %v9922_v37 = vld [vmem:[%s15272_s7 + $0x640] sm:$0xf0]  ;;  %v9737_v2 = vld [vmem:[%s15272_s7 + $0x7c] sm:$0xf]  ;;  %v7914_v13 = vld [vmem:[%s15272_s7 + $0x28c] sm:$0xf0] }
 0x2a6   :  { %5770 = vmatpush.bf16.msrb.mxu3 %v8753_v1  ;;  %5731 = vmatpush.bf16.msrb.mxu0 %v8081_v7  ;;  %v8417_v1 = vor.u32 %v9929_v59, %v8416_v55  ;;  %v10090_v7 = vld [vmem:[%s15272_s7 + $0xb80] sm:$0xf0]  ;;  %v8389_v14 = vor.u32 %v9922_v37, %v8388_v26  ;;  %v7665_v15 = vor.u32 %v9737_v2, %v7662_v8  ;;  %v8976_v25 = vld [vmem:[%s15272_s7 + $0xac0] sm:$0xf]  ;;  %v9901_v55 = vld [vmem:[%s15272_s7 + $0x598] sm:$0xf0] }
 0x2a7   :  { %v9061_v10 = vor.u32 %v10090_v7, %v9060_v5  ;;  %v8670_v59 = vld [vmem:[%s15272_s7 + $0x874] sm:$0xf0]  ;;  %v10062_v26 = vld [vmem:[%s15272_s7 + $0xaa0] sm:$0xf0]  ;;  %v10052_v5 = vld [vmem:[%s15272_s7 + $0xa54] sm:$0xf] }
 0x2a8   :  { %5756 = vmatpush.bf16.msrb.mxu2 %v8557_v6  ;;  %v5541_v6 = vpop.f32.mrf.mxu1  ;;  %v5528_v56 = vpop.f32.mrf.mxu0  ;;  %v8922_v7 = vld [vmem:[%s15272_s7 + $0xa6c] sm:$0xf0]  ;;  %v9884_v8 = vld [vmem:[%s15272_s7 + $0x514] sm:$0xf] }
 0x2a9   :  { %5693 = vmatpush.bf16.msra.mxu1 %v9169_v39  ;;  %v7634_v6 = vld [vmem:[%s15272_s7 + $0x5c] sm:$0xf0]  ;;  %v8361_v39 = vor.u32 %v9915_v20, %v8360_v17  ;;  %v9368_v2 = vld [vmem:[%s15272_s7 + $0xdd0] sm:$0xf]  ;;  %v8925_v17 = vor.u32 %v10052_v5, %v8922_v7  ;;  %v10045_v20 = vld [vmem:[%s15272_s7 + $0xa1c] sm:$0xf] }
 0x2aa   :  { %5771 = vmatpush.bf16.msrb.mxu3 %v8725_v46  ;;  %5732 = vmatpush.bf16.msrb.mxu0 %v8053_v34  ;;  %v7917_v46 = vor.u32 %v9800_v12, %v7914_v13  ;;  %v7886_v34 = vld [vmem:[%s15272_s7 + $0x254] sm:$0xf0]  ;;  %v7858_v56 = vld [vmem:[%s15272_s7 + $0x21c] sm:$0xf0]  ;;  %v10167_v12 = vld [vmem:[%s15272_s7 + $0xde8] sm:$0xf0] }
 0x2ab   :  { %v9982_v13 = vld [vmem:[%s15272_s7 + $0x824] sm:$0xf]  ;;  %v9256_v5 = vld [vmem:[%s15272_s7 + $0xcf0] sm:$0xf]  ;;  %v9856_v7 = vld [vmem:[%s15272_s7 + $0x434] sm:$0xf] }
 0x2ac   :  { %5757 = vmatpush.bf16.msrb.mxu2 %v8529_v44  ;;  %v9116_v44 = vld [vmem:[%s15272_s7 + $0xbd8] sm:$0xf]  ;;  %5694 = vmatmul.bf16.vlgmr.msra.gmra.mxu1 %v13299_v53 }
 0x2ad   :  { %v9117_v52 = vor.u32 %v10104_v45, %v9116_v44  ;;  %5738 = vmatpush.bf16.msrb.mxu1 %v8473_v43  ;;  %5733 = vmatmul.bf16.vlgmr.msrb.gmra.mxu0 %v12684_v48  ;;  %v10076_v43 = vld [vmem:[%s15272_s7 + $0xb10] sm:$0xf0]  ;;  %v7889_v44 = vor.u32 %v9793_v31, %v7886_v34  ;;  %v8222_v31 = vld [vmem:[%s15272_s7 + $0x4f4] sm:$0xf0] }
 0x2ae   :  { %5816 = vmatpush.bf16.msra.mxu3 %v8029_v36  ;;  %5777 = vmatpush.bf16.msra.mxu0 %v9145_v40  ;;  %v7637_v40 = vor.u32 %v9730_v22, %v7634_v6  ;;  %v9996_v45 = vld [vmem:[%s15272_s7 + $0x894] sm:$0xf]  ;;  %v9005_v47 = vor.u32 %v10076_v43, %v9004_v38  ;;  %v8894_v22 = vld [vmem:[%s15272_s7 + $0xa34] sm:$0xf0]  ;;  %v9369_v6 = vor.u32 %v10167_v12, %v9368_v2  ;;  %v10038_v43 = vld [vmem:[%s15272_s7 + $0x9e4] sm:$0xf] }
 0x2af   :  { %5772 = vmatmul.bf16.vlgmr.msrb.gmra.mxu3 %v12965_v23  ;;  %v10160_v34 = vld [vmem:[%s15272_s7 + $0xdb0] sm:$0xf0]  ;;  %v10139_v2 = vld [vmem:[%s15272_s7 + $0xd08] sm:$0xf0] }
 0x2b0   :  { %5758 = vmatpush.bf16.msrb.mxu2 %v8501_v60  ;;  %v9744_v60 = vld [vmem:[%s15272_s7 + $0xb4] sm:$0xf] }
 0x2b1   :  { %5739 = vmatpush.bf16.msrb.mxu1 %v8445_v19  ;;  %v7693_v4 = vor.u32 %v9744_v60, %v7690_v61  ;;  %v8701_v19 = vor.u32 %v9996_v45, %v8698_v28  ;;  %v8977_v61 = vor.u32 %v10069_v21, %v8976_v25  ;;  %v9870_v45 = vld [vmem:[%s15272_s7 + $0x4a4] sm:$0xf]  ;;  %v8194_v28 = vld [vmem:[%s15272_s7 + $0x4bc] sm:$0xf0]  ;;  %v10031_v25 = vld [vmem:[%s15272_s7 + $0x9ac] sm:$0xf] }
 0x2b2   :  { %5817 = vmatpush.bf16.msra.mxu3 %v8001_v51  ;;  %5778 = vmatpush.bf16.msra.mxu0 %v9117_v52  ;;  %v8838_v21 = vld [vmem:[%s15272_s7 + $0x9c4] sm:$0xf0] }
 0x2b3   :  { %5759 = vmatmul.bf16.vlgmr.msrb.gmra.mxu2 %v12772_v42 }
 0x2b4   :  { %5803 = vmatpush.bf16.msra.mxu2 %v7805_v63  ;;  %v9089_v63 = vor.u32 %v10097_v58, %v9088_v57  ;;  %v7861_v57 = vor.u32 %v9786_v50, %v7858_v56  ;;  %v9989_v58 = vld [vmem:[%s15272_s7 + $0x85c] sm:$0xf]  ;;  %v9968_v50 = vld [vmem:[%s15272_s7 + $0x7b4] sm:$0xf]  ;;  %v8586_v56 = vld [vmem:[%s15272_s7 + $0x7cc] sm:$0xf0] }
 0x2b5   :  { %5740 = vmatpush.bf16.msrb.mxu1 %v8417_v1  ;;  %v7830_v1 = vld [vmem:[%s15272_s7 + $0x1e4] sm:$0xf0]  ;;  %v8673_v37 = vor.u32 %v9989_v58, %v8670_v59  ;;  %v10146_v59 = vld [vmem:[%s15272_s7 + $0xd40] sm:$0xf0] }
 0x2b6   :  { %5818 = vmatpush.bf16.msra.mxu3 %v7973_v62  ;;  %5779 = vmatpush.bf16.msra.mxu0 %v9089_v63  ;;  %v5552_v27 = vpop.f32.mrf.mxu2  ;;  %v8276_v62 = vld [vmem:[%s15272_s7 + $0x548] sm:$0xf]  ;;  %v9894_v63 = vld [vmem:[%s15272_s7 + $0x560] sm:$0xf0] }
 0x2b7   :  { %v13594_v36 = vadd.f32 %v5552_v27, %v13485_v32  ;;  %v9723_v32 = vld [vmem:[%s15272_s7 + $0xc] sm:$0xf]  ;;  %v9340_v27 = vld [vmem:[%s15272_s7 + $0xd98] sm:$0xf]  ;;  %v8166_v58 = vld [vmem:[%s15272_s7 + $0x484] sm:$0xf0] }
 0x2b8   :  { %5804 = vmatpush.bf16.msra.mxu2 %v7777_v18  ;;  %v9032_v18 = vld [vmem:[%s15272_s7 + $0xb30] sm:$0xf]  ;;  %v7609_v52 = vor.u32 %v9723_v32, %v7606_v11  ;;  %v9341_v32 = vor.u32 %v10160_v34, %v9340_v27  ;;  %v8502_v27 = vld [vmem:[%s15272_s7 + $0x724] sm:$0xf0]  ;;  %v9776_v34 = vld [vmem:[%s15272_s7 + $0x1b0] sm:$0xf0] }
 0x2b9   :  { %v9033_v30 = vor.u32 %v10083_v16, %v9032_v18  ;;  %5741 = vmatpush.bf16.msrb.mxu1 %v8389_v14  ;;  %v8642_v14 = vld [vmem:[%s15272_s7 + $0x83c] sm:$0xf0]  ;;  %v8277_v18 = vor.u32 %v9894_v63, %v8276_v62  ;;  %v8841_v62 = vor.u32 %v10031_v25, %v8838_v21  ;;  %v10118_v25 = vld [vmem:[%s15272_s7 + $0xc60] sm:$0xf0]  ;;  %v9835_v21 = vld [vmem:[%s15272_s7 + $0x38c] sm:$0xf] }
 0x2ba   :  { %5819 = vmatpush.bf16.msra.mxu3 %v7945_v9  ;;  %5780 = vmatpush.bf16.msra.mxu0 %v9061_v10  ;;  %v8250_v9 = vld [vmem:[%s15272_s7 + $0x52c] sm:$0xf0]  ;;  %v7833_v10 = vor.u32 %v9779_v0, %v7830_v1 }
 0x2bb   :  { %v8253_v16 = vor.u32 %v9884_v8, %v8250_v9  ;;  %v8810_v0 = vld [vmem:[%s15272_s7 + $0x98c] sm:$0xf0]  ;;  %v9954_v8 = vld [vmem:[%s15272_s7 + $0x744] sm:$0xf]  ;;  %v8530_v9 = vld [vmem:[%s15272_s7 + $0x75c] sm:$0xf0] }
 0x2bc   :  { %5805 = vmatpush.bf16.msra.mxu2 %v7749_v24  ;;  %v9908_v24 = vld [vmem:[%s15272_s7 + $0x5d0] sm:$0xf0] }
 0x2bd   :  { %5742 = vmatpush.bf16.msrb.mxu1 %v8361_v39  ;;  %v8333_v51 = vor.u32 %v9908_v24, %v8332_v41  ;;  %v9975_v39 = vld [vmem:[%s15272_s7 + $0x7ec] sm:$0xf]  ;;  %v8897_v41 = vor.u32 %v10045_v20, %v8894_v22  ;;  %v8866_v24 = vld [vmem:[%s15272_s7 + $0x9fc] sm:$0xf0]  ;;  %v9849_v20 = vld [vmem:[%s15272_s7 + $0x3fc] sm:$0xf] }
 0x2be   :  { %5820 = vmatpush.bf16.msra.mxu3 %v7917_v46  ;;  %5781 = vmatpush.bf16.msra.mxu0 %v9033_v30  ;;  %v5554_v60 = vpop.f32.mrf.mxu2  ;;  %v8645_v46 = vor.u32 %v9982_v13, %v8642_v14  ;;  %v9877_v30 = vld [vmem:[%s15272_s7 + $0x4dc] sm:$0xf]  ;;  %v8782_v14 = vld [vmem:[%s15272_s7 + $0x954] sm:$0xf0] }
 0x2bf   :  { %v8225_v38 = vor.u32 %v9877_v30, %v8222_v31  ;;  %v9961_v60 = vld [vmem:[%s15272_s7 + $0x77c] sm:$0xf]  ;;  %v8110_v22 = vld [vmem:[%s15272_s7 + $0x414] sm:$0xf0] }
 0x2c0   :  { %5806 = vmatpush.bf16.msra.mxu2 %v7721_v54  ;;  %v8304_v54 = vld [vmem:[%s15272_s7 + $0x580] sm:$0xf]  ;;  %v10017_v13 = vld [vmem:[%s15272_s7 + $0x93c] sm:$0xf]  ;;  %v7808_v31 = vld [vmem:[%s15272_s7 + $0x198] sm:$0xf] }
 0x2c1   :  { %5743 = vmatpush.bf16.msrb.mxu1 %v8333_v51  ;;  %v8869_v51 = vor.u32 %v10038_v43, %v8866_v24  ;;  %v8785_v30 = vor.u32 %v10017_v13, %v8782_v14  ;;  %v9933_v14 = vld [vmem:[%s15272_s7 + $0x69c] sm:$0xf] }
 0x2c2   :  { %5821 = vmatpush.bf16.msra.mxu3 %v7889_v44  ;;  %5782 = vmatpush.bf16.msra.mxu0 %v9005_v47  ;;  %v9312_v44 = vld [vmem:[%s15272_s7 + $0xd60] sm:$0xf]  ;;  %v10153_v47 = vld [vmem:[%s15272_s7 + $0xd78] sm:$0xf0] }
 0x2c4   :  { %5807 = vmatpush.bf16.msra.mxu2 %v7693_v4  ;;  %v8305_v4 = vor.u32 %v9901_v55, %v8304_v54  ;;  %v8589_v54 = vor.u32 %v9968_v50, %v8586_v56  ;;  %v9284_v55 = vld [vmem:[%s15272_s7 + $0xd28] sm:$0xf]  ;;  %v7780_v50 = vld [vmem:[%s15272_s7 + $0x160] sm:$0xf]  ;;  %v9769_v56 = vld [vmem:[%s15272_s7 + $0x178] sm:$0xf0] }
 0x2c6   :  { %5822 = vmatpush.bf16.msra.mxu3 %v7861_v57  ;;  %5783 = vmatpush.bf16.msra.mxu0 %v8977_v61  ;;  %v9863_v57 = vld [vmem:[%s15272_s7 + $0x46c] sm:$0xf]  ;;  %v8558_v61 = vld [vmem:[%s15272_s7 + $0x794] sm:$0xf0] }
 0x2c7   :  { %5744 = vmatpush.bf16.msrb.mxu1 %v8305_v4  ;;  %v8169_v63 = vor.u32 %v9863_v57, %v8166_v58  ;;  %v9285_v4 = vor.u32 %v10146_v59, %v9284_v55  ;;  %v8054_v58 = vld [vmem:[%s15272_s7 + $0x3a4] sm:$0xf0]  ;;  %v8032_v59 = vld [vmem:[%s15272_s7 + $0x358] sm:$0xf] }
 0x2c8   :  { %5808 = vmatpush.bf16.msra.mxu2 %v7665_v15  ;;  %v8949_v15 = vor.u32 %v10062_v26, %v8948_v29  ;;  %v10024_v29 = vld [vmem:[%s15272_s7 + $0x974] sm:$0xf]  ;;  %v8561_v26 = vor.u32 %v9961_v60, %v8558_v61  ;;  %v7781_v61 = vor.u32 %v9769_v56, %v7780_v50  ;;  %v9919_v56 = vld [vmem:[%s15272_s7 + $0x62c] sm:$0xf] }
 0x2c9   :  { %v9832_v60 = vld [vmem:[%s15272_s7 + $0x370] sm:$0xf0] }
 0x2ca   :  { %5823 = vmatpush.bf16.msra.mxu3 %v7833_v10  ;;  %5784 = vmatpush.bf16.msra.mxu0 %v8949_v15  ;;  %v8813_v10 = vor.u32 %v10024_v29, %v8810_v0  ;;  %v9146_v29 = vld [vmem:[%s15272_s7 + $0xc2c] sm:$0xf0] }
 0x2cb   :  { %5745 = vmatpush.bf16.msrb.mxu1 %v8277_v18  ;;  %v8533_v18 = vor.u32 %v9954_v8, %v8530_v9  ;;  %v8004_v9 = vld [vmem:[%s15272_s7 + $0x320] sm:$0xf] }
 0x2cc   :  { %5809 = vmatpush.bf16.msra.mxu2 %v7637_v40  ;;  %v8614_v40 = vld [vmem:[%s15272_s7 + $0x804] sm:$0xf0]  ;;  %v13794_v15 = vpop.f32.mrf.mxu3 }
 0x2cd   :  { %v8617_v11 = vor.u32 %v9975_v39, %v8614_v40  ;;  %5785 = vmatmul.bf16.vlgmr.msra.gmra.mxu0 %v13136_v3  ;;  %5824 = vmatmul.bf16.vlgmr.msra.gmra.mxu3 %v12552_v33  ;;  %v8113_v39 = vor.u32 %v9849_v20, %v8110_v22  ;;  %v10010_v40 = vld [vmem:[%s15272_s7 + $0x904] sm:$0xf]  ;;  %v7724_v20 = vld [vmem:[%s15272_s7 + $0xf0] sm:$0xf]  ;;  %v9755_v22 = vld [vmem:[%s15272_s7 + $0x108] sm:$0xf0] }
 0x2ce   :  { %5868 = vmatpush.bf16.msrb.mxu3 %v8925_v17  ;;  %5829 = vmatpush.bf16.msrb.mxu0 %v8253_v16  ;;  %v9257_v17 = vor.u32 %v10139_v2, %v9256_v5  ;;  %v9228_v16 = vld [vmem:[%s15272_s7 + $0xcb8] sm:$0xf]  ;;  %v9762_v5 = vld [vmem:[%s15272_s7 + $0x140] sm:$0xf0] }
 0x2cf   :  { %5790 = vmatpush.bf16.msra.mxu1 %v9369_v6  ;;  %v10132_v6 = vld [vmem:[%s15272_s7 + $0xcd0] sm:$0xf0] }
 0x2d0   :  { %5810 = vmatpush.bf16.msra.mxu2 %v7609_v52  ;;  %5746 = vmatmul.bf16.vlgmr.msrb.gmra.mxu1 %v12662_v35  ;;  %v8197_v52 = vor.u32 %v9870_v45, %v8194_v28  ;;  %v9229_v43 = vor.u32 %v10132_v6, %v9228_v16  ;;  %v9200_v45 = vld [vmem:[%s15272_s7 + $0xc80] sm:$0xf]  ;;  %v10125_v28 = vld [vmem:[%s15272_s7 + $0xc98] sm:$0xf0]  ;;  %v8446_v16 = vld [vmem:[%s15272_s7 + $0x6b4] sm:$0xf0] }
 0x2d1   :  { %v9201_v57 = vor.u32 %v10125_v28, %v9200_v45  ;;  %v7948_v45 = vld [vmem:[%s15272_s7 + $0x2b0] sm:$0xf]  ;;  %v9811_v28 = vld [vmem:[%s15272_s7 + $0x2c8] sm:$0xf0] }
 0x2d2   :  { %5869 = vmatpush.bf16.msrb.mxu3 %v8897_v41  ;;  %5830 = vmatpush.bf16.msrb.mxu0 %v8225_v38  ;;  %v8754_v41 = vld [vmem:[%s15272_s7 + $0x91c] sm:$0xf0] }
 0x2d3   :  { %5811 = vmatmul.bf16.vlgmr.msra.gmra.mxu2 %v12581_v49  ;;  %5791 = vmatpush.bf16.msra.mxu1 %v9341_v32  ;;  %v9842_v32 = vld [vmem:[%s15272_s7 + $0x3c4] sm:$0xf] }
 0x2d4   :  { %5855 = vmatpush.bf16.msrb.mxu2 %v8701_v19  ;;  %v9313_v19 = vor.u32 %v10153_v47, %v9312_v44  ;;  %v7809_v44 = vor.u32 %v9776_v34, %v7808_v31  ;;  %v8757_v47 = vor.u32 %v10010_v40, %v8754_v41  ;;  %v5567_v55 = vpop.f32.mrf.mxu3  ;;  %v9818_v31 = vld [vmem:[%s15272_s7 + $0x300] sm:$0xf0]  ;;  %v8449_v34 = vor.u32 %v9933_v14, %v8446_v16  ;;  %v10073_v14 = vld [vmem:[%s15272_s7 + $0xafc] sm:$0xf]  ;;  %v7612_v16 = vld [vmem:[%s15272_s7 + $0x10] sm:$0xf] }
 0x2d5   :  { %v9926_v40 = vld [vmem:[%s15272_s7 + $0x664] sm:$0xf] }
 0x2d6   :  { %5870 = vmatpush.bf16.msrb.mxu3 %v8869_v51  ;;  %5831 = vmatpush.bf16.msrb.mxu0 %v8197_v52  ;;  %v13768_v1 = vpop.f32.mrf.mxu2  ;;  %v9172_v52 = vld [vmem:[%s15272_s7 + $0xc48] sm:$0xf]  ;;  %v10094_v41 = vld [vmem:[%s15272_s7 + $0xba4] sm:$0xf] }
 0x2d7   :  { %5792 = vmatpush.bf16.msra.mxu1 %v9313_v19  ;;  %v10003_v19 = vld [vmem:[%s15272_s7 + $0x8cc] sm:$0xf]  ;;  %v9173_v2 = vor.u32 %v10118_v25, %v9172_v52  ;;  %v9062_v52 = vld [vmem:[%s15272_s7 + $0xb84] sm:$0xf0] }
 0x2d8   :  { %5856 = vmatpush.bf16.msrb.mxu2 %v8673_v37  ;;  %v8138_v37 = vld [vmem:[%s15272_s7 + $0x44c] sm:$0xf0]  ;;  %v8390_v25 = vld [vmem:[%s15272_s7 + $0x644] sm:$0xf0] }
 0x2d9   :  { %v8141_v12 = vor.u32 %v9856_v7, %v8138_v37  ;;  %v8057_v7 = vor.u32 %v9835_v21, %v8054_v58  ;;  %v8033_v37 = vor.u32 %v9832_v60, %v8032_v59  ;;  %v7668_v21 = vld [vmem:[%s15272_s7 + $0x80] sm:$0xf]  ;;  %v7920_v59 = vld [vmem:[%s15272_s7 + $0x278] sm:$0xf]  ;;  %v9804_v60 = vld [vmem:[%s15272_s7 + $0x290] sm:$0xf0] }
 0x2da   :  { %5871 = vmatpush.bf16.msrb.mxu3 %v8841_v62  ;;  %5832 = vmatpush.bf16.msrb.mxu0 %v8169_v63  ;;  %v9940_v62 = vld [vmem:[%s15272_s7 + $0x6d4] sm:$0xf] }
 0x2db   :  { %5793 = vmatpush.bf16.msra.mxu1 %v9285_v4  ;;  %v10108_v63 = vld [vmem:[%s15272_s7 + $0xc14] sm:$0xf]  ;;  %v8474_v4 = vld [vmem:[%s15272_s7 + $0x6ec] sm:$0xf0] }
 0x2dc   :  { %5857 = vmatpush.bf16.msrb.mxu2 %v8645_v46  ;;  %v9947_v46 = vld [vmem:[%s15272_s7 + $0x70c] sm:$0xf]  ;;  %v9149_v8 = vor.u32 %v10108_v63, %v9146_v29  ;;  %v9912_v29 = vld [vmem:[%s15272_s7 + $0x5f4] sm:$0xf] }
 0x2dd   :  { %v8505_v24 = vor.u32 %v9947_v46, %v8502_v27  ;;  %v13911_v46 = vpop.f32.mrf.mxu3 }
 0x2de   :  { %5872 = vmatpush.bf16.msrb.mxu3 %v8813_v10  ;;  %5833 = vmatpush.bf16.msrb.mxu0 %v8141_v12  ;;  %v5606_v38 = vpop.f32.mrf.mxu2  ;;  %v9825_v10 = vld [vmem:[%s15272_s7 + $0x338] sm:$0xf0]  ;;  %v8477_v12 = vor.u32 %v9940_v62, %v8474_v4  ;;  %v8393_v62 = vor.u32 %v9919_v56, %v8390_v25  ;;  %v9034_v4 = vld [vmem:[%s15272_s7 + $0xb4c] sm:$0xf0]  ;;  %v10059_v25 = vld [vmem:[%s15272_s7 + $0xa8c] sm:$0xf] }
 0x2df   :  { %5794 = vmatpush.bf16.msra.mxu1 %v9257_v17  ;;  %v10101_v17 = vld [vmem:[%s15272_s7 + $0xbdc] sm:$0xf]  ;;  %v8005_v6 = vor.u32 %v9825_v10, %v8004_v9  ;;  %v9090_v38 = vld [vmem:[%s15272_s7 + $0xbbc] sm:$0xf0] }
 0x2e0   :  { %5858 = vmatpush.bf16.msrb.mxu2 %v8617_v11  ;;  %v8082_v11 = vld [vmem:[%s15272_s7 + $0x3dc] sm:$0xf0]  ;;  %v9797_v9 = vld [vmem:[%s15272_s7 + $0x258] sm:$0xf0] }
 0x2e1   :  { %v8085_v51 = vor.u32 %v9842_v32, %v8082_v11  ;;  %v9748_v32 = vld [vmem:[%s15272_s7 + $0xd0] sm:$0xf0] }
 0x2e2   :  { %5873 = vmatpush.bf16.msrb.mxu3 %v8785_v30  ;;  %5834 = vmatpush.bf16.msrb.mxu0 %v8113_v39  ;;  %v7976_v30 = vld [vmem:[%s15272_s7 + $0x2e8] sm:$0xf]  ;;  %v7725_v39 = vor.u32 %v9755_v22, %v7724_v20  ;;  %v9727_v20 = vld [vmem:[%s15272_s7 + $0x28] sm:$0xf0] }
 0x2e3   :  { %5795 = vmatpush.bf16.msra.mxu1 %v9229_v43  ;;  %v8418_v43 = vld [vmem:[%s15272_s7 + $0x67c] sm:$0xf0]  ;;  %v7977_v11 = vor.u32 %v9818_v31, %v7976_v30 }
 0x2e4   :  { %5859 = vmatpush.bf16.msrb.mxu2 %v8589_v54  ;;  %v8726_v54 = vld [vmem:[%s15272_s7 + $0x8e4] sm:$0xf0] }
 0x2e5   :  { %v8729_v0 = vor.u32 %v10003_v19, %v8726_v54  ;;  %v9741_v19 = vld [vmem:[%s15272_s7 + $0x98] sm:$0xf0]  ;;  %v7949_v54 = vor.u32 %v9811_v28, %v7948_v45  ;;  %v8306_v45 = vld [vmem:[%s15272_s7 + $0x59c] sm:$0xf0] }
 0x2e6   :  { %5874 = vmatpush.bf16.msrb.mxu3 %v8757_v47  ;;  %5835 = vmatpush.bf16.msrb.mxu0 %v8085_v51  ;;  %v8421_v47 = vor.u32 %v9926_v40, %v8418_v43  ;;  %v10087_v51 = vld [vmem:[%s15272_s7 + $0xb6c] sm:$0xf]  ;;  %v13964_v55 = vpop.f32.mrf.mxu0  ;;  %v7669_v63 = vor.u32 %v9741_v19, %v7668_v21  ;;  %v9790_v40 = vld [vmem:[%s15272_s7 + $0x220] sm:$0xf0]  ;;  %v7613_v43 = vor.u32 %v9727_v20, %v7612_v16  ;;  %v7836_v21 = vld [vmem:[%s15272_s7 + $0x1d0] sm:$0xf] }
 0x2e7   :  { %5796 = vmatpush.bf16.msra.mxu1 %v9201_v57  ;;  %v5619_v57 = vpop.f32.mrf.mxu3  ;;  %v9065_v58 = vor.u32 %v10087_v51, %v9062_v52  ;;  %v9891_v51 = vld [vmem:[%s15272_s7 + $0x54c] sm:$0xf]  ;;  %v8278_v52 = vld [vmem:[%s15272_s7 + $0x564] sm:$0xf0]  ;;  %v8228_v16 = vld [vmem:[%s15272_s7 + $0x4e0] sm:$0xf] }
 0x2e8   :  { %5860 = vmatpush.bf16.msrb.mxu2 %v8561_v26  ;;  %v7752_v26 = vld [vmem:[%s15272_s7 + $0x128] sm:$0xf]  ;;  %v9783_v19 = vld [vmem:[%s15272_s7 + $0x1e8] sm:$0xf0]  ;;  %v9881_v20 = vld [vmem:[%s15272_s7 + $0x4f8] sm:$0xf0] }
 0x2e9   :  { %v7753_v13 = vor.u32 %v9762_v5, %v7752_v26  ;;  %v8362_v26 = vld [vmem:[%s15272_s7 + $0x60c] sm:$0xf0]  ;;  %v7640_v5 = vld [vmem:[%s15272_s7 + $0x48] sm:$0xf] }
 0x2ea   :  { %5875 = vmatpush.bf16.msrb.mxu3 %v8729_v0  ;;  %5836 = vmatpush.bf16.msrb.mxu0 %v8057_v7  ;;  %v10080_v0 = vld [vmem:[%s15272_s7 + $0xb34] sm:$0xf]  ;;  %v9734_v7 = vld [vmem:[%s15272_s7 + $0x60] sm:$0xf0]  ;;  %v8365_v10 = vor.u32 %v9912_v29, %v8362_v26  ;;  %v8950_v57 = vld [vmem:[%s15272_s7 + $0xaa4] sm:$0xf0] }
 0x2eb   :  { %5797 = vmatpush.bf16.msra.mxu1 %v9173_v2  ;;  %v9037_v2 = vor.u32 %v10080_v0, %v9034_v4  ;;  %v9888_v29 = vld [vmem:[%s15272_s7 + $0x530] sm:$0xf0]  ;;  %v7837_v0 = vor.u32 %v9783_v19, %v7836_v21  ;;  %v9370_v4 = vld [vmem:[%s15272_s7 + $0xdec] sm:$0xf0]  ;;  %v8648_v26 = vld [vmem:[%s15272_s7 + $0x828] sm:$0xf] }
 0x2ec   :  { %5861 = vmatpush.bf16.msrb.mxu2 %v8533_v18  ;;  %v9118_v18 = vld [vmem:[%s15272_s7 + $0xbf4] sm:$0xf0]  ;;  %v10143_v21 = vld [vmem:[%s15272_s7 + $0xd2c] sm:$0xf]  ;;  %v8172_v19 = vld [vmem:[%s15272_s7 + $0x470] sm:$0xf] }
 0x2ed   :  { %v9121_v27 = vor.u32 %v10101_v17, %v9118_v18  ;;  %5837 = vmatmul.bf16.vlgmr.msrb.gmra.mxu0 %v12684_v48  ;;  %5876 = vmatmul.bf16.vlgmr.msrb.gmra.mxu3 %v12965_v23  ;;  %v9006_v17 = vld [vmem:[%s15272_s7 + $0xb14] sm:$0xf0] }
 0x2ee   :  { %5920 = vmatpush.bf16.msra.mxu3 %v8033_v37  ;;  %5881 = vmatpush.bf16.msra.mxu0 %v9149_v8  ;;  %v7921_v37 = vor.u32 %v9804_v60, %v7920_v59  ;;  %v7892_v8 = vld [vmem:[%s15272_s7 + $0x240] sm:$0xf]  ;;  %v8334_v18 = vld [vmem:[%s15272_s7 + $0x5d4] sm:$0xf0]  ;;  %v5580_v30 = vpop.f32.mrf.mxu0  ;;  %v10056_v59 = vld [vmem:[%s15272_s7 + $0xa70] sm:$0xf0] }
 0x2ef   :  { %5842 = vmatpush.bf16.msrb.mxu1 %v8477_v12  ;;  %v7641_v12 = vor.u32 %v9734_v7, %v7640_v5  ;;  %v7893_v22 = vor.u32 %v9797_v9, %v7892_v8  ;;  %v9986_v5 = vld [vmem:[%s15272_s7 + $0x840] sm:$0xf0]  ;;  %v8281_v9 = vor.u32 %v9891_v51, %v8278_v52  ;;  %v10035_v51 = vld [vmem:[%s15272_s7 + $0x9c8] sm:$0xf0] }
 0x2f0   :  { %5862 = vmatpush.bf16.msrb.mxu2 %v8505_v24  ;;  %v7696_v24 = vld [vmem:[%s15272_s7 + $0xb8] sm:$0xf]  ;;  %5798 = vmatmul.bf16.vlgmr.msra.gmra.mxu1 %v13299_v53  ;;  %v14022_v31 = vpop.f32.mrf.mxu3 }
 0x2f1   :  { %v7697_v50 = vor.u32 %v9748_v32, %v7696_v24  ;;  %v10066_v24 = vld [vmem:[%s15272_s7 + $0xac4] sm:$0xf]  ;;  %v8978_v32 = vld [vmem:[%s15272_s7 + $0xadc] sm:$0xf0] }
 0x2f2   :  { %5921 = vmatpush.bf16.msra.mxu3 %v8005_v6  ;;  %5882 = vmatpush.bf16.msra.mxu0 %v9121_v27  ;;  %v8704_v6 = vld [vmem:[%s15272_s7 + $0x898] sm:$0xf]  ;;  %v10000_v27 = vld [vmem:[%s15272_s7 + $0x8b0] sm:$0xf0]  ;;  %v8981_v56 = vor.u32 %v10066_v24, %v8978_v32  ;;  %v8200_v24 = vld [vmem:[%s15272_s7 + $0x4a8] sm:$0xf] }
 0x2f3   :  { %5863 = vmatmul.bf16.vlgmr.msrb.gmra.mxu2 %v12772_v42  ;;  %5843 = vmatpush.bf16.msrb.mxu1 %v8449_v34  ;;  %v9009_v34 = vor.u32 %v10073_v14, %v9006_v17  ;;  %v8649_v17 = vor.u32 %v9986_v5, %v8648_v26  ;;  %v9874_v32 = vld [vmem:[%s15272_s7 + $0x4c0] sm:$0xf0] }
 0x2f4   :  { %5907 = vmatpush.bf16.msra.mxu2 %v7809_v44  ;;  %v9093_v44 = vor.u32 %v10094_v41, %v9090_v38 }
 0x2f6   :  { %5922 = vmatpush.bf16.msra.mxu3 %v7977_v11  ;;  %5883 = vmatpush.bf16.msra.mxu0 %v9093_v44  ;;  %v8705_v11 = vor.u32 %v10000_v27, %v8704_v6  ;;  %v9898_v44 = vld [vmem:[%s15272_s7 + $0x584] sm:$0xf]  ;;  %v14091_v7 = vpop.f32.mrf.mxu0  ;;  %v8620_v6 = vld [vmem:[%s15272_s7 + $0x7f0] sm:$0xf]  ;;  %v9979_v27 = vld [vmem:[%s15272_s7 + $0x808] sm:$0xf0] }
 0x2f7   :  { %5844 = vmatpush.bf16.msrb.mxu1 %v8421_v47  ;;  %v8676_v47 = vld [vmem:[%s15272_s7 + $0x860] sm:$0xf] }
 0x2f8   :  { %5908 = vmatpush.bf16.msra.mxu2 %v7781_v61  ;;  %v13972_v61 = vpop.f32.mrf.mxu2 }
 0x2fa   :  { %5923 = vmatpush.bf16.msra.mxu3 %v7949_v54  ;;  %5884 = vmatpush.bf16.msra.mxu0 %v9065_v58  ;;  %v8309_v54 = vor.u32 %v9898_v44, %v8306_v45  ;;  %v8928_v58 = vld [vmem:[%s15272_s7 + $0xa58] sm:$0xf]  ;;  %v9972_v45 = vld [vmem:[%s15272_s7 + $0x7d0] sm:$0xf0] }
 0x2fb   :  { %5845 = vmatpush.bf16.msrb.mxu1 %v8393_v62  ;;  %v10164_v62 = vld [vmem:[%s15272_s7 + $0xdd4] sm:$0xf]  ;;  %v8929_v8 = vor.u32 %v10056_v59, %v8928_v58  ;;  %v8592_v44 = vld [vmem:[%s15272_s7 + $0x7b8] sm:$0xf]  ;;  %v9286_v58 = vld [vmem:[%s15272_s7 + $0xd44] sm:$0xf0] }
 0x2fc   :  { %5909 = vmatpush.bf16.msra.mxu2 %v7753_v13  ;;  %v9905_v13 = vld [vmem:[%s15272_s7 + $0x5bc] sm:$0xf]  ;;  %v9373_v14 = vor.u32 %v10164_v62, %v9370_v4  ;;  %v8564_v59 = vld [vmem:[%s15272_s7 + $0x780] sm:$0xf]  ;;  %v9289_v26 = vor.u32 %v10143_v21, %v9286_v58 }
 0x2fd   :  { %v8337_v38 = vor.u32 %v9905_v13, %v8334_v18  ;;  %v10049_v13 = vld [vmem:[%s15272_s7 + $0xa38] sm:$0xf0] }
 0x2fe   :  { %5924 = vmatpush.bf16.msra.mxu3 %v7921_v37  ;;  %5885 = vmatpush.bf16.msra.mxu0 %v9037_v2  ;;  %v5671_v37 = vpop.f32.mrf.mxu3  ;;  %v8953_v2 = vor.u32 %v10059_v25, %v8950_v57  ;;  %v10157_v18 = vld [vmem:[%s15272_s7 + $0xd9c] sm:$0xf]  ;;  %v8593_v25 = vor.u32 %v9972_v45, %v8592_v44  ;;  %v5566_v57 = vadd.f32 %v13794_v15, %v13594_v36  ;;  %v8816_v36 = vld [vmem:[%s15272_s7 + $0x978] sm:$0xf]  ;;  %v10028_v15 = vld [vmem:[%s15272_s7 + $0x990] sm:$0xf0] }
 0x2ff   :  { %5846 = vmatpush.bf16.msrb.mxu1 %v8365_v10  ;;  %v8144_v37 = vld [vmem:[%s15272_s7 + $0x438] sm:$0xf]  ;;  %v8760_v45 = vld [vmem:[%s15272_s7 + $0x908] sm:$0xf] }
 0x300   :  { %5910 = vmatpush.bf16.msra.mxu2 %v7725_v39  ;;  %v7864_v39 = vld [vmem:[%s15272_s7 + $0x208] sm:$0xf]  ;;  %v5658_v41 = vpop.f32.mrf.mxu2 }
 0x301   :  { %v7865_v28 = vor.u32 %v9790_v40, %v7864_v39  ;;  %v8872_v39 = vld [vmem:[%s15272_s7 + $0x9e8] sm:$0xf]  ;;  %v10042_v40 = vld [vmem:[%s15272_s7 + $0xa00] sm:$0xf0] }
 0x302   :  { %5925 = vmatpush.bf16.msra.mxu3 %v7893_v22  ;;  %5886 = vmatpush.bf16.msra.mxu0 %v9009_v34  ;;  %v9342_v22 = vld [vmem:[%s15272_s7 + $0xdb4] sm:$0xf0]  ;;  %v8229_v34 = vor.u32 %v9881_v20, %v8228_v16  ;;  %v8788_v20 = vld [vmem:[%s15272_s7 + $0x940] sm:$0xf] }
 0x303   :  { %5847 = vmatpush.bf16.msrb.mxu1 %v8337_v38  ;;  %v9345_v41 = vor.u32 %v10157_v18, %v9342_v22  ;;  %v8621_v38 = vor.u32 %v9979_v27, %v8620_v6  ;;  %v10021_v22 = vld [vmem:[%s15272_s7 + $0x958] sm:$0xf0] }
 0x304   :  { %5911 = vmatpush.bf16.msra.mxu2 %v7697_v50  ;;  %v9993_v50 = vld [vmem:[%s15272_s7 + $0x878] sm:$0xf0] }
 0x305   :  { %v8677_v60 = vor.u32 %v9993_v50, %v8676_v47  ;;  %v8873_v47 = vor.u32 %v10042_v40, %v8872_v39  ;;  %v8201_v50 = vor.u32 %v9874_v32, %v8200_v24  ;;  %v9853_v39 = vld [vmem:[%s15272_s7 + $0x418] sm:$0xf0]  ;;  %v9230_v40 = vld [vmem:[%s15272_s7 + $0xcd4] sm:$0xf0] }
 0x306   :  { %5926 = vmatpush.bf16.msra.mxu3 %v7865_v28  ;;  %5887 = vmatpush.bf16.msra.mxu0 %v8981_v56  ;;  %v5632_v28 = vpop.f32.mrf.mxu0  ;;  %v8844_v56 = vld [vmem:[%s15272_s7 + $0x9b0] sm:$0xf]  ;;  %v9773_v24 = vld [vmem:[%s15272_s7 + $0x19c] sm:$0xf]  ;;  %v7810_v32 = vld [vmem:[%s15272_s7 + $0x1b4] sm:$0xf0] }
 0x307   :  { %5848 = vmatpush.bf16.msrb.mxu1 %v8309_v54  ;;  %v9867_v54 = vld [vmem:[%s15272_s7 + $0x488] sm:$0xf0]  ;;  %v8845_v62 = vor.u32 %v10035_v51, %v8844_v56  ;;  %v10014_v28 = vld [vmem:[%s15272_s7 + $0x920] sm:$0xf0]  ;;  %v7813_v58 = vor.u32 %v9773_v24, %v7810_v32  ;;  %v8006_v24 = vld [vmem:[%s15272_s7 + $0x33c] sm:$0xf0] }
 0x308   :  { %5912 = vmatpush.bf16.msra.mxu2 %v7669_v63  ;;  %v8256_v63 = vld [vmem:[%s15272_s7 + $0x518] sm:$0xf] }
 0x309   :  { %v8257_v10 = vor.u32 %v9888_v29, %v8256_v63  ;;  %v5579_v63 = vadd.f32 %v13964_v55, %v5566_v57  ;;  %v8173_v29 = vor.u32 %v9867_v54, %v8172_v19  ;;  %v10136_v55 = vld [vmem:[%s15272_s7 + $0xcf4] sm:$0xf] }
 0x30a   :  { %5927 = vmatpush.bf16.msra.mxu3 %v7837_v0  ;;  %5888 = vmatpush.bf16.msra.mxu0 %v8953_v2  ;;  %v5591_v0 = vpop.f32.mrf.mxu1  ;;  %v9860_v2 = vld [vmem:[%s15272_s7 + $0x450] sm:$0xf0] }
 0x30b   :  { %5849 = vmatpush.bf16.msrb.mxu1 %v8281_v9  ;;  %v9258_v9 = vld [vmem:[%s15272_s7 + $0xd0c] sm:$0xf0]  ;;  %v8145_v16 = vor.u32 %v9860_v2, %v8144_v37  ;;  %v9839_v2 = vld [vmem:[%s15272_s7 + $0x3a8] sm:$0xf0] }
 0x30c   :  { %5913 = vmatpush.bf16.msra.mxu2 %v7641_v12  ;;  %v8900_v12 = vld [vmem:[%s15272_s7 + $0xa20] sm:$0xf]  ;;  %v9261_v6 = vor.u32 %v10136_v55, %v9258_v9  ;;  %v10007_v55 = vld [vmem:[%s15272_s7 + $0x8e8] sm:$0xf0]  ;;  %v8034_v9 = vld [vmem:[%s15272_s7 + $0x374] sm:$0xf0] }
 0x30d   :  { %v8901_v30 = vor.u32 %v10049_v13, %v8900_v12  ;;  %5889 = vmatmul.bf16.vlgmr.msra.gmra.mxu0 %v13136_v3  ;;  %5928 = vmatmul.bf16.vlgmr.msra.gmra.mxu3 %v12552_v33  ;;  %v9958_v12 = vld [vmem:[%s15272_s7 + $0x760] sm:$0xf0] }
 0x30e   :  { %5972 = vmatpush.bf16.msrb.mxu3 %v8929_v8  ;;  %5933 = vmatpush.bf16.msrb.mxu0 %v8257_v10  ;;  %v5592_v8 = vadd.f32 %v5591_v0, %v5579_v63  ;;  %v8536_v10 = vld [vmem:[%s15272_s7 + $0x748] sm:$0xf]  ;;  %v14195_v13 = vpop.f32.mrf.mxu0  ;;  %v8761_v63 = vor.u32 %v10014_v28, %v8760_v45  ;;  %v10115_v0 = vld [vmem:[%s15272_s7 + $0xc4c] sm:$0xf]  ;;  %v9124_v45 = vld [vmem:[%s15272_s7 + $0xbe0] sm:$0xf] }
 0x30f   :  { %5894 = vmatpush.bf16.msra.mxu1 %v9373_v14  ;;  %v8817_v14 = vor.u32 %v10028_v15, %v8816_v36  ;;  %v8537_v27 = vor.u32 %v9958_v12, %v8536_v10  ;;  %v7782_v36 = vld [vmem:[%s15272_s7 + $0x17c] sm:$0xf0]  ;;  %v10105_v28 = vld [vmem:[%s15272_s7 + $0xbf8] sm:$0xf0] }
 0x310   :  { %5914 = vmatpush.bf16.msra.mxu2 %v7613_v43  ;;  %v10150_v43 = vld [vmem:[%s15272_s7 + $0xd64] sm:$0xf]  ;;  %5850 = vmatmul.bf16.vlgmr.msrb.gmra.mxu1 %v12662_v35  ;;  %10171 = vtanh.f32 %v5592_v8  ;;  %v9829_v8 = vld [vmem:[%s15272_s7 + $0x35c] sm:$0xf] }
 0x312   :  { %5973 = vmatpush.bf16.msrb.mxu3 %v8901_v30  ;;  %5934 = vmatpush.bf16.msrb.mxu0 %v8229_v34  ;;  %v10129_v30 = vld [vmem:[%s15272_s7 + $0xcbc] sm:$0xf]  ;;  %v8116_v34 = vld [vmem:[%s15272_s7 + $0x400] sm:$0xf] }
 0x313   :  { %5915 = vmatmul.bf16.vlgmr.msra.gmra.mxu2 %v12581_v49  ;;  %5895 = vmatpush.bf16.msra.mxu1 %v9345_v41  ;;  %v8508_v41 = vld [vmem:[%s15272_s7 + $0x710] sm:$0xf]  ;;  %v8117_v44 = vor.u32 %v9853_v39, %v8116_v34  ;;  %v9233_v56 = vor.u32 %v10129_v30, %v9230_v40  ;;  %v8037_v34 = vor.u32 %v9829_v8, %v8034_v9  ;;  %v10091_v8 = vld [vmem:[%s15272_s7 + $0xb88] sm:$0xf0] }
 0x314   :  { %5959 = vmatpush.bf16.msrb.mxu2 %v8705_v11  ;;  %v9314_v11 = vld [vmem:[%s15272_s7 + $0xd7c] sm:$0xf0]  ;;  %v9923_v9 = vld [vmem:[%s15272_s7 + $0x648] sm:$0xf0] }
 0x315   :  { %v9317_v52 = vor.u32 %v10150_v43, %v9314_v11  ;;  %v8789_v43 = vor.u32 %v10021_v22, %v8788_v20  ;;  %v9759_v22 = vld [vmem:[%s15272_s7 + $0x12c] sm:$0xf] }
 0x316   :  { %5974 = vmatpush.bf16.msrb.mxu3 %v8873_v47  ;;  %5935 = vmatpush.bf16.msrb.mxu0 %v8201_v50  ;;  %v5708_v4 = vpop.f32.mrf.mxu2  ;;  %v5593_v47 = vpop.f32.mrf.mxu1 }
 0x317   :  { %5896 = vmatpush.bf16.msra.mxu1 %v9317_v52  ;;  %v5721_v50 = vpop.f32.mrf.mxu3  ;;  %v8088_v52 = vld [vmem:[%s15272_s7 + $0x3c8] sm:$0xf]  ;;  %v10172_v21 = vpop.eup %10171  ;;  %v9752_v47 = vld [vmem:[%s15272_s7 + $0xf4] sm:$0xf] }
 0x318   :  { %5960 = vmatpush.bf16.msrb.mxu2 %v8677_v60  ;;  %v9965_v60 = vld [vmem:[%s15272_s7 + $0x798] sm:$0xf0]  ;;  %6226 = vst [vmem:[#allocation2] sm:$0xff] %v10172_v21  ;;  %v7978_v21 = vld [vmem:[%s15272_s7 + $0x304] sm:$0xf0] }
 0x319   :  { %v8565_v5 = vor.u32 %v9965_v60, %v8564_v59  ;;  %v10122_v59 = vld [vmem:[%s15272_s7 + $0xc84] sm:$0xf]  ;;  %v9202_v60 = vld [vmem:[%s15272_s7 + $0xc9c] sm:$0xf0] }
 0x31a   :  { %5975 = vmatpush.bf16.msrb.mxu3 %v8845_v62  ;;  %5936 = vmatpush.bf16.msrb.mxu0 %v8173_v29  ;;  %v5684_v62 = vpop.f32.mrf.mxu0  ;;  %v9766_v29 = vld [vmem:[%s15272_s7 + $0x164] sm:$0xf]  ;;  %v9205_v37 = vor.u32 %v10122_v59, %v9202_v60  ;;  %v9096_v59 = vld [vmem:[%s15272_s7 + $0xba8] sm:$0xf] }
 0x31b   :  { %5897 = vmatpush.bf16.msra.mxu1 %v9289_v26  ;;  %v8060_v26 = vld [vmem:[%s15272_s7 + $0x390] sm:$0xf]  ;;  %v7785_v12 = vor.u32 %v9766_v29, %v7782_v36  ;;  %v10098_v60 = vld [vmem:[%s15272_s7 + $0xbc0] sm:$0xf0]  ;;  %v7698_v29 = vld [vmem:[%s15272_s7 + $0xd4] sm:$0xf0] }
 0x31c   :  { %5961 = vmatpush.bf16.msrb.mxu2 %v8649_v17  ;;  %v14200_v17 = vld [vmem:[%s15273_s8] sm:$0x7f]  ;;  %v8061_v30 = vor.u32 %v9839_v2, %v8060_v26  ;;  %v9808_v26 = vld [vmem:[%s15272_s7 + $0x2b4] sm:$0xf]  ;;  %v9068_v2 = vld [vmem:[%s15272_s7 + $0xb70] sm:$0xf] }
 0x31d   :  { %v3175_v18 = vperm.slane %v14200_v17, 2  ;;  %v3174_v19 = vperm.slane %v14200_v17, 1  ;;  %v9930_v62 = vld [vmem:[%s15272_s7 + $0x680] sm:$0xf0] }
 0x31e   :  { %5976 = vmatpush.bf16.msrb.mxu3 %v8817_v14  ;;  %5937 = vmatpush.bf16.msrb.mxu0 %v8145_v16  ;;  %v5710_v57 = vpop.f32.mrf.mxu2  ;;  %v8480_v14 = vld [vmem:[%s15272_s7 + $0x6d8] sm:$0xf]  ;;  %v10112_v16 = vld [vmem:[%s15272_s7 + $0xc30] sm:$0xf0]  ;;  %v5643_v39 = vpop.f32.mrf.mxu1 }
 0x31f   :  { %v5709_v11 = vadd.f32 %v5708_v4, %v3175_v18  ;;  %5898 = vmatpush.bf16.msra.mxu1 %v9261_v6  ;;  %v9174_v4 = vld [vmem:[%s15272_s7 + $0xc64] sm:$0xf0]  ;;  %v5605_v10 = vadd.f32 %v13768_v1, %v3174_v19  ;;  %v9152_v18 = vld [vmem:[%s15272_s7 + $0xc18] sm:$0xf]  ;;  %v9944_v1 = vld [vmem:[%s15272_s7 + $0x6f0] sm:$0xf0]  ;;  %v5723_v40 = vpop.f32.mrf.mxu3 }
 0x320   :  { %5962 = vmatpush.bf16.msrb.mxu2 %v8621_v38  ;;  %v9951_v38 = vld [vmem:[%s15272_s7 + $0x728] sm:$0xf0]  ;;  %v7754_v6 = vld [vmem:[%s15272_s7 + $0x144] sm:$0xf0]  ;;  %v8481_v32 = vor.u32 %v9944_v1, %v8480_v14  ;;  %v7922_v1 = vld [vmem:[%s15272_s7 + $0x294] sm:$0xf0] }
 0x321   :  { %v8509_v51 = vor.u32 %v9951_v38, %v8508_v41  ;;  %v14246_v54 = vadd.f32 %v5721_v50, %v5709_v11  ;;  %v9177_v41 = vor.u32 %v10115_v0, %v9174_v4  ;;  %v9153_v38 = vor.u32 %v10112_v16, %v9152_v18  ;;  %v7726_v50 = vld [vmem:[%s15272_s7 + $0x10c] sm:$0xf0]  ;;  %v9731_v40 = vld [vmem:[%s15272_s7 + $0x4c] sm:$0xf] }
 0x322   :  { %5977 = vmatpush.bf16.msrb.mxu3 %v8789_v43  ;;  %5938 = vmatpush.bf16.msrb.mxu0 %v8117_v44  ;;  %v9822_v43 = vld [vmem:[%s15272_s7 + $0x324] sm:$0xf]  ;;  %v7757_v11 = vor.u32 %v9759_v22, %v7754_v6  ;;  %v8452_v44 = vld [vmem:[%s15272_s7 + $0x6a0] sm:$0xf]  ;;  %v7729_v57 = vor.u32 %v9752_v47, %v7726_v50  ;;  %v9097_v4 = vor.u32 %v10098_v60, %v9096_v59  ;;  %v10077_v50 = vld [vmem:[%s15272_s7 + $0xb18] sm:$0xf0] }
 0x323   :  { %5899 = vmatpush.bf16.msra.mxu1 %v9233_v56  ;;  %v9069_v16 = vor.u32 %v10091_v8, %v9068_v2  ;;  %v9012_v47 = vld [vmem:[%s15272_s7 + $0xb00] sm:$0xf]  ;;  %v7866_v59 = vld [vmem:[%s15272_s7 + $0x224] sm:$0xf0]  ;;  %v8956_v2 = vld [vmem:[%s15272_s7 + $0xa90] sm:$0xf] }
 0x324   :  { %5963 = vmatpush.bf16.msrb.mxu2 %v8593_v25  ;;  %v9846_v25 = vld [vmem:[%s15272_s7 + $0x3e0] sm:$0xf0] }
 0x325   :  { %v8089_v15 = vor.u32 %v9846_v25, %v8088_v52  ;;  %v9125_v52 = vor.u32 %v10105_v28, %v9124_v45  ;;  %v9815_v25 = vld [vmem:[%s15272_s7 + $0x2ec] sm:$0xf] }
 0x326   :  { %5978 = vmatpush.bf16.msrb.mxu3 %v8761_v63  ;;  %v9745_v63 = vld [vmem:[%s15272_s7 + $0xbc] sm:$0xf]  ;;  %v5645_v0 = vpop.f32.mrf.mxu1 }
 0x327   :  { %5939 = vmatpush.bf16.msrb.mxu0 %v8089_v15  ;;  %5900 = vmatpush.bf16.msra.mxu1 %v9205_v37  ;;  %v7981_v15 = vor.u32 %v9815_v25, %v7978_v21  ;;  %v7701_v37 = vor.u32 %v9745_v63, %v7698_v29  ;;  %v9997_v21 = vld [vmem:[%s15272_s7 + $0x89c] sm:$0xf]  ;;  %v8984_v29 = vld [vmem:[%s15272_s7 + $0xac8] sm:$0xf] }
 0x328   :  { %5964 = vmatpush.bf16.msrb.mxu2 %v8565_v5  ;;  %v8732_v5 = vld [vmem:[%s15272_s7 + $0x8d0] sm:$0xf] }
 0x329   :  { %v8733_v20 = vor.u32 %v10007_v55, %v8732_v5  ;;  %v7950_v5 = vld [vmem:[%s15272_s7 + $0x2cc] sm:$0xf0] }
 0x32a   :  { %v7953_v18 = vor.u32 %v9808_v26, %v7950_v5  ;;  %v9902_v26 = vld [vmem:[%s15272_s7 + $0x5a0] sm:$0xf0] }
 0x32b   :  { %5979 = vmatpush.bf16.msrb.mxu3 %v8733_v20  ;;  %5940 = vmatpush.bf16.msrb.mxu0 %v8061_v30  ;;  %v9801_v20 = vld [vmem:[%s15272_s7 + $0x27c] sm:$0xf]  ;;  %v10084_v30 = vld [vmem:[%s15272_s7 + $0xb50] sm:$0xf0] }
 0x32c   :  { %5965 = vmatpush.bf16.msrb.mxu2 %v8537_v27  ;;  %v5618_v27 = vadd.f32 %v13911_v46, %v5605_v10  ;;  %5901 = vmatpush.bf16.msra.mxu1 %v9177_v41  ;;  %v9738_v10 = vld [vmem:[%s15272_s7 + $0x84] sm:$0xf]  ;;  %v7642_v41 = vld [vmem:[%s15272_s7 + $0x64] sm:$0xf0] }
 0x32e   :  { %v5631_v46 = vadd.f32 %v14091_v7, %v5618_v27  ;;  %v9937_v7 = vld [vmem:[%s15272_s7 + $0x6b8] sm:$0xf0]  ;;  %5941 = vmatmul.bf16.vlgmr.msrb.gmra.mxu0 %v12684_v48  ;;  %5980 = vmatmul.bf16.vlgmr.msrb.gmra.mxu3 %v12965_v23  ;;  %v8368_v27 = vld [vmem:[%s15272_s7 + $0x5f8] sm:$0xf] }
 0x32f   :  { %6024 = vmatpush.bf16.msra.mxu3 %v8037_v34  ;;  %5985 = vmatpush.bf16.msra.mxu0 %v9153_v38  ;;  %v8453_v19 = vor.u32 %v9937_v7, %v8452_v44  ;;  %v14409_v38 = vpop.f32.mrf.mxu0  ;;  %v7894_v44 = vld [vmem:[%s15272_s7 + $0x25c] sm:$0xf0]  ;;  %v7645_v7 = vor.u32 %v9731_v40, %v7642_v41  ;;  %v10168_v41 = vld [vmem:[%s15272_s7 + $0xdf0] sm:$0xf0] }
 0x330   :  { %5966 = vmatpush.bf16.msrb.mxu2 %v8509_v51  ;;  %v5644_v56 = vadd.f32 %v5643_v39, %v5631_v46  ;;  %v8009_v51 = vor.u32 %v9822_v43, %v8006_v24  ;;  %5946 = vmatpush.bf16.msrb.mxu1 %v8481_v32  ;;  %v9916_v39 = vld [vmem:[%s15272_s7 + $0x610] sm:$0xf0]  ;;  %v7925_v24 = vor.u32 %v9801_v20, %v7922_v1  ;;  %v5695_v46 = vpop.f32.mrf.mxu1 }
 0x331   :  { %5902 = vmatmul.bf16.vlgmr.msra.gmra.mxu1 %v13299_v53  ;;  %v8369_v28 = vor.u32 %v9916_v39, %v8368_v27  ;;  %v8930_v27 = vld [vmem:[%s15272_s7 + $0xa74] sm:$0xf0] }
 0x332   :  { %v5657_v36 = vadd.f32 %v13972_v61, %v5644_v56  ;;  %v8396_v61 = vld [vmem:[%s15272_s7 + $0x630] sm:$0xf]  ;;  %v9909_v56 = vld [vmem:[%s15272_s7 + $0x5d8] sm:$0xf0]  ;;  %v14448_v60 = vpop.f32.mrf.mxu3  ;;  %v8258_v39 = vld [vmem:[%s15272_s7 + $0x534] sm:$0xf0] }
 0x333   :  { %5967 = vmatmul.bf16.vlgmr.msrb.gmra.mxu2 %v12772_v42  ;;  %6025 = vmatpush.bf16.msra.mxu3 %v8009_v51  ;;  %v8397_v22 = vor.u32 %v9923_v9, %v8396_v61  ;;  %v9724_v51 = vld [vmem:[%s15272_s7 + $0x14] sm:$0xf]  ;;  %v8678_v61 = vld [vmem:[%s15272_s7 + $0x87c] sm:$0xf0] }
 0x334   :  { %6011 = vmatpush.bf16.msra.mxu2 %v7813_v58  ;;  %v8424_v58 = vld [vmem:[%s15272_s7 + $0x668] sm:$0xf]  ;;  %5986 = vmatpush.bf16.msra.mxu0 %v9125_v52  ;;  %v5670_v14 = vadd.f32 %v14022_v31, %v5657_v36  ;;  %v9040_v31 = vld [vmem:[%s15272_s7 + $0xb38] sm:$0xf]  ;;  %v7614_v52 = vld [vmem:[%s15272_s7 + $0x2c] sm:$0xf0] }
 0x335   :  { %5947 = vmatpush.bf16.msrb.mxu1 %v8453_v19  ;;  %v8425_v55 = vor.u32 %v9930_v62, %v8424_v58  ;;  %v9041_v32 = vor.u32 %v10084_v30, %v9040_v31  ;;  %v8706_v19 = vld [vmem:[%s15272_s7 + $0x8b4] sm:$0xf0]  ;;  %v9787_v58 = vld [vmem:[%s15272_s7 + $0x20c] sm:$0xf]  ;;  %v7617_v63 = vor.u32 %v9724_v51, %v7614_v52  ;;  %v10070_v36 = vld [vmem:[%s15272_s7 + $0xae0] sm:$0xf0] }
 0x336   :  { %v14398_v34 = vpop.f32.mrf.mxu2  ;;  %v5683_v43 = vadd.f32 %v14195_v13, %v5670_v14  ;;  %v8340_v13 = vld [vmem:[%s15272_s7 + $0x5c0] sm:$0xf]  ;;  %v8709_v0 = vor.u32 %v9997_v21, %v8706_v19  ;;  %v8985_v9 = vor.u32 %v10070_v36, %v8984_v29  ;;  %v10063_v14 = vld [vmem:[%s15272_s7 + $0xaa8] sm:$0xf0]  ;;  %v9885_v30 = vld [vmem:[%s15272_s7 + $0x51c] sm:$0xf] }
 0x337   :  { %6026 = vmatpush.bf16.msra.mxu3 %v7981_v15  ;;  %v8341_v62 = vor.u32 %v9909_v56, %v8340_v13  ;;  %v5736_v5 = vpop.f32.mrf.mxu0  ;;  %v9878_v56 = vld [vmem:[%s15272_s7 + $0x4e4] sm:$0xf]  ;;  %v8230_v51 = vld [vmem:[%s15272_s7 + $0x4fc] sm:$0xf0]  ;;  %v10161_v52 = vld [vmem:[%s15272_s7 + $0xdb8] sm:$0xf0] }
 0x338   :  { %6012 = vmatpush.bf16.msra.mxu2 %v7785_v12  ;;  %v7670_v12 = vld [vmem:[%s15272_s7 + $0x9c] sm:$0xf0]  ;;  %5987 = vmatpush.bf16.msra.mxu0 %v9097_v4  ;;  %v5696_v45 = vadd.f32 %v5695_v46, %v5683_v43  ;;  %v8312_v4 = vld [vmem:[%s15272_s7 + $0x588] sm:$0xf]  ;;  %v5697_v8 = vpop.f32.mrf.mxu1  ;;  %v9983_v43 = vld [vmem:[%s15272_s7 + $0x82c] sm:$0xf]  ;;  %v8957_v46 = vor.u32 %v10063_v14, %v8956_v2 }
 0x339   :  { %5948 = vmatpush.bf16.msrb.mxu1 %v8425_v55  ;;  %v7673_v6 = vor.u32 %v9738_v10, %v7670_v12  ;;  %v7869_v55 = vor.u32 %v9787_v58, %v7866_v59  ;;  %v8284_v10 = vld [vmem:[%s15272_s7 + $0x550] sm:$0xf]  ;;  %v9895_v12 = vld [vmem:[%s15272_s7 + $0x568] sm:$0xf0]  ;;  %v8313_v1 = vor.u32 %v9902_v26, %v8312_v4  ;;  %v8874_v59 = vld [vmem:[%s15272_s7 + $0xa04] sm:$0xf0] }
 0x33a   :  { %10173 = vtanh.f32 %v5696_v45  ;;  %v8261_v45 = vor.u32 %v9885_v30, %v8258_v39  ;;  %v8622_v21 = vld [vmem:[%s15272_s7 + $0x80c] sm:$0xf0]  ;;  %v10039_v58 = vld [vmem:[%s15272_s7 + $0x9ec] sm:$0xf]  ;;  %v9320_v29 = vld [vmem:[%s15272_s7 + $0xd68] sm:$0xf] }
 0x33b   :  { %6027 = vmatpush.bf16.msra.mxu3 %v7953_v18  ;;  %v9780_v18 = vld [vmem:[%s15272_s7 + $0x1d4] sm:$0xf]  ;;  %v9871_v36 = vld [vmem:[%s15272_s7 + $0x4ac] sm:$0xf]  ;;  %v9969_v4 = vld [vmem:[%s15272_s7 + $0x7bc] sm:$0xf]  ;;  %v8877_v5 = vor.u32 %v10039_v58, %v8874_v59 }
 0x33c   :  { %6013 = vmatpush.bf16.msra.mxu2 %v7757_v11  ;;  %5988 = vmatpush.bf16.msra.mxu0 %v9069_v16  ;;  %v9794_v11 = vld [vmem:[%s15272_s7 + $0x244] sm:$0xf]  ;;  %v7838_v16 = vld [vmem:[%s15272_s7 + $0x1ec] sm:$0xf0]  ;;  %v8594_v26 = vld [vmem:[%s15272_s7 + $0x7d4] sm:$0xf0] }
 0x33d   :  { %5949 = vmatpush.bf16.msrb.mxu1 %v8397_v22  ;;  %v7897_v25 = vor.u32 %v9794_v11, %v7894_v44  ;;  %v9376_v22 = vld [vmem:[%s15272_s7 + $0xdd8] sm:$0xf]  ;;  %v7841_v40 = vor.u32 %v9780_v18, %v7838_v16  ;;  %v5775_v11 = vpop.f32.mrf.mxu3  ;;  %v8285_v44 = vor.u32 %v9895_v12, %v8284_v10  ;;  %v8597_v8 = vor.u32 %v9969_v4, %v8594_v26  ;;  %v9864_v10 = vld [vmem:[%s15272_s7 + $0x474] sm:$0xf]  ;;  %v8174_v12 = vld [vmem:[%s15272_s7 + $0x48c] sm:$0xf0] }
 0x33e   :  { %v5762_v15 = vpop.f32.mrf.mxu2  ;;  %v9377_v13 = vor.u32 %v10168_v41, %v9376_v22  ;;  %v10147_v14 = vld [vmem:[%s15272_s7 + $0xd48] sm:$0xf0]  ;;  %v9962_v18 = vld [vmem:[%s15272_s7 + $0x784] sm:$0xf]  ;;  %v8566_v16 = vld [vmem:[%s15272_s7 + $0x79c] sm:$0xf0] }
 0x33f   :  { %6028 = vmatpush.bf16.msra.mxu3 %v7925_v24  ;;  %v8650_v24 = vld [vmem:[%s15272_s7 + $0x844] sm:$0xf0]  ;;  %v10025_v22 = vld [vmem:[%s15272_s7 + $0x97c] sm:$0xf]  ;;  %v9264_v30 = vld [vmem:[%s15272_s7 + $0xcf8] sm:$0xf] }
 0x340   :  { %6014 = vmatpush.bf16.msra.mxu2 %v7729_v57  ;;  %5989 = vmatpush.bf16.msra.mxu0 %v9041_v32  ;;  %v9013_v57 = vor.u32 %v10077_v50, %v9012_v47  ;;  %v10174_v20 = vpop.eup %10173  ;;  %v8653_v47 = vor.u32 %v9983_v43, %v8650_v24  ;;  %v9348_v50 = vld [vmem:[%s15272_s7 + $0xda0] sm:$0xf]  ;;  %v8202_v15 = vld [vmem:[%s15272_s7 + $0x4c4] sm:$0xf0]  ;;  %v9857_v39 = vld [vmem:[%s15272_s7 + $0x43c] sm:$0xf] }
 0x341   :  { %5950 = vmatpush.bf16.msrb.mxu1 %v8369_v28  ;;  %6227 = vst [vmem:[#allocation2 + $0x8] sm:$0xff] %v10174_v20  ;;  %v10046_v28 = vld [vmem:[%s15272_s7 + $0xa24] sm:$0xf]  ;;  %v10140_v43 = vld [vmem:[%s15272_s7 + $0xd10] sm:$0xf0] }
 0x342   :  { %v9955_v24 = vld [vmem:[%s15272_s7 + $0x74c] sm:$0xf]  ;;  %v9777_v58 = vld [vmem:[%s15272_s7 + $0x1b8] sm:$0xf0]  ;;  %v8090_v26 = vld [vmem:[%s15272_s7 + $0x3e4] sm:$0xf0] }
 0x343   :  { %6029 = vmatpush.bf16.msra.mxu3 %v7897_v25  ;;  %v9976_v25 = vld [vmem:[%s15272_s7 + $0x7f4] sm:$0xf]  ;;  %v9843_v4 = vld [vmem:[%s15272_s7 + $0x3cc] sm:$0xf] }
 0x344   :  { %6015 = vmatpush.bf16.msra.mxu2 %v7701_v37  ;;  %v9990_v37 = vld [vmem:[%s15272_s7 + $0x864] sm:$0xf]  ;;  %5990 = vmatpush.bf16.msra.mxu0 %v9013_v57  ;;  %v8233_v57 = vor.u32 %v9878_v56, %v8230_v51  ;;  %v8118_v51 = vld [vmem:[%s15272_s7 + $0x41c] sm:$0xf0] }
 0x345   :  { %5951 = vmatpush.bf16.msrb.mxu1 %v8341_v62  ;;  %v8681_v31 = vor.u32 %v9990_v37, %v8678_v61  ;;  %v9349_v62 = vor.u32 %v10161_v52, %v9348_v50  ;;  %v10032_v37 = vld [vmem:[%s15272_s7 + $0x9b4] sm:$0xf]  ;;  %v8846_v61 = vld [vmem:[%s15272_s7 + $0x9cc] sm:$0xf0]  ;;  %v9850_v56 = vld [vmem:[%s15272_s7 + $0x404] sm:$0xf] }
 0x346   :  { %v8849_v20 = vor.u32 %v10032_v37, %v8846_v61  ;;  %v10133_v52 = vld [vmem:[%s15272_s7 + $0xcd8] sm:$0xf0]  ;;  %v9208_v61 = vld [vmem:[%s15272_s7 + $0xc88] sm:$0xf] }
 0x347   :  { %6030 = vmatpush.bf16.msra.mxu3 %v7869_v55  ;;  %v8205_v55 = vor.u32 %v9871_v36, %v8202_v15 }
 0x348   :  { %6016 = vmatpush.bf16.msra.mxu2 %v7673_v6  ;;  %v10053_v6 = vld [vmem:[%s15272_s7 + $0xa5c] sm:$0xf]  ;;  %5991 = vmatpush.bf16.msra.mxu0 %v8985_v9  ;;  %v9292_v9 = vld [vmem:[%s15272_s7 + $0xd30] sm:$0xf] }
 0x349   :  { %v8933_v32 = vor.u32 %v10053_v6, %v8930_v27  ;;  %5952 = vmatpush.bf16.msrb.mxu1 %v8313_v1  ;;  %v8177_v1 = vor.u32 %v9864_v10, %v8174_v12  ;;  %v8818_v6 = vld [vmem:[%s15272_s7 + $0x994] sm:$0xf0]  ;;  %v9293_v27 = vor.u32 %v10147_v14, %v9292_v9  ;;  %v7788_v10 = vld [vmem:[%s15272_s7 + $0x168] sm:$0xf]  ;;  %v9770_v12 = vld [vmem:[%s15272_s7 + $0x180] sm:$0xf0] }
 0x34a   :  { %v8821_v11 = vor.u32 %v10025_v22, %v8818_v6  ;;  %v10004_v22 = vld [vmem:[%s15272_s7 + $0x8d4] sm:$0xf]  ;;  %v8734_v6 = vld [vmem:[%s15272_s7 + $0x8ec] sm:$0xf0] }
 0x34b   :  { %6031 = vmatpush.bf16.msra.mxu3 %v7841_v40  ;;  %v8146_v40 = vld [vmem:[%s15272_s7 + $0x454] sm:$0xf0] }
 0x34c   :  { %6017 = vmatpush.bf16.msra.mxu2 %v7645_v7  ;;  %v8902_v7 = vld [vmem:[%s15272_s7 + $0xa3c] sm:$0xf0]  ;;  %5992 = vmatpush.bf16.msra.mxu0 %v8957_v46  ;;  %v8538_v46 = vld [vmem:[%s15272_s7 + $0x764] sm:$0xf0] }
 0x34d   :  { %v8905_v19 = vor.u32 %v10046_v28, %v8902_v7  ;;  %5953 = vmatpush.bf16.msrb.mxu1 %v8285_v44  ;;  %v3176_v44 = vperm.slane %v14200_v17, 3  ;;  %v8149_v28 = vor.u32 %v9857_v39, %v8146_v40  ;;  %v10018_v7 = vld [vmem:[%s15272_s7 + $0x944] sm:$0xf]  ;;  %v8541_v50 = vor.u32 %v9955_v24, %v8538_v46  ;;  %v9236_v17 = vld [vmem:[%s15272_s7 + $0xcc0] sm:$0xf] }
 0x34e   :  { %6032 = vmatmul.bf16.vlgmr.msra.gmra.mxu3 %v12552_v33  ;;  %v9237_v15 = vor.u32 %v10133_v52, %v9236_v17  ;;  %v9833_v39 = vld [vmem:[%s15272_s7 + $0x378] sm:$0xf0]  ;;  %v7789_v40 = vor.u32 %v9770_v12, %v7788_v10  ;;  %v9154_v24 = vld [vmem:[%s15272_s7 + $0xc34] sm:$0xf0]  ;;  %v8737_v46 = vor.u32 %v10004_v22, %v8734_v6  ;;  %v5735_v52 = vadd.f32 %v14409_v38, %v14246_v54  ;;  %v8454_v54 = vld [vmem:[%s15272_s7 + $0x6bc] sm:$0xf0] }
 0x34f   :  { %6076 = vmatpush.bf16.msrb.mxu3 %v8933_v32  ;;  %5993 = vmatmul.bf16.vlgmr.msra.gmra.mxu0 %v13136_v3  ;;  %v14610_v32 = vpop.f32.mrf.mxu0  ;;  %v7732_v38 = vld [vmem:[%s15272_s7 + $0xf8] sm:$0xf]  ;;  %v8398_v22 = vld [vmem:[%s15272_s7 + $0x64c] sm:$0xf0]  ;;  %v7676_v6 = vld [vmem:[%s15272_s7 + $0x88] sm:$0xf] }
 0x350   :  { %6018 = vmatpush.bf16.msra.mxu2 %v7617_v63  ;;  %6037 = vmatpush.bf16.msrb.mxu0 %v8261_v45  ;;  %v8625_v63 = vor.u32 %v9976_v25, %v8622_v21  ;;  %v14613_v45 = vpop.f32.mrf.mxu1  ;;  %v9948_v25 = vld [vmem:[%s15272_s7 + $0x714] sm:$0xf]  ;;  %v8510_v21 = vld [vmem:[%s15272_s7 + $0x72c] sm:$0xf0]  ;;  %v5825_v36 = vpop.f32.mrf.mxu3  ;;  %v7956_v12 = vld [vmem:[%s15272_s7 + $0x2b8] sm:$0xf] }
 0x351   :  { %5998 = vmatpush.bf16.msra.mxu1 %v9377_v13  ;;  %v8790_v13 = vld [vmem:[%s15272_s7 + $0x95c] sm:$0xf0] }
 0x352   :  { %5954 = vmatmul.bf16.vlgmr.msrb.gmra.mxu1 %v12662_v35 }
 0x353   :  { %6019 = vmatmul.bf16.vlgmr.msra.gmra.mxu2 %v12581_v49  ;;  %6077 = vmatpush.bf16.msrb.mxu3 %v8905_v19  ;;  %v8793_v19 = vor.u32 %v10018_v7, %v8790_v13 }
 0x354   :  { %6063 = vmatpush.bf16.msrb.mxu2 %v8709_v0  ;;  %v10154_v0 = vld [vmem:[%s15272_s7 + $0xd80] sm:$0xf0]  ;;  %6038 = vmatpush.bf16.msrb.mxu0 %v8233_v57  ;;  %v7816_v57 = vld [vmem:[%s15272_s7 + $0x1a0] sm:$0xf] }
 0x355   :  { %5999 = vmatpush.bf16.msra.mxu1 %v9349_v62  ;;  %v9321_v2 = vor.u32 %v10154_v0, %v9320_v29  ;;  %v8121_v62 = vor.u32 %v9850_v56, %v8118_v51  ;;  %v8762_v29 = vld [vmem:[%s15272_s7 + $0x924] sm:$0xf0]  ;;  %v8513_v0 = vor.u32 %v9948_v25, %v8510_v21  ;;  %v7817_v37 = vor.u32 %v9777_v58, %v7816_v57  ;;  %v9826_v51 = vld [vmem:[%s15272_s7 + $0x340] sm:$0xf0]  ;;  %v9126_v58 = vld [vmem:[%s15272_s7 + $0xbfc] sm:$0xf0] }
 0x356   :  { %v5812_v41 = vpop.f32.mrf.mxu2  ;;  %v8012_v56 = vld [vmem:[%s15272_s7 + $0x328] sm:$0xf]  ;;  %v10102_v57 = vld [vmem:[%s15272_s7 + $0xbe4] sm:$0xf] }
 0x357   :  { %6078 = vmatpush.bf16.msrb.mxu3 %v8877_v5  ;;  %v5813_v59 = vadd.f32 %v5812_v41, %v3176_v44  ;;  %v9941_v41 = vld [vmem:[%s15272_s7 + $0x6dc] sm:$0xf]  ;;  %v7760_v44 = vld [vmem:[%s15272_s7 + $0x130] sm:$0xf] }
 0x358   :  { %6064 = vmatpush.bf16.msrb.mxu2 %v8681_v31  ;;  %6039 = vmatpush.bf16.msrb.mxu0 %v8205_v55  ;;  %v8569_v31 = vor.u32 %v9962_v18, %v8566_v16  ;;  %v5749_v14 = vpop.f32.mrf.mxu1  ;;  %v8093_v18 = vor.u32 %v9843_v4, %v8090_v26  ;;  %v9180_v16 = vld [vmem:[%s15272_s7 + $0xc50] sm:$0xf]  ;;  %v10095_v26 = vld [vmem:[%s15272_s7 + $0xbac] sm:$0xf] }
 0x359   :  { %6000 = vmatpush.bf16.msra.mxu1 %v9321_v2  ;;  %v14657_v5 = vadd.f32 %v5825_v36, %v5813_v59  ;;  %v10126_v2 = vld [vmem:[%s15272_s7 + $0xca0] sm:$0xf0]  ;;  %v9756_v59 = vld [vmem:[%s15272_s7 + $0x110] sm:$0xf0]  ;;  %v7984_v36 = vld [vmem:[%s15272_s7 + $0x2f0] sm:$0xf] }
 0x35a   :  { %v7733_v4 = vor.u32 %v9756_v59, %v7732_v38  ;;  %v9812_v14 = vld [vmem:[%s15272_s7 + $0x2d0] sm:$0xf0]  ;;  %v8342_v38 = vld [vmem:[%s15272_s7 + $0x5dc] sm:$0xf0]  ;;  %v7620_v59 = vld [vmem:[%s15272_s7 + $0x18] sm:$0xf] }
 0x35b   :  { %6079 = vmatpush.bf16.msrb.mxu3 %v8849_v20  ;;  %v10119_v20 = vld [vmem:[%s15272_s7 + $0xc68] sm:$0xf0] }
 0x35c   :  { %6065 = vmatpush.bf16.msrb.mxu2 %v8653_v47  ;;  %6040 = vmatpush.bf16.msrb.mxu0 %v8177_v1  ;;  %v9265_v47 = vor.u32 %v10140_v43, %v9264_v30  ;;  %v9836_v1 = vld [vmem:[%s15272_s7 + $0x394] sm:$0xf]  ;;  %v8040_v30 = vld [vmem:[%s15272_s7 + $0x360] sm:$0xf]  ;;  %v10109_v43 = vld [vmem:[%s15272_s7 + $0xc1c] sm:$0xf] }
 0x35d   :  { %6001 = vmatpush.bf16.msra.mxu1 %v9293_v27  ;;  %v9209_v27 = vor.u32 %v10126_v2, %v9208_v61  ;;  %v8041_v13 = vor.u32 %v9833_v39, %v8040_v30  ;;  %v9157_v17 = vor.u32 %v10109_v43, %v9154_v24  ;;  %v7704_v61 = vld [vmem:[%s15272_s7 + $0xc0] sm:$0xf]  ;;  %v9749_v2 = vld [vmem:[%s15272_s7 + $0xd8] sm:$0xf0]  ;;  %v7957_v30 = vor.u32 %v9812_v14, %v7956_v12 }
 0x35e   :  { %v5814_v55 = vpop.f32.mrf.mxu2 }
 0x35f   :  { %6080 = vmatpush.bf16.msrb.mxu3 %v8821_v11  ;;  %v8482_v11 = vld [vmem:[%s15272_s7 + $0x6f4] sm:$0xf0]  ;;  %v9098_v55 = vld [vmem:[%s15272_s7 + $0xbc4] sm:$0xf0] }
 0x360   :  { %6066 = vmatpush.bf16.msrb.mxu2 %v8625_v63  ;;  %6041 = vmatpush.bf16.msrb.mxu0 %v8149_v28  ;;  %v10011_v63 = vld [vmem:[%s15272_s7 + $0x90c] sm:$0xf]  ;;  %v8485_v25 = vor.u32 %v9941_v41, %v8482_v11  ;;  %v9101_v10 = vor.u32 %v10095_v26, %v9098_v55  ;;  %v9805_v41 = vld [vmem:[%s15272_s7 + $0x298] sm:$0xf0]  ;;  %v9042_v11 = vld [vmem:[%s15272_s7 + $0xb54] sm:$0xf0] }
 0x361   :  { %6002 = vmatpush.bf16.msra.mxu1 %v9265_v47  ;;  %v8765_v9 = vor.u32 %v10011_v63, %v8762_v29  ;;  %v9763_v28 = vld [vmem:[%s15272_s7 + $0x148] sm:$0xf0]  ;;  %v5827_v47 = vpop.f32.mrf.mxu3  ;;  %v8013_v63 = vor.u32 %v9826_v51, %v8012_v56  ;;  %v9129_v29 = vor.u32 %v10102_v57, %v9126_v58  ;;  %v9906_v57 = vld [vmem:[%s15272_s7 + $0x5c4] sm:$0xf] }
 0x362   :  { %v7761_v21 = vor.u32 %v9763_v28, %v7760_v44  ;;  %v8370_v28 = vld [vmem:[%s15272_s7 + $0x614] sm:$0xf0]  ;;  %v10074_v58 = vld [vmem:[%s15272_s7 + $0xb04] sm:$0xf]  ;;  %v8345_v26 = vor.u32 %v9906_v57, %v8342_v38  ;;  %v9350_v38 = vld [vmem:[%s15272_s7 + $0xdbc] sm:$0xf0] }
 0x363   :  { %6081 = vmatpush.bf16.msrb.mxu3 %v8793_v19  ;;  %v9934_v19 = vld [vmem:[%s15272_s7 + $0x6a4] sm:$0xf] }
 0x364   :  { %6067 = vmatpush.bf16.msrb.mxu2 %v8597_v8  ;;  %v5788_v8 = vpop.f32.mrf.mxu0  ;;  %6042 = vmatpush.bf16.msrb.mxu0 %v8121_v62  ;;  %v5748_v62 = vadd.f32 %v14613_v45, %v5735_v52  ;;  %v9927_v45 = vld [vmem:[%s15272_s7 + $0x66c] sm:$0xf]  ;;  %v7900_v52 = vld [vmem:[%s15272_s7 + $0x248] sm:$0xf] }
 0x365   :  { %6003 = vmatpush.bf16.msra.mxu1 %v9237_v15  ;;  %v9819_v15 = vld [vmem:[%s15272_s7 + $0x308] sm:$0xf0] }
 0x366   :  { %v5761_v8 = vadd.f32 %v14398_v34, %v5748_v62  ;;  %v9920_v34 = vld [vmem:[%s15272_s7 + $0x634] sm:$0xf] }
 0x367   :  { %6082 = vmatpush.bf16.msrb.mxu3 %v8765_v9  ;;  %v7985_v9 = vor.u32 %v9819_v15, %v7984_v36  ;;  %v8401_v43 = vor.u32 %v9920_v34, %v8398_v22  ;;  %v9728_v62 = vld [vmem:[%s15272_s7 + $0x30] sm:$0xf0]  ;;  %v10001_v36 = vld [vmem:[%s15272_s7 + $0x8b8] sm:$0xf0] }
 0x368   :  { %6068 = vmatpush.bf16.msrb.mxu2 %v8569_v31  ;;  %v8062_v31 = vld [vmem:[%s15272_s7 + $0x3ac] sm:$0xf0]  ;;  %6043 = vmatpush.bf16.msrb.mxu0 %v8093_v18  ;;  %v7621_v55 = vor.u32 %v9728_v62, %v7620_v59  ;;  %v10060_v34 = vld [vmem:[%s15272_s7 + $0xa94] sm:$0xf]  ;;  %v8628_v59 = vld [vmem:[%s15272_s7 + $0x7f8] sm:$0xf] }
 0x369   :  { %v8065_v7 = vor.u32 %v9836_v1, %v8062_v31  ;;  %6004 = vmatpush.bf16.msra.mxu1 %v9209_v27  ;;  %v9070_v1 = vld [vmem:[%s15272_s7 + $0xb8c] sm:$0xf0]  ;;  %v9742_v27 = vld [vmem:[%s15272_s7 + $0xa0] sm:$0xf0]  ;;  %v5774_v31 = vadd.f32 %v14448_v60, %v5761_v8  ;;  %v9913_v60 = vld [vmem:[%s15272_s7 + $0x5fc] sm:$0xf] }
 0x36a   :  { %v7677_v24 = vor.u32 %v9742_v27, %v7676_v6  ;;  %v9892_v22 = vld [vmem:[%s15272_s7 + $0x554] sm:$0xf]  ;;  %v8286_v6 = vld [vmem:[%s15272_s7 + $0x56c] sm:$0xf0] }
 0x36b   :  { %6083 = vmatpush.bf16.msrb.mxu3 %v8737_v46  ;;  %v10081_v46 = vld [vmem:[%s15272_s7 + $0xb3c] sm:$0xf]  ;;  %v5787_v47 = vadd.f32 %v14610_v32, %v5774_v31  ;;  %v8958_v27 = vld [vmem:[%s15272_s7 + $0xaac] sm:$0xf0]  ;;  %v7844_v31 = vld [vmem:[%s15272_s7 + $0x1d8] sm:$0xf] }
 0x36c   :  { %6069 = vmatpush.bf16.msrb.mxu2 %v8541_v50  ;;  %v9181_v50 = vor.u32 %v10119_v20, %v9180_v16  ;;  %6044 = vmatpush.bf16.msrb.mxu0 %v8065_v7  ;;  %v7705_v16 = vor.u32 %v9749_v2, %v7704_v61  ;;  %v10088_v20 = vld [vmem:[%s15272_s7 + $0xb74] sm:$0xf]  ;;  %v7648_v7 = vld [vmem:[%s15272_s7 + $0x50] sm:$0xf]  ;;  %v9045_v51 = vor.u32 %v10081_v46, %v9042_v11  ;;  %v8986_v61 = vld [vmem:[%s15272_s7 + $0xae4] sm:$0xf0] }
 0x36d   :  { %v9073_v39 = vor.u32 %v10088_v20, %v9070_v1  ;;  %v5799_v56 = vpop.f32.mrf.mxu1  ;;  %v8264_v46 = vld [vmem:[%s15272_s7 + $0x520] sm:$0xf]  ;;  %v9889_v11 = vld [vmem:[%s15272_s7 + $0x538] sm:$0xf0]  ;;  %v9980_v62 = vld [vmem:[%s15272_s7 + $0x810] sm:$0xf0] }
 0x36e   :  { %6005 = vmatpush.bf16.msra.mxu1 %v9181_v50  ;;  %6084 = vmatmul.bf16.vlgmr.msrb.gmra.mxu3 %v12965_v23  ;;  %v14821_v50 = vpop.f32.mrf.mxu0 }
 0x36f   :  { %6128 = vmatpush.bf16.msra.mxu3 %v8041_v13  ;;  %6045 = vmatmul.bf16.vlgmr.msrb.gmra.mxu0 %v12684_v48  ;;  %v9735_v13 = vld [vmem:[%s15272_s7 + $0x68] sm:$0xf0] }
 0x370   :  { %6070 = vmatpush.bf16.msrb.mxu2 %v8513_v0  ;;  %6089 = vmatpush.bf16.msra.mxu0 %v9157_v17  ;;  %v8457_v0 = vor.u32 %v9934_v19, %v8454_v54  ;;  %v8373_v19 = vor.u32 %v9913_v60, %v8370_v28  ;;  %v7649_v32 = vor.u32 %v9735_v13, %v7648_v7  ;;  %v9014_v54 = vld [vmem:[%s15272_s7 + $0xb1c] sm:$0xf0]  ;;  %v9378_v7 = vld [vmem:[%s15272_s7 + $0xdf4] sm:$0xf0]  ;;  %v8656_v13 = vld [vmem:[%s15272_s7 + $0x830] sm:$0xf] }
 0x371   :  { %6006 = vmatmul.bf16.vlgmr.msra.gmra.mxu1 %v13299_v53  ;;  %v9017_v15 = vor.u32 %v10074_v58, %v9014_v54  ;;  %v8236_v58 = vld [vmem:[%s15272_s7 + $0x4e8] sm:$0xf]  ;;  %v9882_v54 = vld [vmem:[%s15272_s7 + $0x500] sm:$0xf0] }
 0x372   :  { %6050 = vmatpush.bf16.msrb.mxu1 %v8485_v25  ;;  %v9798_v25 = vld [vmem:[%s15272_s7 + $0x260] sm:$0xf0] }
 0x373   :  { %6071 = vmatmul.bf16.vlgmr.msrb.gmra.mxu2 %v12772_v42  ;;  %6129 = vmatpush.bf16.msra.mxu3 %v8013_v63  ;;  %v7901_v63 = vor.u32 %v9798_v25, %v7900_v52  ;;  %v8289_v52 = vor.u32 %v9892_v22, %v8286_v6  ;;  %v8265_v25 = vor.u32 %v9889_v11, %v8264_v46  ;;  %v8572_v22 = vld [vmem:[%s15272_s7 + $0x788] sm:$0xf]  ;;  %v9966_v6 = vld [vmem:[%s15272_s7 + $0x7a0] sm:$0xf0]  ;;  %v9266_v11 = vld [vmem:[%s15272_s7 + $0xd14] sm:$0xf0] }
 0x374   :  { %6115 = vmatpush.bf16.msra.mxu2 %v7817_v37  ;;  %v8426_v37 = vld [vmem:[%s15272_s7 + $0x684] sm:$0xf0]  ;;  %6090 = vmatpush.bf16.msra.mxu0 %v9129_v29  ;;  %v8712_v29 = vld [vmem:[%s15272_s7 + $0x8a0] sm:$0xf] }
 0x375   :  { %v8429_v18 = vor.u32 %v9927_v45, %v8426_v37  ;;  %v14859_v45 = vpop.f32.mrf.mxu3  ;;  %v10067_v37 = vld [vmem:[%s15272_s7 + $0xacc] sm:$0xf]  ;;  %v8713_v8 = vor.u32 %v10001_v36, %v8712_v29  ;;  %v5801_v20 = vpop.f32.mrf.mxu1  ;;  %v8237_v29 = vor.u32 %v9882_v54, %v8236_v58  ;;  %v8880_v36 = vld [vmem:[%s15272_s7 + $0x9f0] sm:$0xf]  ;;  %v9854_v58 = vld [vmem:[%s15272_s7 + $0x420] sm:$0xf0] }
 0x376   :  { %6051 = vmatpush.bf16.msrb.mxu1 %v8457_v0  ;;  %v14809_v44 = vpop.f32.mrf.mxu2  ;;  %v7872_v0 = vld [vmem:[%s15272_s7 + $0x210] sm:$0xf]  ;;  %v5840_v12 = vpop.f32.mrf.mxu0  ;;  %v8989_v1 = vor.u32 %v10067_v37, %v8986_v61  ;;  %v9875_v37 = vld [vmem:[%s15272_s7 + $0x4c8] sm:$0xf0]  ;;  %v9322_v61 = vld [vmem:[%s15272_s7 + $0xd84] sm:$0xf0] }
 0x377   :  { %6130 = vmatpush.bf16.msra.mxu3 %v7985_v9  ;;  %v9899_v9 = vld [vmem:[%s15272_s7 + $0x58c] sm:$0xf]  ;;  %v10036_v12 = vld [vmem:[%s15272_s7 + $0x9d0] sm:$0xf0]  ;;  %v9238_v54 = vld [vmem:[%s15272_s7 + $0xcdc] sm:$0xf0] }
 0x378   :  { %6116 = vmatpush.bf16.msra.mxu2 %v7789_v40  ;;  %6091 = vmatpush.bf16.msra.mxu0 %v9101_v10  ;;  %v7928_v40 = vld [vmem:[%s15272_s7 + $0x280] sm:$0xf]  ;;  %v8314_v10 = vld [vmem:[%s15272_s7 + $0x5a4] sm:$0xf0]  ;;  %v9868_v20 = vld [vmem:[%s15272_s7 + $0x490] sm:$0xf0] }
 0x379   :  { %v7929_v17 = vor.u32 %v9805_v41, %v7928_v40  ;;  %v8317_v40 = vor.u32 %v9899_v9, %v8314_v10  ;;  %v10165_v41 = vld [vmem:[%s15272_s7 + $0xddc] sm:$0xf] }
 0x37a   :  { %6052 = vmatpush.bf16.msrb.mxu1 %v8429_v18  ;;  %v8684_v18 = vld [vmem:[%s15272_s7 + $0x868] sm:$0xf] }
 0x37b   :  { %6131 = vmatpush.bf16.msra.mxu3 %v7957_v30  ;;  %v9784_v30 = vld [vmem:[%s15272_s7 + $0x1f0] sm:$0xf0] }
 0x37c   :  { %6117 = vmatpush.bf16.msra.mxu2 %v7761_v21  ;;  %6092 = vmatpush.bf16.msra.mxu0 %v9073_v39  ;;  %v5800_v21 = vadd.f32 %v5799_v56, %v5787_v47  ;;  %v7845_v28 = vor.u32 %v9784_v30, %v7844_v31  ;;  %v9987_v47 = vld [vmem:[%s15272_s7 + $0x848] sm:$0xf0]  ;;  %v8824_v30 = vld [vmem:[%s15272_s7 + $0x980] sm:$0xf] }
 0x37d   :  { %v8657_v57 = vor.u32 %v9987_v47, %v8656_v13 }
 0x37e   :  { %6053 = vmatpush.bf16.msrb.mxu1 %v8401_v43  ;;  %10175 = vtanh.f32 %v5800_v21  ;;  %v5866_v2 = vpop.f32.mrf.mxu2  ;;  %v8936_v43 = vld [vmem:[%s15272_s7 + $0xa60] sm:$0xf]  ;;  %v8908_v21 = vld [vmem:[%s15272_s7 + $0xa28] sm:$0xf] }
 0x37f   :  { %6132 = vmatpush.bf16.msra.mxu3 %v7929_v17  ;;  %v8961_v17 = vor.u32 %v10060_v34, %v8958_v27  ;;  %v8600_v2 = vld [vmem:[%s15272_s7 + $0x7c0] sm:$0xf]  ;;  %v8180_v34 = vld [vmem:[%s15272_s7 + $0x478] sm:$0xf] }
 0x380   :  { %6118 = vmatpush.bf16.msra.mxu2 %v7733_v4  ;;  %6093 = vmatpush.bf16.msra.mxu0 %v9045_v51  ;;  %v9791_v4 = vld [vmem:[%s15272_s7 + $0x228] sm:$0xf0]  ;;  %v5879_v51 = vpop.f32.mrf.mxu3  ;;  %v8181_v31 = vor.u32 %v9868_v20, %v8180_v34  ;;  %v10116_v20 = vld [vmem:[%s15272_s7 + $0xc54] sm:$0xf] }
 0x381   :  { %v7873_v14 = vor.u32 %v9791_v4, %v7872_v0  ;;  %v8629_v4 = vor.u32 %v9980_v62, %v8628_v59  ;;  %v9952_v59 = vld [vmem:[%s15272_s7 + $0x730] sm:$0xf0] }
 0x382   :  { %6054 = vmatpush.bf16.msrb.mxu1 %v8373_v19  ;;  %v10050_v19 = vld [vmem:[%s15272_s7 + $0xa40] sm:$0xf0] }
 0x383   :  { %6133 = vmatpush.bf16.msra.mxu3 %v7901_v63  ;;  %v8909_v63 = vor.u32 %v10050_v19, %v8908_v21  ;;  %v10022_v21 = vld [vmem:[%s15272_s7 + $0x960] sm:$0xf0] }
 0x384   :  { %6119 = vmatpush.bf16.msra.mxu2 %v7705_v16  ;;  %v9994_v16 = vld [vmem:[%s15272_s7 + $0x880] sm:$0xf0]  ;;  %6094 = vmatpush.bf16.msra.mxu0 %v9017_v15  ;;  %v10176_v39 = vpop.eup %10175  ;;  %v10043_v15 = vld [vmem:[%s15272_s7 + $0xa08] sm:$0xf0] }
 0x385   :  { %6228 = vst [vmem:[#allocation2 + $0x10] sm:$0xff] %v10176_v39  ;;  %v8685_v60 = vor.u32 %v9994_v16, %v8684_v18  ;;  %v8881_v9 = vor.u32 %v10043_v15, %v8880_v36  ;;  %v10144_v16 = vld [vmem:[%s15272_s7 + $0xd34] sm:$0xf]  ;;  %v10029_v39 = vld [vmem:[%s15272_s7 + $0x998] sm:$0xf0] }
 0x386   :  { %6055 = vmatpush.bf16.msrb.mxu1 %v8345_v26  ;;  %v10151_v26 = vld [vmem:[%s15272_s7 + $0xd6c] sm:$0xf]  ;;  %v8825_v47 = vor.u32 %v10029_v39, %v8824_v30  ;;  %v8768_v36 = vld [vmem:[%s15272_s7 + $0x910] sm:$0xf]  ;;  %v8488_v39 = vld [vmem:[%s15272_s7 + $0x6e0] sm:$0xf] }
 0x387   :  { %6134 = vmatpush.bf16.msra.mxu3 %v7873_v14  ;;  %v9325_v14 = vor.u32 %v10151_v26, %v9322_v61  ;;  %v10015_v15 = vld [vmem:[%s15272_s7 + $0x928] sm:$0xf0] }
 0x388   :  { %6120 = vmatpush.bf16.msra.mxu2 %v7677_v24  ;;  %v10057_v24 = vld [vmem:[%s15272_s7 + $0xa78] sm:$0xf0]  ;;  %6095 = vmatpush.bf16.msra.mxu0 %v8989_v1  ;;  %v9294_v1 = vld [vmem:[%s15272_s7 + $0xd4c] sm:$0xf0] }
 0x389   :  { %v8937_v56 = vor.u32 %v10057_v24, %v8936_v43  ;;  %v10137_v43 = vld [vmem:[%s15272_s7 + $0xcfc] sm:$0xf]  ;;  %v8152_v24 = vld [vmem:[%s15272_s7 + $0x440] sm:$0xf] }
 0x38a   :  { %6056 = vmatpush.bf16.msrb.mxu1 %v8317_v40  ;;  %v9297_v40 = vor.u32 %v10144_v16, %v9294_v1  ;;  %v15021_v13 = vpop.f32.mrf.mxu0  ;;  %v9269_v19 = vor.u32 %v10137_v43, %v9266_v11  ;;  %v10008_v16 = vld [vmem:[%s15272_s7 + $0x8f0] sm:$0xf0]  ;;  %v8068_v1 = vld [vmem:[%s15272_s7 + $0x398] sm:$0xf] }
 0x38b   :  { %6135 = vmatpush.bf16.msra.mxu3 %v7845_v28  ;;  %v8544_v28 = vld [vmem:[%s15272_s7 + $0x750] sm:$0xf] }
 0x38c   :  { %6121 = vmatpush.bf16.msra.mxu2 %v7649_v32  ;;  %v9381_v32 = vor.u32 %v10165_v41, %v9378_v7  ;;  %6096 = vmatpush.bf16.msra.mxu0 %v8961_v17  ;;  %v8573_v41 = vor.u32 %v9966_v6, %v8572_v22  ;;  %v9959_v7 = vld [vmem:[%s15272_s7 + $0x768] sm:$0xf0]  ;;  %v15026_v17 = vld [vmem:[%s15273_s8] sm:$0x7f]  ;;  %v9840_v22 = vld [vmem:[%s15272_s7 + $0x3b0] sm:$0xf0] }
 0x38d   :  { %v15029_v51 = vpop.f32.mrf.mxu1  ;;  %v9182_v6 = vld [vmem:[%s15272_s7 + $0xc6c] sm:$0xf0] }
 0x38e   :  { %6057 = vmatpush.bf16.msrb.mxu1 %v8289_v52  ;;  %6136 = vmatmul.bf16.vlgmr.msra.gmra.mxu3 %v12552_v33  ;;  %v8852_v33 = vld [vmem:[%s15272_s7 + $0x9b8] sm:$0xf] }
 0x38f   :  { %6180 = vmatpush.bf16.msrb.mxu3 %v8937_v56  ;;  %6097 = vmatmul.bf16.vlgmr.msra.gmra.mxu0 %v13136_v3  ;;  %v8853_v27 = vor.u32 %v10036_v12, %v8852_v33  ;;  %v3177_v56 = vperm.slane %v15026_v17, 4  ;;  %v8769_v33 = vor.u32 %v10015_v15, %v8768_v36 }
 0x390   :  { %6122 = vmatpush.bf16.msra.mxu2 %v7621_v55  ;;  %6141 = vmatpush.bf16.msrb.mxu0 %v8265_v25  ;;  %v8208_v55 = vld [vmem:[%s15272_s7 + $0x4b0] sm:$0xf]  ;;  %v8796_v25 = vld [vmem:[%s15272_s7 + $0x948] sm:$0xf] }
 0x391   :  { %6058 = vmatmul.bf16.vlgmr.msrb.gmra.mxu1 %v12662_v35  ;;  %v8209_v10 = vor.u32 %v9875_v37, %v8208_v55  ;;  %v8797_v62 = vor.u32 %v10022_v21, %v8796_v25  ;;  %v8096_v55 = vld [vmem:[%s15272_s7 + $0x3d0] sm:$0xf]  ;;  %v9847_v37 = vld [vmem:[%s15272_s7 + $0x3e8] sm:$0xf0] }
 0x392   :  { %6102 = vmatpush.bf16.msra.mxu1 %v9381_v32  ;;  %v8545_v32 = vor.u32 %v9959_v7, %v8544_v28  ;;  %v9132_v28 = vld [vmem:[%s15272_s7 + $0xbe8] sm:$0xf]  ;;  %v10106_v7 = vld [vmem:[%s15272_s7 + $0xc00] sm:$0xf0]  ;;  %v10099_v25 = vld [vmem:[%s15272_s7 + $0xbc8] sm:$0xf0] }
 0x393   :  { %6123 = vmatmul.bf16.vlgmr.msra.gmra.mxu2 %v12581_v49  ;;  %v10158_v49 = vld [vmem:[%s15272_s7 + $0xda4] sm:$0xf]  ;;  %6181 = vmatpush.bf16.msrb.mxu3 %v8909_v63  ;;  %v9931_v21 = vld [vmem:[%s15272_s7 + $0x688] sm:$0xf0] }
 0x394   :  { %6167 = vmatpush.bf16.msrb.mxu2 %v8713_v8  ;;  %v9353_v0 = vor.u32 %v10158_v49, %v9350_v38  ;;  %v9973_v8 = vld [vmem:[%s15272_s7 + $0x7d8] sm:$0xf0]  ;;  %6142 = vmatpush.bf16.msrb.mxu0 %v8237_v29  ;;  %v8124_v49 = vld [vmem:[%s15272_s7 + $0x408] sm:$0xf]  ;;  %v8516_v38 = vld [vmem:[%s15272_s7 + $0x718] sm:$0xf] }
 0x395   :  { %v8601_v18 = vor.u32 %v9973_v8, %v8600_v2  ;;  %v8125_v29 = vor.u32 %v9854_v58, %v8124_v49  ;;  %v8517_v26 = vor.u32 %v9952_v59, %v8516_v38  ;;  %v10123_v8 = vld [vmem:[%s15272_s7 + $0xc8c] sm:$0xf]  ;;  %v5853_v12 = vpop.f32.mrf.mxu1  ;;  %v8404_v49 = vld [vmem:[%s15272_s7 + $0x638] sm:$0xf]  ;;  %v9048_v59 = vld [vmem:[%s15272_s7 + $0xb40] sm:$0xf] }
 0x396   :  { %6103 = vmatpush.bf16.msra.mxu1 %v9353_v0  ;;  %v5916_v46 = vpop.f32.mrf.mxu2  ;;  %v5929_v0 = vpop.f32.mrf.mxu3  ;;  %v8992_v12 = vld [vmem:[%s15272_s7 + $0xad0] sm:$0xf] }
 0x397   :  { %6182 = vmatpush.bf16.msrb.mxu3 %v8881_v9  ;;  %v5917_v63 = vadd.f32 %v5916_v46, %v3177_v56  ;;  %v9210_v9 = vld [vmem:[%s15272_s7 + $0xca4] sm:$0xf0]  ;;  %v5839_v46 = vadd.f32 %v14821_v50, %v14657_v5  ;;  %v9133_v50 = vor.u32 %v10106_v7, %v9132_v28  ;;  %v10162_v7 = vld [vmem:[%s15272_s7 + $0xdc0] sm:$0xf0] }
 0x398   :  { %6168 = vmatpush.bf16.msrb.mxu2 %v8685_v60  ;;  %6143 = vmatpush.bf16.msrb.mxu0 %v8209_v10  ;;  %v9861_v60 = vld [vmem:[%s15272_s7 + $0x458] sm:$0xf0]  ;;  %v5892_v10 = vpop.f32.mrf.mxu0  ;;  %v9213_v34 = vor.u32 %v10123_v8, %v9210_v9  ;;  %v9910_v8 = vld [vmem:[%s15272_s7 + $0x5e0] sm:$0xf0]  ;;  %v9356_v28 = vld [vmem:[%s15272_s7 + $0xda8] sm:$0xf] }
 0x399   :  { %v8153_v52 = vor.u32 %v9861_v60, %v8152_v24  ;;  %v15067_v61 = vadd.f32 %v5929_v0, %v5917_v63  ;;  %v9185_v24 = vor.u32 %v10116_v20, %v9182_v6  ;;  %v5852_v5 = vadd.f32 %v15029_v51, %v5839_v46  ;;  %v8432_v51 = vld [vmem:[%s15272_s7 + $0x670] sm:$0xf] }
 0x39a   :  { %6104 = vmatpush.bf16.msra.mxu1 %v9325_v14  ;;  %v8097_v14 = vor.u32 %v9847_v37, %v8096_v55  ;;  %v9020_v37 = vld [vmem:[%s15272_s7 + $0xb08] sm:$0xf] }
 0x39b   :  { %6183 = vmatpush.bf16.msrb.mxu3 %v8853_v27  ;;  %v9160_v27 = vld [vmem:[%s15272_s7 + $0xc20] sm:$0xf] }
 0x39c   :  { %6169 = vmatpush.bf16.msrb.mxu2 %v8657_v57  ;;  %6144 = vmatpush.bf16.msrb.mxu0 %v8181_v31  ;;  %v10130_v57 = vld [vmem:[%s15272_s7 + $0xcc4] sm:$0xf]  ;;  %v10113_v31 = vld [vmem:[%s15272_s7 + $0xc38] sm:$0xf0] }
 0x39d   :  { %v9161_v60 = vor.u32 %v10113_v31, %v9160_v27  ;;  %v8964_v31 = vld [vmem:[%s15272_s7 + $0xa98] sm:$0xf] }
 0x39e   :  { %6105 = vmatpush.bf16.msra.mxu1 %v9297_v40  ;;  %v5918_v2 = vpop.f32.mrf.mxu2  ;;  %v9945_v40 = vld [vmem:[%s15272_s7 + $0x6f8] sm:$0xf0]  ;;  %v5931_v43 = vpop.f32.mrf.mxu3 }
 0x39f   :  { %6184 = vmatpush.bf16.msrb.mxu3 %v8825_v47  ;;  %v8489_v11 = vor.u32 %v9945_v40, %v8488_v39  ;;  %v9938_v47 = vld [vmem:[%s15272_s7 + $0x6c0] sm:$0xf0]  ;;  %v8292_v39 = vld [vmem:[%s15272_s7 + $0x558] sm:$0xf]  ;;  %v9896_v40 = vld [vmem:[%s15272_s7 + $0x570] sm:$0xf0] }
 0x3a0   :  { %6170 = vmatpush.bf16.msrb.mxu2 %v8629_v4  ;;  %6145 = vmatpush.bf16.msrb.mxu0 %v8153_v52  ;;  %v9241_v4 = vor.u32 %v10130_v57, %v9238_v54  ;;  %v9104_v52 = vld [vmem:[%s15272_s7 + $0xbb0] sm:$0xf]  ;;  %v10092_v57 = vld [vmem:[%s15272_s7 + $0xb90] sm:$0xf0]  ;;  %v10078_v2 = vld [vmem:[%s15272_s7 + $0xb20] sm:$0xf0]  ;;  %v8293_v46 = vor.u32 %v9896_v40, %v8292_v39 }
 0x3a1   :  { %v9021_v9 = vor.u32 %v10078_v2, %v9020_v37  ;;  %v10169_v43 = vld [vmem:[%s15272_s7 + $0xdf8] sm:$0xf0] }
 0x3a2   :  { %6106 = vmatpush.bf16.msra.mxu1 %v9269_v19  ;;  %v9105_v19 = vor.u32 %v10099_v25, %v9104_v52 }
 0x3a3   :  { %6185 = vmatpush.bf16.msrb.mxu3 %v8797_v62  ;;  %v10085_v62 = vld [vmem:[%s15272_s7 + $0xb58] sm:$0xf0] }
 0x3a4   :  { %6171 = vmatpush.bf16.msrb.mxu2 %v8601_v18  ;;  %6146 = vmatpush.bf16.msrb.mxu0 %v8125_v29  ;;  %v8740_v18 = vld [vmem:[%s15272_s7 + $0x8d8] sm:$0xf]  ;;  %v8376_v29 = vld [vmem:[%s15272_s7 + $0x600] sm:$0xf] }
 0x3a5   :  { %v8741_v30 = vor.u32 %v10008_v16, %v8740_v18  ;;  %v8320_v16 = vld [vmem:[%s15272_s7 + $0x590] sm:$0xf] }
 0x3a6   :  { %6107 = vmatpush.bf16.msra.mxu1 %v9241_v4  ;;  %v9049_v4 = vor.u32 %v10085_v62, %v9048_v59  ;;  %v9216_v59 = vld [vmem:[%s15272_s7 + $0xc90] sm:$0xf]  ;;  %v10127_v62 = vld [vmem:[%s15272_s7 + $0xca8] sm:$0xf0] }
 0x3a7   :  { %6186 = vmatpush.bf16.msrb.mxu3 %v8769_v33 }
 0x3a8   :  { %6172 = vmatpush.bf16.msrb.mxu2 %v8573_v41  ;;  %6147 = vmatpush.bf16.msrb.mxu0 %v8097_v14  ;;  %v8069_v41 = vor.u32 %v9840_v22, %v8068_v1  ;;  %v10071_v14 = vld [vmem:[%s15272_s7 + $0xae8] sm:$0xf0] }
 0x3a9   :  { %v8993_v22 = vor.u32 %v10071_v14, %v8992_v12 }
 0x3aa   :  { %6108 = vmatpush.bf16.msra.mxu1 %v9213_v34  ;;  %v9903_v34 = vld [vmem:[%s15272_s7 + $0x5a8] sm:$0xf0] }
 0x3ab   :  { %6187 = vmatpush.bf16.msrb.mxu3 %v8741_v30  ;;  %v15165_v15 = vpop.f32.mrf.mxu0  ;;  %v8321_v27 = vor.u32 %v9903_v34, %v8320_v16  ;;  %v10064_v30 = vld [vmem:[%s15272_s7 + $0xab0] sm:$0xf0] }
 0x3ac   :  { %6173 = vmatpush.bf16.msrb.mxu2 %v8545_v32  ;;  %6148 = vmatpush.bf16.msrb.mxu0 %v8069_v41  ;;  %v8433_v32 = vor.u32 %v9931_v21, %v8432_v51  ;;  %v9384_v41 = vld [vmem:[%s15272_s7 + $0xde0] sm:$0xf]  ;;  %v5943_v37 = vadd.f32 %v15165_v15, %v15067_v61 }
 0x3ad   :  { %v9272_v51 = vld [vmem:[%s15272_s7 + $0xd00] sm:$0xf] }
 0x3ae   :  { %6109 = vmatpush.bf16.msra.mxu1 %v9185_v24  ;;  %6188 = vmatmul.bf16.vlgmr.msrb.gmra.mxu3 %v12965_v23  ;;  %v5865_v23 = vadd.f32 %v14809_v44, %v5852_v5  ;;  %v9924_v44 = vld [vmem:[%s15272_s7 + $0x650] sm:$0xf0]  ;;  %v5903_v0 = vpop.f32.mrf.mxu1  ;;  %v8965_v24 = vor.u32 %v10064_v30, %v8964_v31  ;;  %v10155_v5 = vld [vmem:[%s15272_s7 + $0xd88] sm:$0xf0] }
 0x3af   :  { %6149 = vmatmul.bf16.vlgmr.msrb.gmra.mxu0 %v12684_v48  ;;  %v9076_v48 = vld [vmem:[%s15272_s7 + $0xb78] sm:$0xf]  ;;  %v8405_v38 = vor.u32 %v9924_v44, %v8404_v49 }
 0x3b0   :  { %6174 = vmatpush.bf16.msrb.mxu2 %v8517_v26  ;;  %6193 = vmatpush.bf16.msra.mxu0 %v9161_v60  ;;  %v5878_v58 = vadd.f32 %v14859_v45, %v5865_v23  ;;  %v9077_v54 = vor.u32 %v10092_v57, %v9076_v48  ;;  %v9917_v45 = vld [vmem:[%s15272_s7 + $0x618] sm:$0xf0]  ;;  %v3178_v23 = vperm.slane %v15026_v17, 5  ;;  %v9244_v48 = vld [vmem:[%s15272_s7 + $0xcc8] sm:$0xf] }
 0x3b1   :  { %6110 = vmatmul.bf16.vlgmr.msra.gmra.mxu1 %v13299_v53  ;;  %v8377_v55 = vor.u32 %v9917_v45, %v8376_v29  ;;  %v15179_v10 = vpop.f32.mrf.mxu3  ;;  %v10134_v57 = vld [vmem:[%s15272_s7 + $0xce0] sm:$0xf0] }
 0x3b2   :  { %6154 = vmatpush.bf16.msrb.mxu1 %v8489_v11  ;;  %v5891_v36 = vadd.f32 %v15021_v13, %v5878_v58  ;;  %v8348_v13 = vld [vmem:[%s15272_s7 + $0x5c8] sm:$0xf]  ;;  %v9385_v11 = vor.u32 %v10169_v43, %v9384_v41  ;;  %v9245_v58 = vor.u32 %v10134_v57, %v9244_v48 }
 0x3b3   :  { %6175 = vmatmul.bf16.vlgmr.msrb.gmra.mxu2 %v12772_v42  ;;  %v8460_v42 = vld [vmem:[%s15272_s7 + $0x6a8] sm:$0xf]  ;;  %v8349_v33 = vor.u32 %v9910_v8, %v8348_v13  ;;  %v5944_v20 = vpop.f32.mrf.mxu0 }
 0x3b4   :  { %v8461_v56 = vor.u32 %v9938_v47, %v8460_v42  ;;  %6194 = vmatpush.bf16.msra.mxu0 %v9133_v50  ;;  %v5904_v26 = vadd.f32 %v5903_v0, %v5891_v36  ;;  %v9357_v42 = vor.u32 %v10162_v7, %v9356_v28  ;;  %v9328_v47 = vld [vmem:[%s15272_s7 + $0xd70] sm:$0xf]  ;;  %v9217_v36 = vor.u32 %v10127_v62, %v9216_v59  ;;  %v9188_v0 = vld [vmem:[%s15272_s7 + $0xc58] sm:$0xf] }
 0x3b5   :  { %v9329_v50 = vor.u32 %v10155_v5, %v9328_v47 }
 0x3b6   :  { %6155 = vmatpush.bf16.msrb.mxu1 %v8461_v56  ;;  %v15156_v63 = vpop.f32.mrf.mxu2  ;;  %10177 = vtanh.f32 %v5904_v26  ;;  %v5905_v1 = vpop.f32.mrf.mxu1  ;;  %v9300_v56 = vld [vmem:[%s15272_s7 + $0xd38] sm:$0xf] }
 0x3b8   :  { %6195 = vmatpush.bf16.msra.mxu0 %v9105_v19 }
 0x3b9   :  { %v5983_v60 = vpop.f32.mrf.mxu3 }
 0x3ba   :  { %6156 = vmatpush.bf16.msrb.mxu1 %v8433_v32 }
 0x3bc   :  { %6196 = vmatpush.bf16.msra.mxu0 %v9077_v54  ;;  %v10178_v6 = vpop.eup %10177 }
 0x3bd   :  { %6229 = vst [vmem:[#allocation2 + $0x18] sm:$0xff] %v10178_v6 }
 0x3be   :  { %6157 = vmatpush.bf16.msrb.mxu1 %v8405_v38  ;;  %v5970_v18 = vpop.f32.mrf.mxu2 }
 0x3c0   :  { %6197 = vmatpush.bf16.msra.mxu0 %v9049_v4  ;;  %v10120_v4 = vld [vmem:[%s15272_s7 + $0xc70] sm:$0xf0] }
 0x3c2   :  { %6158 = vmatpush.bf16.msrb.mxu1 %v8377_v55  ;;  %v9189_v55 = vor.u32 %v10120_v4, %v9188_v0 }
 0x3c4   :  { %6198 = vmatpush.bf16.msra.mxu0 %v9021_v9 }
 0x3c6   :  { %6159 = vmatpush.bf16.msrb.mxu1 %v8349_v33 }
 0x3c8   :  { %6199 = vmatpush.bf16.msra.mxu0 %v8993_v22 }
 0x3ca   :  { %6160 = vmatpush.bf16.msrb.mxu1 %v8321_v27 }
 0x3cc   :  { %6200 = vmatpush.bf16.msra.mxu0 %v8965_v24  ;;  %v5994_v21 = vpop.f32.mrf.mxu0 }
 0x3ce   :  { %6161 = vmatpush.bf16.msrb.mxu1 %v8293_v46 }
 0x3cf   :  { %6201 = vmatmul.bf16.vlgmr.msra.gmra.mxu0 %v13136_v3  ;;  %v10148_v3 = vld [vmem:[%s15272_s7 + $0xd50] sm:$0xf0]  ;;  %v5955_v19 = vpop.f32.mrf.mxu1 }
 0x3d0   :  { %v9301_v52 = vor.u32 %v10148_v3, %v9300_v56  ;;  %v5956_v2 = vadd.f32 %v5955_v19, %v5943_v37 }
 0x3d1   :  { %6162 = vmatmul.bf16.vlgmr.msrb.gmra.mxu1 %v12662_v35  ;;  %v10141_v35 = vld [vmem:[%s15272_s7 + $0xd18] sm:$0xf0]  ;;  %v6033_v44 = vpop.f32.mrf.mxu3  ;;  %s10214_s7 = smov [#allocation2]  }
 0x3d2   :  { %6206 = vmatpush.bf16.msra.mxu1 %v9385_v11  ;;  %v9273_v32 = vor.u32 %v10141_v35, %v9272_v51  ;;  %v5969_v13 = vadd.f32 %v15156_v63, %v5956_v2  ;;  %v3179_v63 = vperm.slane %v15026_v17, 6  ;;  %s6239_s28 = sshll.u32 %s10214_s7, 4  ;;  %s6240_s28 = int_to_ptr.vmem [resolvable:$true] %s6239_s28 }
 0x3d4   :  { %v5996_v29 = vpop.f32.mrf.mxu0  ;;  %v5982_v8 = vadd.f32 %v15179_v10, %v5969_v13 }
 0x3d6   :  { %6207 = vmatpush.bf16.msra.mxu1 %v9357_v42  ;;  %v6020_v25 = vpop.f32.mrf.mxu2  ;;  %v5995_v33 = vadd.f32 %v5994_v21, %v5982_v8 }
 0x3d7   :  { %v6021_v49 = vadd.f32 %v6020_v25, %v3178_v23  ;;  %v5957_v45 = vpop.f32.mrf.mxu1 }
 0x3d9   :  { %v6034_v54 = vadd.f32 %v6033_v44, %v6021_v49  ;;  %v6035_v26 = vpop.f32.mrf.mxu3 }
 0x3da   :  { %6208 = vmatpush.bf16.msra.mxu1 %v9329_v50 }
 0x3de   :  { %6209 = vmatpush.bf16.msra.mxu1 %v9301_v52  ;;  %v6022_v38 = vpop.f32.mrf.mxu2 }
 0x3e2   :  { %6210 = vmatpush.bf16.msra.mxu1 %v9273_v32 }
 0x3e6   :  { %6211 = vmatpush.bf16.msra.mxu1 %v9245_v58 }
 0x3ea   :  { %6212 = vmatpush.bf16.msra.mxu1 %v9217_v36 }
 0x3ec   :  { %v6046_v12 = vpop.f32.mrf.mxu0 }
 0x3ed   :  { %v6047_v43 = vadd.f32 %v6046_v12, %v6034_v54 }
 0x3ee   :  { %6213 = vmatpush.bf16.msra.mxu1 %v9189_v55  ;;  %v6007_v14 = vpop.f32.mrf.mxu1 }
 0x3ef   :  { %v6008_v18 = vadd.f32 %v6007_v14, %v5995_v33 }
 0x3f1   :  { %6214 = vmatmul.bf16.vlgmr.msra.gmra.mxu1 %v13299_v53  ;;  %10179 = vtanh.f32 %v6008_v18  ;;  %v6085_v16 = vpop.f32.mrf.mxu3 }
 0x3f4   :  { %v6048_v20 = vpop.f32.mrf.mxu0 }
 0x3f6   :  { %v6072_v9 = vpop.f32.mrf.mxu2  ;;  %v6009_v1 = vpop.f32.mrf.mxu1 }
 0x3f7   :  { %v10180_v22 = vpop.eup %10179 }
 0x3f8   :  { %6230 = vst [vmem:[#allocation2 + $0x20] sm:$0xff] %v10180_v22 }
 0x3f9   :  { %v6087_v61 = vpop.f32.mrf.mxu3 }
 0x3fe   :  { %v6074_v34 = vpop.f32.mrf.mxu2 }
 0x40c   :  { %v6098_v6 = vpop.f32.mrf.mxu0 }
 0x40e   :  { %v6059_v53 = vpop.f32.mrf.mxu1 }
 0x40f   :  { %v6060_v24 = vadd.f32 %v6059_v53, %v6047_v43 }
 0x411   :  { %v6137_v10 = vpop.f32.mrf.mxu3  ;;  %v6073_v60 = vadd.f32 %v6072_v9, %v6060_v24 }
 0x413   :  { %v6086_v46 = vadd.f32 %v6085_v16, %v6073_v60 }
 0x414   :  { %v6100_v39 = vpop.f32.mrf.mxu0 }
 0x415   :  { %v6099_v28 = vadd.f32 %v6098_v6, %v6086_v46 }
 0x416   :  { %v6124_v15 = vpop.f32.mrf.mxu2  ;;  %v6061_v40 = vpop.f32.mrf.mxu1 }
 0x417   :  { %v6125_v27 = vadd.f32 %v6124_v15, %v3179_v63 }
 0x419   :  { %v6138_v31 = vadd.f32 %v6137_v10, %v6125_v27  ;;  %v6139_v41 = vpop.f32.mrf.mxu3 }
 0x41e   :  { %v6126_v30 = vpop.f32.mrf.mxu2 }
 0x42c   :  { %v6150_v7 = vpop.f32.mrf.mxu0 }
 0x42d   :  { %v6151_v23 = vadd.f32 %v6150_v7, %v6138_v31 }
 0x42e   :  { %v6111_v42 = vpop.f32.mrf.mxu1 }
 0x42f   :  { %v6112_v47 = vadd.f32 %v6111_v42, %v6099_v28 }
 0x431   :  { %10181 = vtanh.f32 %v6112_v47  ;;  %v6189_v5 = vpop.f32.mrf.mxu3 }
 0x434   :  { %v6152_v50 = vpop.f32.mrf.mxu0 }
 0x436   :  { %v6176_v11 = vpop.f32.mrf.mxu2  ;;  %v6113_v56 = vpop.f32.mrf.mxu1 }
 0x437   :  { %v10182_v3 = vpop.eup %10181 }
 0x438   :  { %6231 = vst [vmem:[#allocation2 + $0x28] sm:$0xff] %v10182_v3 }
 0x439   :  { %v6191_v52 = vpop.f32.mrf.mxu3 }
 0x43e   :  { %v6178_v17 = vpop.f32.mrf.mxu2 }
 0x44c   :  { %v6202_v25 = vpop.f32.mrf.mxu0 }
 0x44e   :  { %v6163_v51 = vpop.f32.mrf.mxu1 }
 0x44f   :  { %v6164_v19 = vadd.f32 %v6163_v51, %v6151_v23 }
 0x451   :  { %v6177_v32 = vadd.f32 %v6176_v11, %v6164_v19 }
 0x453   :  { %v6190_v48 = vadd.f32 %v6189_v5, %v6177_v32 }
 0x454   :  { %v6204_v35 = vpop.f32.mrf.mxu0 }
 0x455   :  { %v6203_v57 = vadd.f32 %v6202_v25, %v6190_v48 }
 0x456   :  { %v6165_v21 = vpop.f32.mrf.mxu1 }
 0x46e   :  { %v6215_v49 = vpop.f32.mrf.mxu1 }
 0x46f   :  { %v6216_v44 = vadd.f32 %v6215_v49, %v6203_v57 }
 0x471   :  { %10183 = vtanh.f32 %v6216_v44 }
 0x476   :  { %v6217_v58 = vpop.f32.mrf.mxu1 }
 0x477   :  { %v10184_v54 = vpop.eup %10183 }
 0x478   :  { %6233 = vst.msk [vmem:[#allocation2 + $0x30] sm:$0xff] %vm6232_vm0, %v10184_v54 }
 0x479   :  { %6244 = dma.vmem_to_hbm [thread:$0]  %s6240_s28, 896, %s6242_s10, [#allocation3]  }
 0x47a   :  { %10212 = dma.done.wait [#allocation3], 896  }
 0x47b   :  { %10213 = vsyncadd [#allocation3], 4294966400 }
 0x47c   :  { %6249 = vsyncpa [#allocation3], 1 }

</bundles_post_ra>
